<compile_context>
chip_gen: v6e
topology: v6e:2x2x1
jax: 0.10.0
libtpu: 0.0.40
codegen_flags: <defaults>
</compile_context>

<pallas_src>
import functools

import jax
import jax.numpy as jnp
from jax.experimental import pallas as pl
from jax.experimental.pallas import tpu as pltpu


_TARGET_BLOCK_BYTES = 8 << 20    # ~8 MiB logical (in+out) per grid step (review: sweep 4-16 MiB)
_VMEM_LIMIT_BYTES = 32 << 20     # explicit scoped-VMEM ceiling; safe on v5e/v6e/v7x (64 MiB phys)
_VMEM_SET_BUDGET = 14 << 20      # one (in+out) block set; x2 double-buffer = 28 MiB < limit
_XLA_TINY_BYTES = 128 << 10      # below this output size, XLA pad/convert beats kernel overhead


def _round_up(x, m):
    return ((x + m - 1) // m) * m


def _pick_nc_tile(nc, padded_slab_bytes, logical_slab_bytes, *, sublane_multiple=1):
    """Pick the NC tile (a divisor of nc).

    padded_slab_bytes  : VMEM bytes per single NC row for (in block + out block),
                         with lane/sublane padding accounted for.
    logical_slab_bytes : HBM bytes actually moved per NC row (per-step-overhead target).
    sublane_multiple   : alignment required when the NC axis is the sublane
                         (second-minor) dim of a block; 1 when NC is a major dim.

    Returns None if even a single NC row does not fit the VMEM budget, or if no
    aligned divisor exists below the cap (callers fall back to another path).
    """
    if padded_slab_bytes > _VMEM_SET_BUDGET:
        return None
    cap = min(
        nc,
        max(1, _VMEM_SET_BUDGET // padded_slab_bytes),
        max(1, _TARGET_BLOCK_BYTES // max(1, logical_slab_bytes)),
    )
    if cap >= nc:
        # Whole NC axis fits one block: a single grid step has zero per-step
        # overhead (v5e/v6e grids are serial loops anyway; only huge problems
        # get multiple steps and thus megacore parallelism on v7x).
        return nc
    best, best_even = None, None
    for d in range(cap, 0, -1):
        if nc % d or d % sublane_multiple:
            continue
        if best is None:
            best = d
        if (nc // d) % 2 == 0:        # even step count keeps v7x's 2 TCs balanced
            best_even = d
            break
    if best is None:
        return None
    if best_even is not None and best_even * 2 >= best:
        return best_even
    return best


def _pad_flat_kernel(x_ref, o_ref, *, copy_cols):
    # Lane-dense path (W unchanged): spatial dims flattened, so the copied
    # region is a contiguous prefix of the last (lane) dim and the block's
    # stores / HBM writes run at full width.
    nc_t, out_cols = o_ref.shape
    if copy_cols < out_cols:
        o_ref[:, copy_cols:] = jnp.zeros((nc_t, out_cols - copy_cols), o_ref.dtype)
    # In-kernel dtype promotion: the input is DMA'd from HBM in its original
    # (possibly narrower) dtype and cast on the VPU (free under HBM-bound slack).
    o_ref[:, :copy_cols] = x_ref[...].astype(o_ref.dtype)


def _crop_pad_hw_kernel(x_ref, o_ref, *, h_copy, w_copy):
    # Generic path. x_ref: (nc_tile, h_in_blk, w_in_blk); o_ref: (nc_tile, H_out, W_out).
    # The block covers the full (H_out, W_out) extent, so the VMEM->HBM DMA is
    # contiguous on the HBM side regardless of W_out.  Zero only the pad bands
    # (right band restricted to rows [:h_copy] so the corner is written once).
    nc_t, h_out, w_out = o_ref.shape
    if w_copy < w_out:
        o_ref[:, :h_copy, w_copy:] = jnp.zeros(
            (nc_t, h_copy, w_out - w_copy), o_ref.dtype)
    if h_copy < h_out:
        o_ref[:, h_copy:, :] = jnp.zeros(
            (nc_t, h_out - h_copy, w_out), o_ref.dtype)
    o_ref[:, :h_copy, :w_copy] = x_ref[:, :h_copy, :w_copy].astype(o_ref.dtype)


def _xla_crop_pad(x, h_out, w_out, h_copy, w_copy):
    """Plain-XLA crop+pad+promote (tiny problems and VMEM-overflow fallback)."""
    n, c = x.shape[0], x.shape[1]
    out = jnp.zeros((n, c, h_out, w_out), jnp.float32)
    return out.at[:, :, :h_copy, :w_copy].set(
        x[:, :, :h_copy, :w_copy].astype(jnp.float32))


def crop(x, resize_to):
    """Crop / zero-pad the spatial dims of NCHW `x` to match resize_to's dims 2+."""
    if x.ndim != 4:
        # TODO(synk): generalize to ranks other than 4 (N, C, *spatial).
        raise NotImplementedError("crop kernel supports NCHW (4-D) inputs only")

    r_shape = tuple(resize_to.shape) if hasattr(resize_to, "shape") else tuple(resize_to)
    N, C, H_in, W_in = x.shape
    H_out, W_out = int(r_shape[2]), int(r_shape[3])
    h_copy, w_copy = min(H_in, H_out), min(W_in, W_out)
    needs_pad = (H_out > H_in) or (W_out > W_in)

    # Fast paths: identity / pure crop is a strided HBM copy -> let XLA do it.
    if not needs_pad:
        if (H_out, W_out) == (H_in, W_in):
            return x
        return x[:, :, :H_out, :W_out]

    NC = N * C
    out_dtype = jnp.float32          # PyTorch pads with torch.zeros (float32) -> promotes.
    out_isz = 4
    in_isz = jnp.dtype(x.dtype).itemsize
    sub_in = max(8, 32 // in_isz)    # sublane pack: 8 f32 / 16 bf16 / 32 int8-fp8

    # Tiny problems: per-step pipeline overhead dominates; XLA's fused
    # pad+convert already sits at the HBM roofline for one-pass data movement.
    if NC * H_out * W_out * out_isz < _XLA_TINY_BYTES:
        return _xla_crop_pad(x, H_out, W_out, h_copy, w_copy)

    cparams = pltpu.CompilerParams(
        dimension_semantics=("parallel",),
        vmem_limit_bytes=_VMEM_LIMIT_BYTES,
    )

    if W_out == W_in:
        # Lane-dense flat path: only H is padded; flatten spatial dims so the
        # output block's last dim is H_out*W (full-width stores), via a free
        # (contiguous) wrapper reshape.
        in_cols, out_cols = H_in * W_in, H_out * W_out
        padded = (_round_up(in_cols, 128) * in_isz
                  + _round_up(out_cols, 128) * out_isz)
        logical = in_cols * in_isz + out_cols * out_isz
        nc_tile = _pick_nc_tile(NC, padded, logical, sublane_multiple=sub_in)
        if nc_tile is not None:
            x_flat = x.reshape(NC, in_cols)
            kernel = functools.partial(_pad_flat_kernel, copy_cols=in_cols)
            out = pl.pallas_call(
                kernel,
                out_shape=jax.ShapeDtypeStruct((NC, out_cols), out_dtype),
                grid=(NC // nc_tile,),
                in_specs=[pl.BlockSpec((nc_tile, in_cols), lambda i: (i, 0))],
                out_specs=pl.BlockSpec((nc_tile, out_cols), lambda i: (i, 0)),
                compiler_params=cparams,
            )(x_flat)
            return out.reshape(N, C, H_out, W_out)
        # No sublane-aligned NC tile fits -> fall through to the generic path
        # (NC is a major dim there, so no alignment constraint).

    # Generic 3-D path: W changes (pad or crop), H may crop/pad/match.
    # Input block only carries the rows/cols that are actually copied
    # (rounded to legal (sublane, 128-lane) block dims, capped at full extent).
    h_in_blk = min(H_in, _round_up(h_copy, sub_in))
    w_in_blk = min(W_in, _round_up(w_copy, 128))
    padded = (_round_up(h_in_blk, sub_in) * _round_up(w_in_blk, 128) * in_isz
              + _round_up(H_out, 8) * _round_up(W_out, 128) * out_isz)
    logical = h_in_blk * w_in_blk * in_isz + H_out * W_out * out_isz
    nc_tile = _pick_nc_tile(NC, padded, logical, sublane_multiple=1)
    if nc_tile is None:
        # TODO(synk): H-tiled grid axis for gigantic spatial extents; until then
        # fall back to XLA (still a single roofline-bound pad/convert pass).
        return _xla_crop_pad(x, H_out, W_out, h_copy, w_copy)

    x3 = x.reshape(NC, H_in, W_in)
    kernel = functools.partial(_crop_pad_hw_kernel, h_copy=h_copy, w_copy=w_copy)
    out = pl.pallas_call(
        kernel,
        out_shape=jax.ShapeDtypeStruct((NC, H_out, W_out), out_dtype),
        grid=(NC // nc_tile,),
        in_specs=[pl.BlockSpec((nc_tile, h_in_blk, w_in_blk), lambda i: (i, 0, 0))],
        out_specs=pl.BlockSpec((nc_tile, H_out, W_out), lambda i: (i, 0, 0)),
        compiler_params=cparams,
    )(x3)
    return out.reshape(N, C, H_out, W_out)


class Crop:
    """Thin functional analogue of the PyTorch nn.Module."""

    def __init__(self, resize_to):
        self.resize_to = resize_to

    def __call__(self, inputs):
        return crop(inputs, self.resize_to)


if __name__ == "__main__":
    key = jax.random.PRNGKey(0)
    k1, k2, k3 = jax.random.split(key, 3)

    # --- Test 1: small crop-H (16->12) + pad-W (16->20), f32 (tiny -> XLA path,
    #             checks exact crop/pad/promote semantics). --------------------
    x = jax.random.normal(k1, (2, 4, 16, 16), dtype=jnp.float32)
    y = crop(x, (2, 4, 12, 20))
    jax.block_until_ready(y)
    ref = jnp.zeros((2, 4, 12, 20), jnp.float32).at[:, :, :12, :16].set(x[:, :, :12, :16])
    assert y.shape == (2, 4, 12, 20), y.shape
    assert y.dtype == jnp.float32, y.dtype
    assert jnp.allclose(y, ref), "mismatch vs reference (tiny crop+pad)"

    # --- Test 2: generic Pallas path (multi-step grid) -- crop H (128->112),
    #             pad W (128->160), f32. -------------------------------------
    x2 = jax.random.normal(k2, (4, 32, 128, 128), dtype=jnp.float32)
    y2 = crop(x2, (4, 32, 112, 160))
    jax.block_until_ready(y2)
    ref2 = (jnp.zeros((4, 32, 112, 160), jnp.float32)
            .at[:, :, :112, :128].set(x2[:, :, :112, :]))
    assert y2.shape == (4, 32, 112, 160), y2.shape
    assert y2.dtype == jnp.float32, y2.dtype
    assert jnp.allclose(y2, ref2), "mismatch vs reference (generic crop+pad)"

    # --- Test 3: lane-dense flat Pallas path -- pad H (128->160), W unchanged,
    #             bf16 input (in-kernel promotion to f32). --------------------
    x3 = jax.random.normal(k3, (2, 4, 128, 128), dtype=jnp.bfloat16)
    y3 = crop(x3, (2, 4, 160, 128))
    jax.block_until_ready(y3)
    ref3 = (jnp.zeros((2, 4, 160, 128), jnp.float32)
            .at[:, :, :128, :].set(x3.astype(jnp.float32)))
    assert y3.shape == (2, 4, 160, 128), y3.shape
    assert y3.dtype == jnp.float32, y3.dtype
    assert jnp.allclose(y3, ref3), "mismatch vs reference (flat H-pad)"

    # --- Test 4: pure crop fast path (plain XLA slice, dtype preserved). ------
    y4 = crop(x, (2, 4, 12, 16))
    jax.block_until_ready(y4)
    assert y4.shape == (2, 4, 12, 16) and y4.dtype == x.dtype
    assert jnp.array_equal(y4, x[:, :, :12, :]), "mismatch vs reference (crop-only)"

    print("KERNEL_OK")
</pallas_src>

<mosaic_0001>
module attributes {stable_mosaic.version = 11 : i64} {
  func.func @_crop_pad_hw_kernel(%arg0: i32, %arg1: memref<64x112x128xf32, #tpu.memory_space<vmem>>, %arg2: memref<64x112x160xf32, #tpu.memory_space<vmem>>) attributes {dimension_semantics = [#tpu.dimension_semantics<parallel>], iteration_bounds = array<i64: 2>, scalar_prefetch = 0 : i64, scratch_operands = 0 : i64, tpu.core_type = #tpu.core_type<tc>, window_params = [{transform_indices = @transform_0, window_bounds = array<i64: 64, 112, 128>}, {transform_indices = @transform_1, window_bounds = array<i64: 64, 112, 160>}]} {
    %cst = arith.constant 0.000000e+00 : f32
    %0 = vector.broadcast %cst : f32 to vector<64x112x32xf32>
    %c0 = arith.constant 0 : index
    %c0_0 = arith.constant 0 : index
    %c128 = arith.constant 128 : index
    %1 = vector.load %arg2[%c0, %c0_0, %c128] : memref<64x112x160xf32, #tpu.memory_space<vmem>>, vector<64x112x32xf32>
    tpu.vector_store %arg2[%c0, %c0_0, %c128], %0 {strides = array<i32>} : memref<64x112x160xf32, #tpu.memory_space<vmem>>, vector<64x112x32xf32>,
    %c0_1 = arith.constant 0 : index
    %c0_2 = arith.constant 0 : index
    %c0_3 = arith.constant 0 : index
    %2 = vector.load %arg1[%c0_1, %c0_2, %c0_3] : memref<64x112x128xf32, #tpu.memory_space<vmem>>, vector<64x112x128xf32>
    %c0_4 = arith.constant 0 : index
    %c0_5 = arith.constant 0 : index
    %c0_6 = arith.constant 0 : index
    %3 = vector.load %arg2[%c0_4, %c0_5, %c0_6] : memref<64x112x160xf32, #tpu.memory_space<vmem>>, vector<64x112x128xf32>
    tpu.vector_store %arg2[%c0_4, %c0_5, %c0_6], %2 {strides = array<i32>} : memref<64x112x160xf32, #tpu.memory_space<vmem>>, vector<64x112x128xf32>,
    return
  }
  func.func @transform_0(%arg0: i32) -> (i32, i32, i32) {
    %c0_i32 = arith.constant 0 : i32
    %c0_i32_0 = arith.constant 0 : i32
    %c0_i32_1 = arith.constant 0 : i32
    return %arg0, %c0_i32, %c0_i32_0 : i32, i32, i32
  }
  func.func @transform_1(%arg0: i32) -> (i32, i32, i32) {
    %c0_i32 = arith.constant 0 : i32
    %c0_i32_0 = arith.constant 0 : i32
    %c0_i32_1 = arith.constant 0 : i32
    return %arg0, %c0_i32, %c0_i32_0 : i32, i32, i32
  }
}

</mosaic_0001>

<bundles_post_ra>
// kernel: tpu_custom_call.1
= control target key start
LH: loop header
LB: loop body
LE: loop exit
PB: predicated region body
PF: predicated region fallthrough
CT: control target
= control target key end

     0   :  { %6 = vsyncpa [#allocation3], 0  ;;  %s7627_s0 = inlined_call_operand.hbm [shape: f32[128,128,128], index: 0, kind: input, shape index: {}]   ;;  %s7628_s1 = inlined_call_operand.vmem [shape: f32[128,112,160], index: 1, kind: output, shape index: {}]  }
   0x1   :  { %8 = vsyncpa [#allocation3 + $0x1], 0  ;;  %s3045_s6 = smov 0   ;;  %s3047_s7 = smov 0  }
   0x2   :  { %s3049_s8 = smov 0   ;;  %s3051_s9 = smov 0  }
   0x3 LB: > { %s2925_s10 = sadd.s32 4294967295, %s3026_s9   ;;  %s3065_s11 = sadd.s32 1, %s3026_s9   ;;  %s3026_s9 = sphi %s3051_s9, %s7634_s9   ;;  %s3022_s8 = sphi %s3049_s8, %s7633_s8   ;;  %s3018_s7 = sphi %s3047_s7, %s7632_s7   ;;  %s3014_s6 = sphi %s3045_s6, %s7631_s6  }
   0x4   : > { %s18_s12 = ssub.s32 %s3026_s9, %s3065_s11  ;;  %s21_s13 = sadd.s32 1, %s3022_s8 }
   0x5   : > { %p19_p0 = scmp.eq.s32.totalorder %s18_s12, 0  ;;  %p28_p1 = scmp.ne.s32.totalorder %s3022_s8, %s3018_s7 }
   0x6   : > { %p29_p2 = scmp.eq.s32.totalorder %s3026_s9, 0  ;;  %p34_p3 = scmp.ne.s32.totalorder %s3018_s7, %s3014_s6 }
   0x7   : > { %s3075_s14 = scalar_select %p19_p0, %s3022_s8, %s21_s13  }
   0x8   : > { %p3077_p4 = por %p29_p2, %p28_p1  ;;  %p35_p5 = scmp.eq.s32.totalorder %s2925_s10, 0 }
   0x9   : > { %p2928_p7 = scmp.ge.s32.totalorder %s3026_s9, 2 }
   0xa   : > { %p3083_p6 = por %p35_p5, %p34_p3 }
   0xb   : > { %80 = sbr.rel (%p2928_p7) target bundleno = 30 (0x1e), region = 16 }
  0x10   : > { %s84_s17 = sand.u32 1, %s3022_s8   ;;  %s2940_s19 = sshll.u32 %s3026_s9, 17 }
  0x11   : > { %s2941_s18 = smul.u32 7168, %s84_s17  ;;  %s3028_s20 = smov 2048  }
  0x12   : > { %2945 = sst [smem:[#allocation5]] (%p3077_p4), %s3028_s20  ;;  %s95_s24 = scalar_lea.hbm %s7627_s0, %s2940_s19 }
  0x13   : > { %s2944_s21 = scalar_select %p3077_p4, [#allocation0], [#allocation6] }
  0x14   : > { %s88_s26 = scalar_lea.vmem [#allocation2], %s2941_s18  ;;  %s3029_s28 = smov 1792  }
  0x15   : > { %s100_s25 = sld [smem:[%s2944_s21]]   ;;  %s108_s27 = sshll.u32 %s88_s26, 4  ;;  %s109_s27 = int_to_ptr.vmem [resolvable:$true] %s108_s27 }
  0x16   : > { %2946 = sst [smem:[#allocation5 + $0x1]] (%p3077_p4), %s3029_s28  ;;  %s3030_s29 = smov 14  }
  0x17   : > { %2947 = sst [smem:[#allocation5 + $0x2]] (%p3077_p4), %s3030_s29  ;;  %s3031_s30 = smov 128  }
  0x18   : > { %2948 = sst [smem:[#allocation5 + $0x3]] (%p3077_p4), %s3031_s30  ;;  %s3032_s2 = smov 8  }
  0x19   : > { %2949 = sst [smem:[#allocation5 + $0x4]] (%p3077_p4), %s3031_s30  ;;  %s85_s5 = scalar_lea.sflag [#allocation3], %s84_s17 }
  0x1a   : > { %2950 = sst [smem:[#allocation5 + $0x5]] (%p3077_p4), %s3032_s2  ;;  %s3033_s6 = smov 131072  }
  0x1b   : > { %s2932_s3 = sshll.u32 %s100_s25, 26 }
  0x1c   : > { %s2933_s4 = sadd.s32 134217728, %s2932_s3 }
  0x1d   : > { %2951 = dma.general (%p3077_p4), %s95_s24, 114688, %s109_s27, %s85_s5, %s3033_s6, [#allocation5], %s2933_s4, 0  }
  0x1e PF: > { %p2934_p8 = scmp.ge.s32.totalorder %s3026_s9, 1  ;;  %p129_p9 = scmp.lt.s32.totalorder %s3026_s9, 3 }
  0x20   : > { %p130_p10 = pnand %p2934_p8, %p129_p9 }
  0x21   : > { %s135_s12 = sand.u32 (!%p130_p10), 1, %s3018_s7  }
  0x22   : > { %133 = sbr.rel (%p130_p10) target bundleno = 943 (0x3af), region = 24  ;;  %s136_s18 = scalar_lea.sflag (!%p130_p10), [#allocation3], %s135_s12 }
  0x23   : > { %s2942_s13 = smul.u32 (!%p130_p10), 7168, %s135_s12 }
  0x25   : > { %s3112_s19 = scalar_lea.vmem (!%p130_p10), [#allocation2], %s2942_s13 }
  0x27   : > { %3009 = dma.done.wait (%p3083_p6), %s136_s18, 114688  }
  0x28   : > { %3011 = vsyncadd (%p3083_p6), %s136_s18, 4294852608  ;;  %s2935_s15 = sshll.u32 %s2925_s10, 6  ;;  %vm167_vm0 = vcmask 261120   ;;  %v3126_v0 = vld [vmem:[%s3112_s19] sm:$0xff]  ;;  %v3129_v1 = vld [vmem:[%s3112_s19 + $0x8] sm:$0xff]  ;;  %v3034_v3 = vmov 0.0  }
  0x29   : > { %p161_p11 = scmp.lt.s32.totalorder %s2935_s15, 127  ;;  %v3132_v2 = vld [vmem:[%s3112_s19 + $0x10] sm:$0xff]  ;;  %v1067_v4 = vld [vmem:[%s3112_s19 + $0x18] sm:$0xff]  ;;  %v1068_v5 = vld [vmem:[%s3112_s19 + $0x20] sm:$0xff] }
  0x2a   : > { %v1069_v6 = vld [vmem:[%s3112_s19 + $0x28] sm:$0xff]  ;;  %v1070_v7 = vld [vmem:[%s3112_s19 + $0x30] sm:$0xff]  ;;  %v1071_v8 = vld [vmem:[%s3112_s19 + $0x38] sm:$0xff] }
  0x2b   : > { %s7636_s15 = smov (!%p161_p11, %s2935_s15), 127  ;;  %v1072_v9 = vld [vmem:[%s3112_s19 + $0x40] sm:$0xff]  ;;  %v1073_v10 = vld [vmem:[%s3112_s19 + $0x48] sm:$0xff]  ;;  %v1074_v11 = vld [vmem:[%s3112_s19 + $0x50] sm:$0xff] }
  0x2c   : > { %s2943_s17 = smul.u32 224, %s7636_s15  ;;  %v1075_v12 = vld [vmem:[%s3112_s19 + $0x58] sm:$0xff]  ;;  %v1076_v13 = vld [vmem:[%s3112_s19 + $0x60] sm:$0xff]  ;;  %v1077_v14 = vld [vmem:[%s3112_s19 + $0x68] sm:$0xff] }
  0x2d   : > { %v1078_v15 = vld [vmem:[%s3112_s19 + $0x70] sm:$0xff]  ;;  %v1079_v16 = vld [vmem:[%s3112_s19 + $0x78] sm:$0xff]  ;;  %v1080_v17 = vld [vmem:[%s3112_s19 + $0x80] sm:$0xff] }
  0x2e   : > { %s3123_s22 = scalar_lea.vmem %s7628_s1, %s2943_s17  ;;  %v1081_v18 = vld [vmem:[%s3112_s19 + $0x88] sm:$0xff]  ;;  %v1082_v19 = vld [vmem:[%s3112_s19 + $0x90] sm:$0xff]  ;;  %v1083_v20 = vld [vmem:[%s3112_s19 + $0x98] sm:$0xff] }
  0x2f   : > { %168 = vst.msk [vmem:[%s3123_s22 + $0x8] sm:$0xff] %vm167_vm0, %v3034_v3  ;;  %169 = vst.msk [vmem:[%s3123_s22 + $0x18] sm:$0xff] %vm167_vm0, %v3034_v3  ;;  %v1084_v21 = vld [vmem:[%s3112_s19 + $0xa0] sm:$0xff]  ;;  %v1085_v22 = vld [vmem:[%s3112_s19 + $0xa8] sm:$0xff] }
  0x30   : > { %170 = vst.msk [vmem:[%s3123_s22 + $0x28] sm:$0xff] %vm167_vm0, %v3034_v3  ;;  %171 = vst.msk [vmem:[%s3123_s22 + $0x38] sm:$0xff] %vm167_vm0, %v3034_v3  ;;  %v1086_v23 = vld [vmem:[%s3112_s19 + $0xb0] sm:$0xff]  ;;  %v1087_v24 = vld [vmem:[%s3112_s19 + $0xb8] sm:$0xff] }
  0x31   : > { %172 = vst.msk [vmem:[%s3123_s22 + $0x48] sm:$0xff] %vm167_vm0, %v3034_v3  ;;  %173 = vst.msk [vmem:[%s3123_s22 + $0x58] sm:$0xff] %vm167_vm0, %v3034_v3  ;;  %v1088_v25 = vld [vmem:[%s3112_s19 + $0xc0] sm:$0xff]  ;;  %v1089_v26 = vld [vmem:[%s3112_s19 + $0xc8] sm:$0xff] }
  0x32   : > { %174 = vst.msk [vmem:[%s3123_s22 + $0x68] sm:$0xff] %vm167_vm0, %v3034_v3  ;;  %175 = vst.msk [vmem:[%s3123_s22 + $0x78] sm:$0xff] %vm167_vm0, %v3034_v3  ;;  %v1090_v27 = vld [vmem:[%s3112_s19 + $0xd0] sm:$0xff]  ;;  %v1091_v28 = vld [vmem:[%s3112_s19 + $0xd8] sm:$0xff] }
  0x33   : > { %176 = vst.msk [vmem:[%s3123_s22 + $0x88] sm:$0xff] %vm167_vm0, %v3034_v3  ;;  %177 = vst.msk [vmem:[%s3123_s22 + $0x98] sm:$0xff] %vm167_vm0, %v3034_v3  ;;  %v1092_v29 = vld [vmem:[%s3112_s19 + $0xe0] sm:$0xff]  ;;  %v1093_v30 = vld [vmem:[%s3112_s19 + $0xe8] sm:$0xff] }
  0x34   : > { %178 = vst.msk [vmem:[%s3123_s22 + $0xa8] sm:$0xff] %vm167_vm0, %v3034_v3  ;;  %179 = vst.msk [vmem:[%s3123_s22 + $0xb8] sm:$0xff] %vm167_vm0, %v3034_v3  ;;  %v1094_v31 = vld [vmem:[%s3112_s19 + $0xf0] sm:$0xff]  ;;  %v1095_v32 = vld [vmem:[%s3112_s19 + $0xf8] sm:$0xff] }
  0x35   : > { %180 = vst.msk [vmem:[%s3123_s22 + $0xc8] sm:$0xff] %vm167_vm0, %v3034_v3  ;;  %181 = vst.msk [vmem:[%s3123_s22 + $0xd8] sm:$0xff] %vm167_vm0, %v3034_v3  ;;  %v1096_v33 = vld [vmem:[%s3112_s19 + $0x100] sm:$0xff]  ;;  %v1097_v34 = vld [vmem:[%s3112_s19 + $0x108] sm:$0xff] }
  0x36   : > { %182 = vst.msk [vmem:[%s3123_s22 + $0xe8] sm:$0xff] %vm167_vm0, %v3034_v3  ;;  %183 = vst.msk [vmem:[%s3123_s22 + $0xf8] sm:$0xff] %vm167_vm0, %v3034_v3  ;;  %v1098_v35 = vld [vmem:[%s3112_s19 + $0x110] sm:$0xff]  ;;  %v1099_v36 = vld [vmem:[%s3112_s19 + $0x118] sm:$0xff] }
  0x37   : > { %184 = vst.msk [vmem:[%s3123_s22 + $0x108] sm:$0xff] %vm167_vm0, %v3034_v3  ;;  %185 = vst.msk [vmem:[%s3123_s22 + $0x118] sm:$0xff] %vm167_vm0, %v3034_v3  ;;  %v1100_v37 = vld [vmem:[%s3112_s19 + $0x120] sm:$0xff]  ;;  %v1101_v38 = vld [vmem:[%s3112_s19 + $0x128] sm:$0xff] }
  0x38   : > { %186 = vst.msk [vmem:[%s3123_s22 + $0x128] sm:$0xff] %vm167_vm0, %v3034_v3  ;;  %187 = vst.msk [vmem:[%s3123_s22 + $0x138] sm:$0xff] %vm167_vm0, %v3034_v3  ;;  %v1102_v39 = vld [vmem:[%s3112_s19 + $0x130] sm:$0xff]  ;;  %v1103_v40 = vld [vmem:[%s3112_s19 + $0x138] sm:$0xff] }
  0x39   : > { %188 = vst.msk [vmem:[%s3123_s22 + $0x148] sm:$0xff] %vm167_vm0, %v3034_v3  ;;  %189 = vst.msk [vmem:[%s3123_s22 + $0x158] sm:$0xff] %vm167_vm0, %v3034_v3  ;;  %v1104_v41 = vld [vmem:[%s3112_s19 + $0x140] sm:$0xff]  ;;  %v1105_v42 = vld [vmem:[%s3112_s19 + $0x148] sm:$0xff] }
  0x3a   : > { %190 = vst.msk [vmem:[%s3123_s22 + $0x168] sm:$0xff] %vm167_vm0, %v3034_v3  ;;  %191 = vst.msk [vmem:[%s3123_s22 + $0x178] sm:$0xff] %vm167_vm0, %v3034_v3  ;;  %v1106_v43 = vld [vmem:[%s3112_s19 + $0x150] sm:$0xff]  ;;  %v1107_v44 = vld [vmem:[%s3112_s19 + $0x158] sm:$0xff] }
  0x3b   : > { %192 = vst.msk [vmem:[%s3123_s22 + $0x188] sm:$0xff] %vm167_vm0, %v3034_v3  ;;  %193 = vst.msk [vmem:[%s3123_s22 + $0x198] sm:$0xff] %vm167_vm0, %v3034_v3  ;;  %v1108_v45 = vld [vmem:[%s3112_s19 + $0x160] sm:$0xff]  ;;  %v1109_v46 = vld [vmem:[%s3112_s19 + $0x168] sm:$0xff] }
  0x3c   : > { %194 = vst.msk [vmem:[%s3123_s22 + $0x1a8] sm:$0xff] %vm167_vm0, %v3034_v3  ;;  %195 = vst.msk [vmem:[%s3123_s22 + $0x1b8] sm:$0xff] %vm167_vm0, %v3034_v3  ;;  %v1110_v47 = vld [vmem:[%s3112_s19 + $0x170] sm:$0xff]  ;;  %v1111_v48 = vld [vmem:[%s3112_s19 + $0x178] sm:$0xff] }
  0x3d   : > { %196 = vst.msk [vmem:[%s3123_s22 + $0x1c8] sm:$0xff] %vm167_vm0, %v3034_v3  ;;  %197 = vst.msk [vmem:[%s3123_s22 + $0x1d8] sm:$0xff] %vm167_vm0, %v3034_v3  ;;  %v1112_v49 = vld [vmem:[%s3112_s19 + $0x180] sm:$0xff]  ;;  %v1113_v50 = vld [vmem:[%s3112_s19 + $0x188] sm:$0xff] }
  0x3e   : > { %198 = vst.msk [vmem:[%s3123_s22 + $0x1e8] sm:$0xff] %vm167_vm0, %v3034_v3  ;;  %199 = vst.msk [vmem:[%s3123_s22 + $0x1f8] sm:$0xff] %vm167_vm0, %v3034_v3  ;;  %v1114_v51 = vld [vmem:[%s3112_s19 + $0x190] sm:$0xff]  ;;  %v1115_v52 = vld [vmem:[%s3112_s19 + $0x198] sm:$0xff] }
  0x3f   : > { %200 = vst.msk [vmem:[%s3123_s22 + $0x208] sm:$0xff] %vm167_vm0, %v3034_v3  ;;  %201 = vst.msk [vmem:[%s3123_s22 + $0x218] sm:$0xff] %vm167_vm0, %v3034_v3  ;;  %v1116_v53 = vld [vmem:[%s3112_s19 + $0x1a0] sm:$0xff]  ;;  %v1117_v54 = vld [vmem:[%s3112_s19 + $0x1a8] sm:$0xff] }
  0x40   : > { %202 = vst.msk [vmem:[%s3123_s22 + $0x228] sm:$0xff] %vm167_vm0, %v3034_v3  ;;  %203 = vst.msk [vmem:[%s3123_s22 + $0x238] sm:$0xff] %vm167_vm0, %v3034_v3  ;;  %v1118_v55 = vld [vmem:[%s3112_s19 + $0x1b0] sm:$0xff]  ;;  %v1119_v56 = vld [vmem:[%s3112_s19 + $0x1b8] sm:$0xff] }
  0x41   : > { %204 = vst.msk [vmem:[%s3123_s22 + $0x248] sm:$0xff] %vm167_vm0, %v3034_v3  ;;  %205 = vst.msk [vmem:[%s3123_s22 + $0x258] sm:$0xff] %vm167_vm0, %v3034_v3  ;;  %v1120_v57 = vld [vmem:[%s3112_s19 + $0x1c0] sm:$0xff]  ;;  %v1121_v58 = vld [vmem:[%s3112_s19 + $0x1c8] sm:$0xff] }
  0x42   : > { %206 = vst.msk [vmem:[%s3123_s22 + $0x268] sm:$0xff] %vm167_vm0, %v3034_v3  ;;  %207 = vst.msk [vmem:[%s3123_s22 + $0x278] sm:$0xff] %vm167_vm0, %v3034_v3  ;;  %v1122_v59 = vld [vmem:[%s3112_s19 + $0x1d0] sm:$0xff]  ;;  %v1123_v60 = vld [vmem:[%s3112_s19 + $0x1d8] sm:$0xff] }
  0x43   : > { %208 = vst.msk [vmem:[%s3123_s22 + $0x288] sm:$0xff] %vm167_vm0, %v3034_v3  ;;  %209 = vst.msk [vmem:[%s3123_s22 + $0x298] sm:$0xff] %vm167_vm0, %v3034_v3  ;;  %v1124_v61 = vld [vmem:[%s3112_s19 + $0x1e0] sm:$0xff]  ;;  %v1125_v62 = vld [vmem:[%s3112_s19 + $0x1e8] sm:$0xff] }
  0x44   : > { %210 = vst.msk [vmem:[%s3123_s22 + $0x2a8] sm:$0xff] %vm167_vm0, %v3034_v3  ;;  %211 = vst.msk [vmem:[%s3123_s22 + $0x2b8] sm:$0xff] %vm167_vm0, %v3034_v3  ;;  %v1126_v63 = vld [vmem:[%s3112_s19 + $0x1f0] sm:$0xff] }
  0x45   : > { %212 = vst.msk [vmem:[%s3123_s22 + $0x2c8] sm:$0xff] %vm167_vm0, %v3034_v3  ;;  %213 = vst.msk [vmem:[%s3123_s22 + $0x2d8] sm:$0xff] %vm167_vm0, %v3034_v3 }
  0x46   : > { %214 = vst.msk [vmem:[%s3123_s22 + $0x2e8] sm:$0xff] %vm167_vm0, %v3034_v3  ;;  %215 = vst.msk [vmem:[%s3123_s22 + $0x2f8] sm:$0xff] %vm167_vm0, %v3034_v3 }
  0x47   : > { %216 = vst.msk [vmem:[%s3123_s22 + $0x308] sm:$0xff] %vm167_vm0, %v3034_v3  ;;  %217 = vst.msk [vmem:[%s3123_s22 + $0x318] sm:$0xff] %vm167_vm0, %v3034_v3 }
  0x48   : > { %218 = vst.msk [vmem:[%s3123_s22 + $0x328] sm:$0xff] %vm167_vm0, %v3034_v3  ;;  %219 = vst.msk [vmem:[%s3123_s22 + $0x338] sm:$0xff] %vm167_vm0, %v3034_v3 }
  0x49   : > { %220 = vst.msk [vmem:[%s3123_s22 + $0x348] sm:$0xff] %vm167_vm0, %v3034_v3  ;;  %221 = vst.msk [vmem:[%s3123_s22 + $0x358] sm:$0xff] %vm167_vm0, %v3034_v3 }
  0x4a   : > { %222 = vst.msk [vmem:[%s3123_s22 + $0x368] sm:$0xff] %vm167_vm0, %v3034_v3  ;;  %223 = vst.msk [vmem:[%s3123_s22 + $0x378] sm:$0xff] %vm167_vm0, %v3034_v3 }
  0x4b   : > { %224 = vst.msk [vmem:[%s3123_s22 + $0x388] sm:$0xff] %vm167_vm0, %v3034_v3  ;;  %225 = vst.msk [vmem:[%s3123_s22 + $0x398] sm:$0xff] %vm167_vm0, %v3034_v3 }
  0x4c   : > { %226 = vst.msk [vmem:[%s3123_s22 + $0x3a8] sm:$0xff] %vm167_vm0, %v3034_v3  ;;  %227 = vst.msk [vmem:[%s3123_s22 + $0x3b8] sm:$0xff] %vm167_vm0, %v3034_v3 }
  0x4d   : > { %228 = vst.msk [vmem:[%s3123_s22 + $0x3c8] sm:$0xff] %vm167_vm0, %v3034_v3  ;;  %229 = vst.msk [vmem:[%s3123_s22 + $0x3d8] sm:$0xff] %vm167_vm0, %v3034_v3 }
  0x4e   : > { %230 = vst.msk [vmem:[%s3123_s22 + $0x3e8] sm:$0xff] %vm167_vm0, %v3034_v3  ;;  %231 = vst.msk [vmem:[%s3123_s22 + $0x3f8] sm:$0xff] %vm167_vm0, %v3034_v3 }
  0x4f   : > { %232 = vst.msk [vmem:[%s3123_s22 + $0x408] sm:$0xff] %vm167_vm0, %v3034_v3  ;;  %233 = vst.msk [vmem:[%s3123_s22 + $0x418] sm:$0xff] %vm167_vm0, %v3034_v3 }
  0x50   : > { %234 = vst.msk [vmem:[%s3123_s22 + $0x428] sm:$0xff] %vm167_vm0, %v3034_v3  ;;  %235 = vst.msk [vmem:[%s3123_s22 + $0x438] sm:$0xff] %vm167_vm0, %v3034_v3 }
  0x51   : > { %236 = vst.msk [vmem:[%s3123_s22 + $0x448] sm:$0xff] %vm167_vm0, %v3034_v3  ;;  %237 = vst.msk [vmem:[%s3123_s22 + $0x458] sm:$0xff] %vm167_vm0, %v3034_v3 }
  0x52   : > { %238 = vst.msk [vmem:[%s3123_s22 + $0x468] sm:$0xff] %vm167_vm0, %v3034_v3  ;;  %239 = vst.msk [vmem:[%s3123_s22 + $0x478] sm:$0xff] %vm167_vm0, %v3034_v3 }
  0x53   : > { %240 = vst.msk [vmem:[%s3123_s22 + $0x488] sm:$0xff] %vm167_vm0, %v3034_v3  ;;  %241 = vst.msk [vmem:[%s3123_s22 + $0x498] sm:$0xff] %vm167_vm0, %v3034_v3 }
  0x54   : > { %242 = vst.msk [vmem:[%s3123_s22 + $0x4a8] sm:$0xff] %vm167_vm0, %v3034_v3  ;;  %243 = vst.msk [vmem:[%s3123_s22 + $0x4b8] sm:$0xff] %vm167_vm0, %v3034_v3 }
  0x55   : > { %244 = vst.msk [vmem:[%s3123_s22 + $0x4c8] sm:$0xff] %vm167_vm0, %v3034_v3  ;;  %245 = vst.msk [vmem:[%s3123_s22 + $0x4d8] sm:$0xff] %vm167_vm0, %v3034_v3 }
  0x56   : > { %246 = vst.msk [vmem:[%s3123_s22 + $0x4e8] sm:$0xff] %vm167_vm0, %v3034_v3  ;;  %247 = vst.msk [vmem:[%s3123_s22 + $0x4f8] sm:$0xff] %vm167_vm0, %v3034_v3 }
  0x57   : > { %248 = vst.msk [vmem:[%s3123_s22 + $0x508] sm:$0xff] %vm167_vm0, %v3034_v3  ;;  %249 = vst.msk [vmem:[%s3123_s22 + $0x518] sm:$0xff] %vm167_vm0, %v3034_v3 }
  0x58   : > { %250 = vst.msk [vmem:[%s3123_s22 + $0x528] sm:$0xff] %vm167_vm0, %v3034_v3  ;;  %251 = vst.msk [vmem:[%s3123_s22 + $0x538] sm:$0xff] %vm167_vm0, %v3034_v3 }
  0x59   : > { %252 = vst.msk [vmem:[%s3123_s22 + $0x548] sm:$0xff] %vm167_vm0, %v3034_v3  ;;  %253 = vst.msk [vmem:[%s3123_s22 + $0x558] sm:$0xff] %vm167_vm0, %v3034_v3 }
  0x5a   : > { %254 = vst.msk [vmem:[%s3123_s22 + $0x568] sm:$0xff] %vm167_vm0, %v3034_v3  ;;  %255 = vst.msk [vmem:[%s3123_s22 + $0x578] sm:$0xff] %vm167_vm0, %v3034_v3 }
  0x5b   : > { %256 = vst.msk [vmem:[%s3123_s22 + $0x588] sm:$0xff] %vm167_vm0, %v3034_v3  ;;  %257 = vst.msk [vmem:[%s3123_s22 + $0x598] sm:$0xff] %vm167_vm0, %v3034_v3 }
  0x5c   : > { %258 = vst.msk [vmem:[%s3123_s22 + $0x5a8] sm:$0xff] %vm167_vm0, %v3034_v3  ;;  %259 = vst.msk [vmem:[%s3123_s22 + $0x5b8] sm:$0xff] %vm167_vm0, %v3034_v3 }
  0x5d   : > { %260 = vst.msk [vmem:[%s3123_s22 + $0x5c8] sm:$0xff] %vm167_vm0, %v3034_v3  ;;  %261 = vst.msk [vmem:[%s3123_s22 + $0x5d8] sm:$0xff] %vm167_vm0, %v3034_v3 }
  0x5e   : > { %262 = vst.msk [vmem:[%s3123_s22 + $0x5e8] sm:$0xff] %vm167_vm0, %v3034_v3  ;;  %263 = vst.msk [vmem:[%s3123_s22 + $0x5f8] sm:$0xff] %vm167_vm0, %v3034_v3 }
  0x5f   : > { %264 = vst.msk [vmem:[%s3123_s22 + $0x608] sm:$0xff] %vm167_vm0, %v3034_v3  ;;  %265 = vst.msk [vmem:[%s3123_s22 + $0x618] sm:$0xff] %vm167_vm0, %v3034_v3 }
  0x60   : > { %266 = vst.msk [vmem:[%s3123_s22 + $0x628] sm:$0xff] %vm167_vm0, %v3034_v3  ;;  %267 = vst.msk [vmem:[%s3123_s22 + $0x638] sm:$0xff] %vm167_vm0, %v3034_v3 }
  0x61   : > { %268 = vst.msk [vmem:[%s3123_s22 + $0x648] sm:$0xff] %vm167_vm0, %v3034_v3  ;;  %269 = vst.msk [vmem:[%s3123_s22 + $0x658] sm:$0xff] %vm167_vm0, %v3034_v3 }
  0x62   : > { %270 = vst.msk [vmem:[%s3123_s22 + $0x668] sm:$0xff] %vm167_vm0, %v3034_v3  ;;  %271 = vst.msk [vmem:[%s3123_s22 + $0x678] sm:$0xff] %vm167_vm0, %v3034_v3 }
  0x63   : > { %272 = vst.msk [vmem:[%s3123_s22 + $0x688] sm:$0xff] %vm167_vm0, %v3034_v3  ;;  %273 = vst.msk [vmem:[%s3123_s22 + $0x698] sm:$0xff] %vm167_vm0, %v3034_v3 }
  0x64   : > { %274 = vst.msk [vmem:[%s3123_s22 + $0x6a8] sm:$0xff] %vm167_vm0, %v3034_v3  ;;  %275 = vst.msk [vmem:[%s3123_s22 + $0x6b8] sm:$0xff] %vm167_vm0, %v3034_v3 }
  0x65   : > { %276 = vst.msk [vmem:[%s3123_s22 + $0x6c8] sm:$0xff] %vm167_vm0, %v3034_v3  ;;  %277 = vst.msk [vmem:[%s3123_s22 + $0x6d8] sm:$0xff] %vm167_vm0, %v3034_v3 }
  0x66   : > { %278 = vst.msk [vmem:[%s3123_s22 + $0x6e8] sm:$0xff] %vm167_vm0, %v3034_v3  ;;  %279 = vst.msk [vmem:[%s3123_s22 + $0x6f8] sm:$0xff] %vm167_vm0, %v3034_v3 }
  0x67   : > { %280 = vst.msk [vmem:[%s3123_s22 + $0x708] sm:$0xff] %vm167_vm0, %v3034_v3  ;;  %281 = vst.msk [vmem:[%s3123_s22 + $0x718] sm:$0xff] %vm167_vm0, %v3034_v3 }
  0x68   : > { %282 = vst.msk [vmem:[%s3123_s22 + $0x728] sm:$0xff] %vm167_vm0, %v3034_v3  ;;  %283 = vst.msk [vmem:[%s3123_s22 + $0x738] sm:$0xff] %vm167_vm0, %v3034_v3 }
  0x69   : > { %284 = vst.msk [vmem:[%s3123_s22 + $0x748] sm:$0xff] %vm167_vm0, %v3034_v3  ;;  %285 = vst.msk [vmem:[%s3123_s22 + $0x758] sm:$0xff] %vm167_vm0, %v3034_v3 }
  0x6a   : > { %286 = vst.msk [vmem:[%s3123_s22 + $0x768] sm:$0xff] %vm167_vm0, %v3034_v3  ;;  %287 = vst.msk [vmem:[%s3123_s22 + $0x778] sm:$0xff] %vm167_vm0, %v3034_v3 }
  0x6b   : > { %288 = vst.msk [vmem:[%s3123_s22 + $0x788] sm:$0xff] %vm167_vm0, %v3034_v3  ;;  %289 = vst.msk [vmem:[%s3123_s22 + $0x798] sm:$0xff] %vm167_vm0, %v3034_v3 }
  0x6c   : > { %290 = vst.msk [vmem:[%s3123_s22 + $0x7a8] sm:$0xff] %vm167_vm0, %v3034_v3  ;;  %291 = vst.msk [vmem:[%s3123_s22 + $0x7b8] sm:$0xff] %vm167_vm0, %v3034_v3 }
  0x6d   : > { %292 = vst.msk [vmem:[%s3123_s22 + $0x7c8] sm:$0xff] %vm167_vm0, %v3034_v3  ;;  %293 = vst.msk [vmem:[%s3123_s22 + $0x7d8] sm:$0xff] %vm167_vm0, %v3034_v3 }
  0x6e   : > { %294 = vst.msk [vmem:[%s3123_s22 + $0x7e8] sm:$0xff] %vm167_vm0, %v3034_v3  ;;  %295 = vst.msk [vmem:[%s3123_s22 + $0x7f8] sm:$0xff] %vm167_vm0, %v3034_v3 }
  0x6f   : > { %296 = vst.msk [vmem:[%s3123_s22 + $0x808] sm:$0xff] %vm167_vm0, %v3034_v3  ;;  %297 = vst.msk [vmem:[%s3123_s22 + $0x818] sm:$0xff] %vm167_vm0, %v3034_v3 }
  0x70   : > { %298 = vst.msk [vmem:[%s3123_s22 + $0x828] sm:$0xff] %vm167_vm0, %v3034_v3  ;;  %299 = vst.msk [vmem:[%s3123_s22 + $0x838] sm:$0xff] %vm167_vm0, %v3034_v3 }
  0x71   : > { %300 = vst.msk [vmem:[%s3123_s22 + $0x848] sm:$0xff] %vm167_vm0, %v3034_v3  ;;  %301 = vst.msk [vmem:[%s3123_s22 + $0x858] sm:$0xff] %vm167_vm0, %v3034_v3 }
  0x72   : > { %302 = vst.msk [vmem:[%s3123_s22 + $0x868] sm:$0xff] %vm167_vm0, %v3034_v3  ;;  %303 = vst.msk [vmem:[%s3123_s22 + $0x878] sm:$0xff] %vm167_vm0, %v3034_v3 }
  0x73   : > { %304 = vst.msk [vmem:[%s3123_s22 + $0x888] sm:$0xff] %vm167_vm0, %v3034_v3  ;;  %305 = vst.msk [vmem:[%s3123_s22 + $0x898] sm:$0xff] %vm167_vm0, %v3034_v3 }
  0x74   : > { %306 = vst.msk [vmem:[%s3123_s22 + $0x8a8] sm:$0xff] %vm167_vm0, %v3034_v3  ;;  %307 = vst.msk [vmem:[%s3123_s22 + $0x8b8] sm:$0xff] %vm167_vm0, %v3034_v3 }
  0x75   : > { %308 = vst.msk [vmem:[%s3123_s22 + $0x8c8] sm:$0xff] %vm167_vm0, %v3034_v3  ;;  %309 = vst.msk [vmem:[%s3123_s22 + $0x8d8] sm:$0xff] %vm167_vm0, %v3034_v3 }
  0x76   : > { %310 = vst.msk [vmem:[%s3123_s22 + $0x8e8] sm:$0xff] %vm167_vm0, %v3034_v3  ;;  %311 = vst.msk [vmem:[%s3123_s22 + $0x8f8] sm:$0xff] %vm167_vm0, %v3034_v3 }
  0x77   : > { %312 = vst.msk [vmem:[%s3123_s22 + $0x908] sm:$0xff] %vm167_vm0, %v3034_v3  ;;  %313 = vst.msk [vmem:[%s3123_s22 + $0x918] sm:$0xff] %vm167_vm0, %v3034_v3 }
  0x78   : > { %314 = vst.msk [vmem:[%s3123_s22 + $0x928] sm:$0xff] %vm167_vm0, %v3034_v3  ;;  %315 = vst.msk [vmem:[%s3123_s22 + $0x938] sm:$0xff] %vm167_vm0, %v3034_v3 }
  0x79   : > { %316 = vst.msk [vmem:[%s3123_s22 + $0x948] sm:$0xff] %vm167_vm0, %v3034_v3  ;;  %317 = vst.msk [vmem:[%s3123_s22 + $0x958] sm:$0xff] %vm167_vm0, %v3034_v3 }
  0x7a   : > { %318 = vst.msk [vmem:[%s3123_s22 + $0x968] sm:$0xff] %vm167_vm0, %v3034_v3  ;;  %319 = vst.msk [vmem:[%s3123_s22 + $0x978] sm:$0xff] %vm167_vm0, %v3034_v3 }
  0x7b   : > { %320 = vst.msk [vmem:[%s3123_s22 + $0x988] sm:$0xff] %vm167_vm0, %v3034_v3  ;;  %321 = vst.msk [vmem:[%s3123_s22 + $0x998] sm:$0xff] %vm167_vm0, %v3034_v3 }
  0x7c   : > { %322 = vst.msk [vmem:[%s3123_s22 + $0x9a8] sm:$0xff] %vm167_vm0, %v3034_v3  ;;  %323 = vst.msk [vmem:[%s3123_s22 + $0x9b8] sm:$0xff] %vm167_vm0, %v3034_v3 }
  0x7d   : > { %324 = vst.msk [vmem:[%s3123_s22 + $0x9c8] sm:$0xff] %vm167_vm0, %v3034_v3  ;;  %325 = vst.msk [vmem:[%s3123_s22 + $0x9d8] sm:$0xff] %vm167_vm0, %v3034_v3 }
  0x7e   : > { %326 = vst.msk [vmem:[%s3123_s22 + $0x9e8] sm:$0xff] %vm167_vm0, %v3034_v3  ;;  %327 = vst.msk [vmem:[%s3123_s22 + $0x9f8] sm:$0xff] %vm167_vm0, %v3034_v3 }
  0x7f   : > { %328 = vst.msk [vmem:[%s3123_s22 + $0xa08] sm:$0xff] %vm167_vm0, %v3034_v3  ;;  %329 = vst.msk [vmem:[%s3123_s22 + $0xa18] sm:$0xff] %vm167_vm0, %v3034_v3 }
  0x80   : > { %330 = vst.msk [vmem:[%s3123_s22 + $0xa28] sm:$0xff] %vm167_vm0, %v3034_v3  ;;  %331 = vst.msk [vmem:[%s3123_s22 + $0xa38] sm:$0xff] %vm167_vm0, %v3034_v3 }
  0x81   : > { %332 = vst.msk [vmem:[%s3123_s22 + $0xa48] sm:$0xff] %vm167_vm0, %v3034_v3  ;;  %333 = vst.msk [vmem:[%s3123_s22 + $0xa58] sm:$0xff] %vm167_vm0, %v3034_v3 }
  0x82   : > { %334 = vst.msk [vmem:[%s3123_s22 + $0xa68] sm:$0xff] %vm167_vm0, %v3034_v3  ;;  %335 = vst.msk [vmem:[%s3123_s22 + $0xa78] sm:$0xff] %vm167_vm0, %v3034_v3 }
  0x83   : > { %336 = vst.msk [vmem:[%s3123_s22 + $0xa88] sm:$0xff] %vm167_vm0, %v3034_v3  ;;  %337 = vst.msk [vmem:[%s3123_s22 + $0xa98] sm:$0xff] %vm167_vm0, %v3034_v3 }
  0x84   : > { %338 = vst.msk [vmem:[%s3123_s22 + $0xaa8] sm:$0xff] %vm167_vm0, %v3034_v3  ;;  %339 = vst.msk [vmem:[%s3123_s22 + $0xab8] sm:$0xff] %vm167_vm0, %v3034_v3 }
  0x85   : > { %340 = vst.msk [vmem:[%s3123_s22 + $0xac8] sm:$0xff] %vm167_vm0, %v3034_v3  ;;  %341 = vst.msk [vmem:[%s3123_s22 + $0xad8] sm:$0xff] %vm167_vm0, %v3034_v3 }
  0x86   : > { %342 = vst.msk [vmem:[%s3123_s22 + $0xae8] sm:$0xff] %vm167_vm0, %v3034_v3  ;;  %343 = vst.msk [vmem:[%s3123_s22 + $0xaf8] sm:$0xff] %vm167_vm0, %v3034_v3 }
  0x87   : > { %344 = vst.msk [vmem:[%s3123_s22 + $0xb08] sm:$0xff] %vm167_vm0, %v3034_v3  ;;  %345 = vst.msk [vmem:[%s3123_s22 + $0xb18] sm:$0xff] %vm167_vm0, %v3034_v3 }
  0x88   : > { %346 = vst.msk [vmem:[%s3123_s22 + $0xb28] sm:$0xff] %vm167_vm0, %v3034_v3  ;;  %347 = vst.msk [vmem:[%s3123_s22 + $0xb38] sm:$0xff] %vm167_vm0, %v3034_v3 }
  0x89   : > { %348 = vst.msk [vmem:[%s3123_s22 + $0xb48] sm:$0xff] %vm167_vm0, %v3034_v3  ;;  %349 = vst.msk [vmem:[%s3123_s22 + $0xb58] sm:$0xff] %vm167_vm0, %v3034_v3 }
  0x8a   : > { %350 = vst.msk [vmem:[%s3123_s22 + $0xb68] sm:$0xff] %vm167_vm0, %v3034_v3  ;;  %351 = vst.msk [vmem:[%s3123_s22 + $0xb78] sm:$0xff] %vm167_vm0, %v3034_v3 }
  0x8b   : > { %352 = vst.msk [vmem:[%s3123_s22 + $0xb88] sm:$0xff] %vm167_vm0, %v3034_v3  ;;  %353 = vst.msk [vmem:[%s3123_s22 + $0xb98] sm:$0xff] %vm167_vm0, %v3034_v3 }
  0x8c   : > { %354 = vst.msk [vmem:[%s3123_s22 + $0xba8] sm:$0xff] %vm167_vm0, %v3034_v3  ;;  %355 = vst.msk [vmem:[%s3123_s22 + $0xbb8] sm:$0xff] %vm167_vm0, %v3034_v3 }
  0x8d   : > { %356 = vst.msk [vmem:[%s3123_s22 + $0xbc8] sm:$0xff] %vm167_vm0, %v3034_v3  ;;  %357 = vst.msk [vmem:[%s3123_s22 + $0xbd8] sm:$0xff] %vm167_vm0, %v3034_v3 }
  0x8e   : > { %358 = vst.msk [vmem:[%s3123_s22 + $0xbe8] sm:$0xff] %vm167_vm0, %v3034_v3  ;;  %359 = vst.msk [vmem:[%s3123_s22 + $0xbf8] sm:$0xff] %vm167_vm0, %v3034_v3 }
  0x8f   : > { %360 = vst.msk [vmem:[%s3123_s22 + $0xc08] sm:$0xff] %vm167_vm0, %v3034_v3  ;;  %361 = vst.msk [vmem:[%s3123_s22 + $0xc18] sm:$0xff] %vm167_vm0, %v3034_v3 }
  0x90   : > { %362 = vst.msk [vmem:[%s3123_s22 + $0xc28] sm:$0xff] %vm167_vm0, %v3034_v3  ;;  %363 = vst.msk [vmem:[%s3123_s22 + $0xc38] sm:$0xff] %vm167_vm0, %v3034_v3 }
  0x91   : > { %364 = vst.msk [vmem:[%s3123_s22 + $0xc48] sm:$0xff] %vm167_vm0, %v3034_v3  ;;  %365 = vst.msk [vmem:[%s3123_s22 + $0xc58] sm:$0xff] %vm167_vm0, %v3034_v3 }
  0x92   : > { %366 = vst.msk [vmem:[%s3123_s22 + $0xc68] sm:$0xff] %vm167_vm0, %v3034_v3  ;;  %367 = vst.msk [vmem:[%s3123_s22 + $0xc78] sm:$0xff] %vm167_vm0, %v3034_v3 }
  0x93   : > { %368 = vst.msk [vmem:[%s3123_s22 + $0xc88] sm:$0xff] %vm167_vm0, %v3034_v3  ;;  %369 = vst.msk [vmem:[%s3123_s22 + $0xc98] sm:$0xff] %vm167_vm0, %v3034_v3 }
  0x94   : > { %370 = vst.msk [vmem:[%s3123_s22 + $0xca8] sm:$0xff] %vm167_vm0, %v3034_v3  ;;  %371 = vst.msk [vmem:[%s3123_s22 + $0xcb8] sm:$0xff] %vm167_vm0, %v3034_v3 }
  0x95   : > { %372 = vst.msk [vmem:[%s3123_s22 + $0xcc8] sm:$0xff] %vm167_vm0, %v3034_v3  ;;  %373 = vst.msk [vmem:[%s3123_s22 + $0xcd8] sm:$0xff] %vm167_vm0, %v3034_v3 }
  0x96   : > { %374 = vst.msk [vmem:[%s3123_s22 + $0xce8] sm:$0xff] %vm167_vm0, %v3034_v3  ;;  %375 = vst.msk [vmem:[%s3123_s22 + $0xcf8] sm:$0xff] %vm167_vm0, %v3034_v3 }
  0x97   : > { %376 = vst.msk [vmem:[%s3123_s22 + $0xd08] sm:$0xff] %vm167_vm0, %v3034_v3  ;;  %377 = vst.msk [vmem:[%s3123_s22 + $0xd18] sm:$0xff] %vm167_vm0, %v3034_v3 }
  0x98   : > { %378 = vst.msk [vmem:[%s3123_s22 + $0xd28] sm:$0xff] %vm167_vm0, %v3034_v3  ;;  %379 = vst.msk [vmem:[%s3123_s22 + $0xd38] sm:$0xff] %vm167_vm0, %v3034_v3 }
  0x99   : > { %380 = vst.msk [vmem:[%s3123_s22 + $0xd48] sm:$0xff] %vm167_vm0, %v3034_v3  ;;  %381 = vst.msk [vmem:[%s3123_s22 + $0xd58] sm:$0xff] %vm167_vm0, %v3034_v3 }
  0x9a   : > { %382 = vst.msk [vmem:[%s3123_s22 + $0xd68] sm:$0xff] %vm167_vm0, %v3034_v3  ;;  %383 = vst.msk [vmem:[%s3123_s22 + $0xd78] sm:$0xff] %vm167_vm0, %v3034_v3 }
  0x9b   : > { %384 = vst.msk [vmem:[%s3123_s22 + $0xd88] sm:$0xff] %vm167_vm0, %v3034_v3  ;;  %385 = vst.msk [vmem:[%s3123_s22 + $0xd98] sm:$0xff] %vm167_vm0, %v3034_v3 }
  0x9c   : > { %386 = vst.msk [vmem:[%s3123_s22 + $0xda8] sm:$0xff] %vm167_vm0, %v3034_v3  ;;  %387 = vst.msk [vmem:[%s3123_s22 + $0xdb8] sm:$0xff] %vm167_vm0, %v3034_v3 }
  0x9d   : > { %388 = vst.msk [vmem:[%s3123_s22 + $0xdc8] sm:$0xff] %vm167_vm0, %v3034_v3  ;;  %389 = vst.msk [vmem:[%s3123_s22 + $0xdd8] sm:$0xff] %vm167_vm0, %v3034_v3 }
  0x9e   : > { %390 = vst.msk [vmem:[%s3123_s22 + $0xde8] sm:$0xff] %vm167_vm0, %v3034_v3  ;;  %391 = vst.msk [vmem:[%s3123_s22 + $0xdf8] sm:$0xff] %vm167_vm0, %v3034_v3 }
  0x9f   : > { %392 = vst.msk [vmem:[%s3123_s22 + $0xe08] sm:$0xff] %vm167_vm0, %v3034_v3  ;;  %393 = vst.msk [vmem:[%s3123_s22 + $0xe18] sm:$0xff] %vm167_vm0, %v3034_v3 }
  0xa0   : > { %394 = vst.msk [vmem:[%s3123_s22 + $0xe28] sm:$0xff] %vm167_vm0, %v3034_v3  ;;  %395 = vst.msk [vmem:[%s3123_s22 + $0xe38] sm:$0xff] %vm167_vm0, %v3034_v3 }
  0xa1   : > { %396 = vst.msk [vmem:[%s3123_s22 + $0xe48] sm:$0xff] %vm167_vm0, %v3034_v3  ;;  %397 = vst.msk [vmem:[%s3123_s22 + $0xe58] sm:$0xff] %vm167_vm0, %v3034_v3 }
  0xa2   : > { %398 = vst.msk [vmem:[%s3123_s22 + $0xe68] sm:$0xff] %vm167_vm0, %v3034_v3  ;;  %399 = vst.msk [vmem:[%s3123_s22 + $0xe78] sm:$0xff] %vm167_vm0, %v3034_v3 }
  0xa3   : > { %400 = vst.msk [vmem:[%s3123_s22 + $0xe88] sm:$0xff] %vm167_vm0, %v3034_v3  ;;  %401 = vst.msk [vmem:[%s3123_s22 + $0xe98] sm:$0xff] %vm167_vm0, %v3034_v3 }
  0xa4   : > { %402 = vst.msk [vmem:[%s3123_s22 + $0xea8] sm:$0xff] %vm167_vm0, %v3034_v3  ;;  %403 = vst.msk [vmem:[%s3123_s22 + $0xeb8] sm:$0xff] %vm167_vm0, %v3034_v3 }
  0xa5   : > { %404 = vst.msk [vmem:[%s3123_s22 + $0xec8] sm:$0xff] %vm167_vm0, %v3034_v3  ;;  %405 = vst.msk [vmem:[%s3123_s22 + $0xed8] sm:$0xff] %vm167_vm0, %v3034_v3 }
  0xa6   : > { %406 = vst.msk [vmem:[%s3123_s22 + $0xee8] sm:$0xff] %vm167_vm0, %v3034_v3  ;;  %407 = vst.msk [vmem:[%s3123_s22 + $0xef8] sm:$0xff] %vm167_vm0, %v3034_v3 }
  0xa7   : > { %408 = vst.msk [vmem:[%s3123_s22 + $0xf08] sm:$0xff] %vm167_vm0, %v3034_v3  ;;  %409 = vst.msk [vmem:[%s3123_s22 + $0xf18] sm:$0xff] %vm167_vm0, %v3034_v3 }
  0xa8   : > { %410 = vst.msk [vmem:[%s3123_s22 + $0xf28] sm:$0xff] %vm167_vm0, %v3034_v3  ;;  %411 = vst.msk [vmem:[%s3123_s22 + $0xf38] sm:$0xff] %vm167_vm0, %v3034_v3 }
  0xa9   : > { %412 = vst.msk [vmem:[%s3123_s22 + $0xf48] sm:$0xff] %vm167_vm0, %v3034_v3  ;;  %413 = vst.msk [vmem:[%s3123_s22 + $0xf58] sm:$0xff] %vm167_vm0, %v3034_v3 }
  0xaa   : > { %414 = vst.msk [vmem:[%s3123_s22 + $0xf68] sm:$0xff] %vm167_vm0, %v3034_v3  ;;  %415 = vst.msk [vmem:[%s3123_s22 + $0xf78] sm:$0xff] %vm167_vm0, %v3034_v3 }
  0xab   : > { %416 = vst.msk [vmem:[%s3123_s22 + $0xf88] sm:$0xff] %vm167_vm0, %v3034_v3  ;;  %417 = vst.msk [vmem:[%s3123_s22 + $0xf98] sm:$0xff] %vm167_vm0, %v3034_v3 }
  0xac   : > { %418 = vst.msk [vmem:[%s3123_s22 + $0xfa8] sm:$0xff] %vm167_vm0, %v3034_v3  ;;  %419 = vst.msk [vmem:[%s3123_s22 + $0xfb8] sm:$0xff] %vm167_vm0, %v3034_v3 }
  0xad   : > { %420 = vst.msk [vmem:[%s3123_s22 + $0xfc8] sm:$0xff] %vm167_vm0, %v3034_v3  ;;  %421 = vst.msk [vmem:[%s3123_s22 + $0xfd8] sm:$0xff] %vm167_vm0, %v3034_v3 }
  0xae   : > { %422 = vst.msk [vmem:[%s3123_s22 + $0xfe8] sm:$0xff] %vm167_vm0, %v3034_v3  ;;  %423 = vst.msk [vmem:[%s3123_s22 + $0xff8] sm:$0xff] %vm167_vm0, %v3034_v3 }
  0xaf   : > { %424 = vst.msk [vmem:[%s3123_s22 + $0x1008] sm:$0xff] %vm167_vm0, %v3034_v3  ;;  %425 = vst.msk [vmem:[%s3123_s22 + $0x1018] sm:$0xff] %vm167_vm0, %v3034_v3 }
  0xb0   : > { %426 = vst.msk [vmem:[%s3123_s22 + $0x1028] sm:$0xff] %vm167_vm0, %v3034_v3  ;;  %427 = vst.msk [vmem:[%s3123_s22 + $0x1038] sm:$0xff] %vm167_vm0, %v3034_v3 }
  0xb1   : > { %428 = vst.msk [vmem:[%s3123_s22 + $0x1048] sm:$0xff] %vm167_vm0, %v3034_v3  ;;  %429 = vst.msk [vmem:[%s3123_s22 + $0x1058] sm:$0xff] %vm167_vm0, %v3034_v3 }
  0xb2   : > { %430 = vst.msk [vmem:[%s3123_s22 + $0x1068] sm:$0xff] %vm167_vm0, %v3034_v3  ;;  %431 = vst.msk [vmem:[%s3123_s22 + $0x1078] sm:$0xff] %vm167_vm0, %v3034_v3 }
  0xb3   : > { %432 = vst.msk [vmem:[%s3123_s22 + $0x1088] sm:$0xff] %vm167_vm0, %v3034_v3  ;;  %433 = vst.msk [vmem:[%s3123_s22 + $0x1098] sm:$0xff] %vm167_vm0, %v3034_v3 }
  0xb4   : > { %434 = vst.msk [vmem:[%s3123_s22 + $0x10a8] sm:$0xff] %vm167_vm0, %v3034_v3  ;;  %435 = vst.msk [vmem:[%s3123_s22 + $0x10b8] sm:$0xff] %vm167_vm0, %v3034_v3 }
  0xb5   : > { %436 = vst.msk [vmem:[%s3123_s22 + $0x10c8] sm:$0xff] %vm167_vm0, %v3034_v3  ;;  %437 = vst.msk [vmem:[%s3123_s22 + $0x10d8] sm:$0xff] %vm167_vm0, %v3034_v3 }
  0xb6   : > { %438 = vst.msk [vmem:[%s3123_s22 + $0x10e8] sm:$0xff] %vm167_vm0, %v3034_v3  ;;  %439 = vst.msk [vmem:[%s3123_s22 + $0x10f8] sm:$0xff] %vm167_vm0, %v3034_v3 }
  0xb7   : > { %440 = vst.msk [vmem:[%s3123_s22 + $0x1108] sm:$0xff] %vm167_vm0, %v3034_v3  ;;  %441 = vst.msk [vmem:[%s3123_s22 + $0x1118] sm:$0xff] %vm167_vm0, %v3034_v3 }
  0xb8   : > { %442 = vst.msk [vmem:[%s3123_s22 + $0x1128] sm:$0xff] %vm167_vm0, %v3034_v3  ;;  %443 = vst.msk [vmem:[%s3123_s22 + $0x1138] sm:$0xff] %vm167_vm0, %v3034_v3 }
  0xb9   : > { %444 = vst.msk [vmem:[%s3123_s22 + $0x1148] sm:$0xff] %vm167_vm0, %v3034_v3  ;;  %445 = vst.msk [vmem:[%s3123_s22 + $0x1158] sm:$0xff] %vm167_vm0, %v3034_v3 }
  0xba   : > { %446 = vst.msk [vmem:[%s3123_s22 + $0x1168] sm:$0xff] %vm167_vm0, %v3034_v3  ;;  %447 = vst.msk [vmem:[%s3123_s22 + $0x1178] sm:$0xff] %vm167_vm0, %v3034_v3 }
  0xbb   : > { %448 = vst.msk [vmem:[%s3123_s22 + $0x1188] sm:$0xff] %vm167_vm0, %v3034_v3  ;;  %449 = vst.msk [vmem:[%s3123_s22 + $0x1198] sm:$0xff] %vm167_vm0, %v3034_v3 }
  0xbc   : > { %450 = vst.msk [vmem:[%s3123_s22 + $0x11a8] sm:$0xff] %vm167_vm0, %v3034_v3  ;;  %451 = vst.msk [vmem:[%s3123_s22 + $0x11b8] sm:$0xff] %vm167_vm0, %v3034_v3 }
  0xbd   : > { %452 = vst.msk [vmem:[%s3123_s22 + $0x11c8] sm:$0xff] %vm167_vm0, %v3034_v3  ;;  %453 = vst.msk [vmem:[%s3123_s22 + $0x11d8] sm:$0xff] %vm167_vm0, %v3034_v3 }
  0xbe   : > { %454 = vst.msk [vmem:[%s3123_s22 + $0x11e8] sm:$0xff] %vm167_vm0, %v3034_v3  ;;  %455 = vst.msk [vmem:[%s3123_s22 + $0x11f8] sm:$0xff] %vm167_vm0, %v3034_v3 }
  0xbf   : > { %456 = vst.msk [vmem:[%s3123_s22 + $0x1208] sm:$0xff] %vm167_vm0, %v3034_v3  ;;  %457 = vst.msk [vmem:[%s3123_s22 + $0x1218] sm:$0xff] %vm167_vm0, %v3034_v3 }
  0xc0   : > { %458 = vst.msk [vmem:[%s3123_s22 + $0x1228] sm:$0xff] %vm167_vm0, %v3034_v3  ;;  %459 = vst.msk [vmem:[%s3123_s22 + $0x1238] sm:$0xff] %vm167_vm0, %v3034_v3 }
  0xc1   : > { %460 = vst.msk [vmem:[%s3123_s22 + $0x1248] sm:$0xff] %vm167_vm0, %v3034_v3  ;;  %461 = vst.msk [vmem:[%s3123_s22 + $0x1258] sm:$0xff] %vm167_vm0, %v3034_v3 }
  0xc2   : > { %462 = vst.msk [vmem:[%s3123_s22 + $0x1268] sm:$0xff] %vm167_vm0, %v3034_v3  ;;  %463 = vst.msk [vmem:[%s3123_s22 + $0x1278] sm:$0xff] %vm167_vm0, %v3034_v3 }
  0xc3   : > { %464 = vst.msk [vmem:[%s3123_s22 + $0x1288] sm:$0xff] %vm167_vm0, %v3034_v3  ;;  %465 = vst.msk [vmem:[%s3123_s22 + $0x1298] sm:$0xff] %vm167_vm0, %v3034_v3 }
  0xc4   : > { %466 = vst.msk [vmem:[%s3123_s22 + $0x12a8] sm:$0xff] %vm167_vm0, %v3034_v3  ;;  %467 = vst.msk [vmem:[%s3123_s22 + $0x12b8] sm:$0xff] %vm167_vm0, %v3034_v3 }
  0xc5   : > { %468 = vst.msk [vmem:[%s3123_s22 + $0x12c8] sm:$0xff] %vm167_vm0, %v3034_v3  ;;  %469 = vst.msk [vmem:[%s3123_s22 + $0x12d8] sm:$0xff] %vm167_vm0, %v3034_v3 }
  0xc6   : > { %470 = vst.msk [vmem:[%s3123_s22 + $0x12e8] sm:$0xff] %vm167_vm0, %v3034_v3  ;;  %471 = vst.msk [vmem:[%s3123_s22 + $0x12f8] sm:$0xff] %vm167_vm0, %v3034_v3 }
  0xc7   : > { %472 = vst.msk [vmem:[%s3123_s22 + $0x1308] sm:$0xff] %vm167_vm0, %v3034_v3  ;;  %473 = vst.msk [vmem:[%s3123_s22 + $0x1318] sm:$0xff] %vm167_vm0, %v3034_v3 }
  0xc8   : > { %474 = vst.msk [vmem:[%s3123_s22 + $0x1328] sm:$0xff] %vm167_vm0, %v3034_v3  ;;  %475 = vst.msk [vmem:[%s3123_s22 + $0x1338] sm:$0xff] %vm167_vm0, %v3034_v3 }
  0xc9   : > { %476 = vst.msk [vmem:[%s3123_s22 + $0x1348] sm:$0xff] %vm167_vm0, %v3034_v3  ;;  %477 = vst.msk [vmem:[%s3123_s22 + $0x1358] sm:$0xff] %vm167_vm0, %v3034_v3 }
  0xca   : > { %478 = vst.msk [vmem:[%s3123_s22 + $0x1368] sm:$0xff] %vm167_vm0, %v3034_v3  ;;  %479 = vst.msk [vmem:[%s3123_s22 + $0x1378] sm:$0xff] %vm167_vm0, %v3034_v3 }
  0xcb   : > { %480 = vst.msk [vmem:[%s3123_s22 + $0x1388] sm:$0xff] %vm167_vm0, %v3034_v3  ;;  %481 = vst.msk [vmem:[%s3123_s22 + $0x1398] sm:$0xff] %vm167_vm0, %v3034_v3 }
  0xcc   : > { %482 = vst.msk [vmem:[%s3123_s22 + $0x13a8] sm:$0xff] %vm167_vm0, %v3034_v3  ;;  %483 = vst.msk [vmem:[%s3123_s22 + $0x13b8] sm:$0xff] %vm167_vm0, %v3034_v3 }
  0xcd   : > { %484 = vst.msk [vmem:[%s3123_s22 + $0x13c8] sm:$0xff] %vm167_vm0, %v3034_v3  ;;  %485 = vst.msk [vmem:[%s3123_s22 + $0x13d8] sm:$0xff] %vm167_vm0, %v3034_v3 }
  0xce   : > { %486 = vst.msk [vmem:[%s3123_s22 + $0x13e8] sm:$0xff] %vm167_vm0, %v3034_v3  ;;  %487 = vst.msk [vmem:[%s3123_s22 + $0x13f8] sm:$0xff] %vm167_vm0, %v3034_v3 }
  0xcf   : > { %488 = vst.msk [vmem:[%s3123_s22 + $0x1408] sm:$0xff] %vm167_vm0, %v3034_v3  ;;  %489 = vst.msk [vmem:[%s3123_s22 + $0x1418] sm:$0xff] %vm167_vm0, %v3034_v3 }
  0xd0   : > { %490 = vst.msk [vmem:[%s3123_s22 + $0x1428] sm:$0xff] %vm167_vm0, %v3034_v3  ;;  %491 = vst.msk [vmem:[%s3123_s22 + $0x1438] sm:$0xff] %vm167_vm0, %v3034_v3 }
  0xd1   : > { %492 = vst.msk [vmem:[%s3123_s22 + $0x1448] sm:$0xff] %vm167_vm0, %v3034_v3  ;;  %493 = vst.msk [vmem:[%s3123_s22 + $0x1458] sm:$0xff] %vm167_vm0, %v3034_v3 }
  0xd2   : > { %494 = vst.msk [vmem:[%s3123_s22 + $0x1468] sm:$0xff] %vm167_vm0, %v3034_v3  ;;  %495 = vst.msk [vmem:[%s3123_s22 + $0x1478] sm:$0xff] %vm167_vm0, %v3034_v3 }
  0xd3   : > { %496 = vst.msk [vmem:[%s3123_s22 + $0x1488] sm:$0xff] %vm167_vm0, %v3034_v3  ;;  %497 = vst.msk [vmem:[%s3123_s22 + $0x1498] sm:$0xff] %vm167_vm0, %v3034_v3 }
  0xd4   : > { %498 = vst.msk [vmem:[%s3123_s22 + $0x14a8] sm:$0xff] %vm167_vm0, %v3034_v3  ;;  %499 = vst.msk [vmem:[%s3123_s22 + $0x14b8] sm:$0xff] %vm167_vm0, %v3034_v3 }
  0xd5   : > { %500 = vst.msk [vmem:[%s3123_s22 + $0x14c8] sm:$0xff] %vm167_vm0, %v3034_v3  ;;  %501 = vst.msk [vmem:[%s3123_s22 + $0x14d8] sm:$0xff] %vm167_vm0, %v3034_v3 }
  0xd6   : > { %502 = vst.msk [vmem:[%s3123_s22 + $0x14e8] sm:$0xff] %vm167_vm0, %v3034_v3  ;;  %503 = vst.msk [vmem:[%s3123_s22 + $0x14f8] sm:$0xff] %vm167_vm0, %v3034_v3 }
  0xd7   : > { %504 = vst.msk [vmem:[%s3123_s22 + $0x1508] sm:$0xff] %vm167_vm0, %v3034_v3  ;;  %505 = vst.msk [vmem:[%s3123_s22 + $0x1518] sm:$0xff] %vm167_vm0, %v3034_v3 }
  0xd8   : > { %506 = vst.msk [vmem:[%s3123_s22 + $0x1528] sm:$0xff] %vm167_vm0, %v3034_v3  ;;  %507 = vst.msk [vmem:[%s3123_s22 + $0x1538] sm:$0xff] %vm167_vm0, %v3034_v3 }
  0xd9   : > { %508 = vst.msk [vmem:[%s3123_s22 + $0x1548] sm:$0xff] %vm167_vm0, %v3034_v3  ;;  %509 = vst.msk [vmem:[%s3123_s22 + $0x1558] sm:$0xff] %vm167_vm0, %v3034_v3 }
  0xda   : > { %510 = vst.msk [vmem:[%s3123_s22 + $0x1568] sm:$0xff] %vm167_vm0, %v3034_v3  ;;  %511 = vst.msk [vmem:[%s3123_s22 + $0x1578] sm:$0xff] %vm167_vm0, %v3034_v3 }
  0xdb   : > { %512 = vst.msk [vmem:[%s3123_s22 + $0x1588] sm:$0xff] %vm167_vm0, %v3034_v3  ;;  %513 = vst.msk [vmem:[%s3123_s22 + $0x1598] sm:$0xff] %vm167_vm0, %v3034_v3 }
  0xdc   : > { %514 = vst.msk [vmem:[%s3123_s22 + $0x15a8] sm:$0xff] %vm167_vm0, %v3034_v3  ;;  %515 = vst.msk [vmem:[%s3123_s22 + $0x15b8] sm:$0xff] %vm167_vm0, %v3034_v3 }
  0xdd   : > { %516 = vst.msk [vmem:[%s3123_s22 + $0x15c8] sm:$0xff] %vm167_vm0, %v3034_v3  ;;  %517 = vst.msk [vmem:[%s3123_s22 + $0x15d8] sm:$0xff] %vm167_vm0, %v3034_v3 }
  0xde   : > { %518 = vst.msk [vmem:[%s3123_s22 + $0x15e8] sm:$0xff] %vm167_vm0, %v3034_v3  ;;  %519 = vst.msk [vmem:[%s3123_s22 + $0x15f8] sm:$0xff] %vm167_vm0, %v3034_v3 }
  0xdf   : > { %520 = vst.msk [vmem:[%s3123_s22 + $0x1608] sm:$0xff] %vm167_vm0, %v3034_v3  ;;  %521 = vst.msk [vmem:[%s3123_s22 + $0x1618] sm:$0xff] %vm167_vm0, %v3034_v3 }
  0xe0   : > { %522 = vst.msk [vmem:[%s3123_s22 + $0x1628] sm:$0xff] %vm167_vm0, %v3034_v3  ;;  %523 = vst.msk [vmem:[%s3123_s22 + $0x1638] sm:$0xff] %vm167_vm0, %v3034_v3 }
  0xe1   : > { %524 = vst.msk [vmem:[%s3123_s22 + $0x1648] sm:$0xff] %vm167_vm0, %v3034_v3  ;;  %525 = vst.msk [vmem:[%s3123_s22 + $0x1658] sm:$0xff] %vm167_vm0, %v3034_v3 }
  0xe2   : > { %526 = vst.msk [vmem:[%s3123_s22 + $0x1668] sm:$0xff] %vm167_vm0, %v3034_v3  ;;  %527 = vst.msk [vmem:[%s3123_s22 + $0x1678] sm:$0xff] %vm167_vm0, %v3034_v3 }
  0xe3   : > { %528 = vst.msk [vmem:[%s3123_s22 + $0x1688] sm:$0xff] %vm167_vm0, %v3034_v3  ;;  %529 = vst.msk [vmem:[%s3123_s22 + $0x1698] sm:$0xff] %vm167_vm0, %v3034_v3 }
  0xe4   : > { %530 = vst.msk [vmem:[%s3123_s22 + $0x16a8] sm:$0xff] %vm167_vm0, %v3034_v3  ;;  %531 = vst.msk [vmem:[%s3123_s22 + $0x16b8] sm:$0xff] %vm167_vm0, %v3034_v3 }
  0xe5   : > { %532 = vst.msk [vmem:[%s3123_s22 + $0x16c8] sm:$0xff] %vm167_vm0, %v3034_v3  ;;  %533 = vst.msk [vmem:[%s3123_s22 + $0x16d8] sm:$0xff] %vm167_vm0, %v3034_v3 }
  0xe6   : > { %534 = vst.msk [vmem:[%s3123_s22 + $0x16e8] sm:$0xff] %vm167_vm0, %v3034_v3  ;;  %535 = vst.msk [vmem:[%s3123_s22 + $0x16f8] sm:$0xff] %vm167_vm0, %v3034_v3 }
  0xe7   : > { %536 = vst.msk [vmem:[%s3123_s22 + $0x1708] sm:$0xff] %vm167_vm0, %v3034_v3  ;;  %537 = vst.msk [vmem:[%s3123_s22 + $0x1718] sm:$0xff] %vm167_vm0, %v3034_v3 }
  0xe8   : > { %538 = vst.msk [vmem:[%s3123_s22 + $0x1728] sm:$0xff] %vm167_vm0, %v3034_v3  ;;  %539 = vst.msk [vmem:[%s3123_s22 + $0x1738] sm:$0xff] %vm167_vm0, %v3034_v3 }
  0xe9   : > { %540 = vst.msk [vmem:[%s3123_s22 + $0x1748] sm:$0xff] %vm167_vm0, %v3034_v3  ;;  %541 = vst.msk [vmem:[%s3123_s22 + $0x1758] sm:$0xff] %vm167_vm0, %v3034_v3 }
  0xea   : > { %542 = vst.msk [vmem:[%s3123_s22 + $0x1768] sm:$0xff] %vm167_vm0, %v3034_v3  ;;  %543 = vst.msk [vmem:[%s3123_s22 + $0x1778] sm:$0xff] %vm167_vm0, %v3034_v3 }
  0xeb   : > { %544 = vst.msk [vmem:[%s3123_s22 + $0x1788] sm:$0xff] %vm167_vm0, %v3034_v3  ;;  %545 = vst.msk [vmem:[%s3123_s22 + $0x1798] sm:$0xff] %vm167_vm0, %v3034_v3 }
  0xec   : > { %546 = vst.msk [vmem:[%s3123_s22 + $0x17a8] sm:$0xff] %vm167_vm0, %v3034_v3  ;;  %547 = vst.msk [vmem:[%s3123_s22 + $0x17b8] sm:$0xff] %vm167_vm0, %v3034_v3 }
  0xed   : > { %548 = vst.msk [vmem:[%s3123_s22 + $0x17c8] sm:$0xff] %vm167_vm0, %v3034_v3  ;;  %549 = vst.msk [vmem:[%s3123_s22 + $0x17d8] sm:$0xff] %vm167_vm0, %v3034_v3 }
  0xee   : > { %550 = vst.msk [vmem:[%s3123_s22 + $0x17e8] sm:$0xff] %vm167_vm0, %v3034_v3  ;;  %551 = vst.msk [vmem:[%s3123_s22 + $0x17f8] sm:$0xff] %vm167_vm0, %v3034_v3 }
  0xef   : > { %552 = vst.msk [vmem:[%s3123_s22 + $0x1808] sm:$0xff] %vm167_vm0, %v3034_v3  ;;  %553 = vst.msk [vmem:[%s3123_s22 + $0x1818] sm:$0xff] %vm167_vm0, %v3034_v3 }
  0xf0   : > { %554 = vst.msk [vmem:[%s3123_s22 + $0x1828] sm:$0xff] %vm167_vm0, %v3034_v3  ;;  %555 = vst.msk [vmem:[%s3123_s22 + $0x1838] sm:$0xff] %vm167_vm0, %v3034_v3 }
  0xf1   : > { %556 = vst.msk [vmem:[%s3123_s22 + $0x1848] sm:$0xff] %vm167_vm0, %v3034_v3  ;;  %557 = vst.msk [vmem:[%s3123_s22 + $0x1858] sm:$0xff] %vm167_vm0, %v3034_v3 }
  0xf2   : > { %558 = vst.msk [vmem:[%s3123_s22 + $0x1868] sm:$0xff] %vm167_vm0, %v3034_v3  ;;  %559 = vst.msk [vmem:[%s3123_s22 + $0x1878] sm:$0xff] %vm167_vm0, %v3034_v3 }
  0xf3   : > { %560 = vst.msk [vmem:[%s3123_s22 + $0x1888] sm:$0xff] %vm167_vm0, %v3034_v3  ;;  %561 = vst.msk [vmem:[%s3123_s22 + $0x1898] sm:$0xff] %vm167_vm0, %v3034_v3 }
  0xf4   : > { %562 = vst.msk [vmem:[%s3123_s22 + $0x18a8] sm:$0xff] %vm167_vm0, %v3034_v3  ;;  %563 = vst.msk [vmem:[%s3123_s22 + $0x18b8] sm:$0xff] %vm167_vm0, %v3034_v3 }
  0xf5   : > { %564 = vst.msk [vmem:[%s3123_s22 + $0x18c8] sm:$0xff] %vm167_vm0, %v3034_v3  ;;  %565 = vst.msk [vmem:[%s3123_s22 + $0x18d8] sm:$0xff] %vm167_vm0, %v3034_v3 }
  0xf6   : > { %566 = vst.msk [vmem:[%s3123_s22 + $0x18e8] sm:$0xff] %vm167_vm0, %v3034_v3  ;;  %567 = vst.msk [vmem:[%s3123_s22 + $0x18f8] sm:$0xff] %vm167_vm0, %v3034_v3 }
  0xf7   : > { %568 = vst.msk [vmem:[%s3123_s22 + $0x1908] sm:$0xff] %vm167_vm0, %v3034_v3  ;;  %569 = vst.msk [vmem:[%s3123_s22 + $0x1918] sm:$0xff] %vm167_vm0, %v3034_v3 }
  0xf8   : > { %570 = vst.msk [vmem:[%s3123_s22 + $0x1928] sm:$0xff] %vm167_vm0, %v3034_v3  ;;  %571 = vst.msk [vmem:[%s3123_s22 + $0x1938] sm:$0xff] %vm167_vm0, %v3034_v3 }
  0xf9   : > { %572 = vst.msk [vmem:[%s3123_s22 + $0x1948] sm:$0xff] %vm167_vm0, %v3034_v3  ;;  %573 = vst.msk [vmem:[%s3123_s22 + $0x1958] sm:$0xff] %vm167_vm0, %v3034_v3 }
  0xfa   : > { %574 = vst.msk [vmem:[%s3123_s22 + $0x1968] sm:$0xff] %vm167_vm0, %v3034_v3  ;;  %575 = vst.msk [vmem:[%s3123_s22 + $0x1978] sm:$0xff] %vm167_vm0, %v3034_v3 }
  0xfb   : > { %576 = vst.msk [vmem:[%s3123_s22 + $0x1988] sm:$0xff] %vm167_vm0, %v3034_v3  ;;  %577 = vst.msk [vmem:[%s3123_s22 + $0x1998] sm:$0xff] %vm167_vm0, %v3034_v3 }
  0xfc   : > { %578 = vst.msk [vmem:[%s3123_s22 + $0x19a8] sm:$0xff] %vm167_vm0, %v3034_v3  ;;  %579 = vst.msk [vmem:[%s3123_s22 + $0x19b8] sm:$0xff] %vm167_vm0, %v3034_v3 }
  0xfd   : > { %580 = vst.msk [vmem:[%s3123_s22 + $0x19c8] sm:$0xff] %vm167_vm0, %v3034_v3  ;;  %581 = vst.msk [vmem:[%s3123_s22 + $0x19d8] sm:$0xff] %vm167_vm0, %v3034_v3 }
  0xfe   : > { %582 = vst.msk [vmem:[%s3123_s22 + $0x19e8] sm:$0xff] %vm167_vm0, %v3034_v3  ;;  %583 = vst.msk [vmem:[%s3123_s22 + $0x19f8] sm:$0xff] %vm167_vm0, %v3034_v3 }
  0xff   : > { %584 = vst.msk [vmem:[%s3123_s22 + $0x1a08] sm:$0xff] %vm167_vm0, %v3034_v3  ;;  %585 = vst.msk [vmem:[%s3123_s22 + $0x1a18] sm:$0xff] %vm167_vm0, %v3034_v3 }
 0x100   : > { %586 = vst.msk [vmem:[%s3123_s22 + $0x1a28] sm:$0xff] %vm167_vm0, %v3034_v3  ;;  %587 = vst.msk [vmem:[%s3123_s22 + $0x1a38] sm:$0xff] %vm167_vm0, %v3034_v3 }
 0x101   : > { %588 = vst.msk [vmem:[%s3123_s22 + $0x1a48] sm:$0xff] %vm167_vm0, %v3034_v3  ;;  %589 = vst.msk [vmem:[%s3123_s22 + $0x1a58] sm:$0xff] %vm167_vm0, %v3034_v3 }
 0x102   : > { %590 = vst.msk [vmem:[%s3123_s22 + $0x1a68] sm:$0xff] %vm167_vm0, %v3034_v3  ;;  %591 = vst.msk [vmem:[%s3123_s22 + $0x1a78] sm:$0xff] %vm167_vm0, %v3034_v3 }
 0x103   : > { %592 = vst.msk [vmem:[%s3123_s22 + $0x1a88] sm:$0xff] %vm167_vm0, %v3034_v3  ;;  %593 = vst.msk [vmem:[%s3123_s22 + $0x1a98] sm:$0xff] %vm167_vm0, %v3034_v3 }
 0x104   : > { %594 = vst.msk [vmem:[%s3123_s22 + $0x1aa8] sm:$0xff] %vm167_vm0, %v3034_v3  ;;  %595 = vst.msk [vmem:[%s3123_s22 + $0x1ab8] sm:$0xff] %vm167_vm0, %v3034_v3 }
 0x105   : > { %596 = vst.msk [vmem:[%s3123_s22 + $0x1ac8] sm:$0xff] %vm167_vm0, %v3034_v3  ;;  %597 = vst.msk [vmem:[%s3123_s22 + $0x1ad8] sm:$0xff] %vm167_vm0, %v3034_v3 }
 0x106   : > { %598 = vst.msk [vmem:[%s3123_s22 + $0x1ae8] sm:$0xff] %vm167_vm0, %v3034_v3  ;;  %599 = vst.msk [vmem:[%s3123_s22 + $0x1af8] sm:$0xff] %vm167_vm0, %v3034_v3 }
 0x107   : > { %600 = vst.msk [vmem:[%s3123_s22 + $0x1b08] sm:$0xff] %vm167_vm0, %v3034_v3  ;;  %601 = vst.msk [vmem:[%s3123_s22 + $0x1b18] sm:$0xff] %vm167_vm0, %v3034_v3 }
 0x108   : > { %602 = vst.msk [vmem:[%s3123_s22 + $0x1b28] sm:$0xff] %vm167_vm0, %v3034_v3  ;;  %603 = vst.msk [vmem:[%s3123_s22 + $0x1b38] sm:$0xff] %vm167_vm0, %v3034_v3 }
 0x109   : > { %604 = vst.msk [vmem:[%s3123_s22 + $0x1b48] sm:$0xff] %vm167_vm0, %v3034_v3  ;;  %605 = vst.msk [vmem:[%s3123_s22 + $0x1b58] sm:$0xff] %vm167_vm0, %v3034_v3 }
 0x10a   : > { %606 = vst.msk [vmem:[%s3123_s22 + $0x1b68] sm:$0xff] %vm167_vm0, %v3034_v3  ;;  %607 = vst.msk [vmem:[%s3123_s22 + $0x1b78] sm:$0xff] %vm167_vm0, %v3034_v3 }
 0x10b   : > { %608 = vst.msk [vmem:[%s3123_s22 + $0x1b88] sm:$0xff] %vm167_vm0, %v3034_v3  ;;  %609 = vst.msk [vmem:[%s3123_s22 + $0x1b98] sm:$0xff] %vm167_vm0, %v3034_v3 }
 0x10c   : > { %610 = vst.msk [vmem:[%s3123_s22 + $0x1ba8] sm:$0xff] %vm167_vm0, %v3034_v3  ;;  %611 = vst.msk [vmem:[%s3123_s22 + $0x1bb8] sm:$0xff] %vm167_vm0, %v3034_v3 }
 0x10d   : > { %612 = vst.msk [vmem:[%s3123_s22 + $0x1bc8] sm:$0xff] %vm167_vm0, %v3034_v3  ;;  %613 = vst.msk [vmem:[%s3123_s22 + $0x1bd8] sm:$0xff] %vm167_vm0, %v3034_v3 }
 0x10e   : > { %614 = vst.msk [vmem:[%s3123_s22 + $0x1be8] sm:$0xff] %vm167_vm0, %v3034_v3  ;;  %615 = vst.msk [vmem:[%s3123_s22 + $0x1bf8] sm:$0xff] %vm167_vm0, %v3034_v3 }
 0x10f   : > { %616 = vst.msk [vmem:[%s3123_s22 + $0x1c08] sm:$0xff] %vm167_vm0, %v3034_v3  ;;  %617 = vst.msk [vmem:[%s3123_s22 + $0x1c18] sm:$0xff] %vm167_vm0, %v3034_v3 }
 0x110   : > { %618 = vst.msk [vmem:[%s3123_s22 + $0x1c28] sm:$0xff] %vm167_vm0, %v3034_v3  ;;  %619 = vst.msk [vmem:[%s3123_s22 + $0x1c38] sm:$0xff] %vm167_vm0, %v3034_v3 }
 0x111   : > { %620 = vst.msk [vmem:[%s3123_s22 + $0x1c48] sm:$0xff] %vm167_vm0, %v3034_v3  ;;  %621 = vst.msk [vmem:[%s3123_s22 + $0x1c58] sm:$0xff] %vm167_vm0, %v3034_v3 }
 0x112   : > { %622 = vst.msk [vmem:[%s3123_s22 + $0x1c68] sm:$0xff] %vm167_vm0, %v3034_v3  ;;  %623 = vst.msk [vmem:[%s3123_s22 + $0x1c78] sm:$0xff] %vm167_vm0, %v3034_v3 }
 0x113   : > { %624 = vst.msk [vmem:[%s3123_s22 + $0x1c88] sm:$0xff] %vm167_vm0, %v3034_v3  ;;  %625 = vst.msk [vmem:[%s3123_s22 + $0x1c98] sm:$0xff] %vm167_vm0, %v3034_v3 }
 0x114   : > { %626 = vst.msk [vmem:[%s3123_s22 + $0x1ca8] sm:$0xff] %vm167_vm0, %v3034_v3  ;;  %627 = vst.msk [vmem:[%s3123_s22 + $0x1cb8] sm:$0xff] %vm167_vm0, %v3034_v3 }
 0x115   : > { %628 = vst.msk [vmem:[%s3123_s22 + $0x1cc8] sm:$0xff] %vm167_vm0, %v3034_v3  ;;  %629 = vst.msk [vmem:[%s3123_s22 + $0x1cd8] sm:$0xff] %vm167_vm0, %v3034_v3 }
 0x116   : > { %630 = vst.msk [vmem:[%s3123_s22 + $0x1ce8] sm:$0xff] %vm167_vm0, %v3034_v3  ;;  %631 = vst.msk [vmem:[%s3123_s22 + $0x1cf8] sm:$0xff] %vm167_vm0, %v3034_v3 }
 0x117   : > { %632 = vst.msk [vmem:[%s3123_s22 + $0x1d08] sm:$0xff] %vm167_vm0, %v3034_v3  ;;  %633 = vst.msk [vmem:[%s3123_s22 + $0x1d18] sm:$0xff] %vm167_vm0, %v3034_v3 }
 0x118   : > { %634 = vst.msk [vmem:[%s3123_s22 + $0x1d28] sm:$0xff] %vm167_vm0, %v3034_v3  ;;  %635 = vst.msk [vmem:[%s3123_s22 + $0x1d38] sm:$0xff] %vm167_vm0, %v3034_v3 }
 0x119   : > { %636 = vst.msk [vmem:[%s3123_s22 + $0x1d48] sm:$0xff] %vm167_vm0, %v3034_v3  ;;  %637 = vst.msk [vmem:[%s3123_s22 + $0x1d58] sm:$0xff] %vm167_vm0, %v3034_v3 }
 0x11a   : > { %638 = vst.msk [vmem:[%s3123_s22 + $0x1d68] sm:$0xff] %vm167_vm0, %v3034_v3  ;;  %639 = vst.msk [vmem:[%s3123_s22 + $0x1d78] sm:$0xff] %vm167_vm0, %v3034_v3 }
 0x11b   : > { %640 = vst.msk [vmem:[%s3123_s22 + $0x1d88] sm:$0xff] %vm167_vm0, %v3034_v3  ;;  %641 = vst.msk [vmem:[%s3123_s22 + $0x1d98] sm:$0xff] %vm167_vm0, %v3034_v3 }
 0x11c   : > { %642 = vst.msk [vmem:[%s3123_s22 + $0x1da8] sm:$0xff] %vm167_vm0, %v3034_v3  ;;  %643 = vst.msk [vmem:[%s3123_s22 + $0x1db8] sm:$0xff] %vm167_vm0, %v3034_v3 }
 0x11d   : > { %644 = vst.msk [vmem:[%s3123_s22 + $0x1dc8] sm:$0xff] %vm167_vm0, %v3034_v3  ;;  %645 = vst.msk [vmem:[%s3123_s22 + $0x1dd8] sm:$0xff] %vm167_vm0, %v3034_v3 }
 0x11e   : > { %646 = vst.msk [vmem:[%s3123_s22 + $0x1de8] sm:$0xff] %vm167_vm0, %v3034_v3  ;;  %647 = vst.msk [vmem:[%s3123_s22 + $0x1df8] sm:$0xff] %vm167_vm0, %v3034_v3 }
 0x11f   : > { %648 = vst.msk [vmem:[%s3123_s22 + $0x1e08] sm:$0xff] %vm167_vm0, %v3034_v3  ;;  %649 = vst.msk [vmem:[%s3123_s22 + $0x1e18] sm:$0xff] %vm167_vm0, %v3034_v3 }
 0x120   : > { %650 = vst.msk [vmem:[%s3123_s22 + $0x1e28] sm:$0xff] %vm167_vm0, %v3034_v3  ;;  %651 = vst.msk [vmem:[%s3123_s22 + $0x1e38] sm:$0xff] %vm167_vm0, %v3034_v3 }
 0x121   : > { %652 = vst.msk [vmem:[%s3123_s22 + $0x1e48] sm:$0xff] %vm167_vm0, %v3034_v3  ;;  %653 = vst.msk [vmem:[%s3123_s22 + $0x1e58] sm:$0xff] %vm167_vm0, %v3034_v3 }
 0x122   : > { %654 = vst.msk [vmem:[%s3123_s22 + $0x1e68] sm:$0xff] %vm167_vm0, %v3034_v3  ;;  %655 = vst.msk [vmem:[%s3123_s22 + $0x1e78] sm:$0xff] %vm167_vm0, %v3034_v3 }
 0x123   : > { %656 = vst.msk [vmem:[%s3123_s22 + $0x1e88] sm:$0xff] %vm167_vm0, %v3034_v3  ;;  %657 = vst.msk [vmem:[%s3123_s22 + $0x1e98] sm:$0xff] %vm167_vm0, %v3034_v3 }
 0x124   : > { %658 = vst.msk [vmem:[%s3123_s22 + $0x1ea8] sm:$0xff] %vm167_vm0, %v3034_v3  ;;  %659 = vst.msk [vmem:[%s3123_s22 + $0x1eb8] sm:$0xff] %vm167_vm0, %v3034_v3 }
 0x125   : > { %660 = vst.msk [vmem:[%s3123_s22 + $0x1ec8] sm:$0xff] %vm167_vm0, %v3034_v3  ;;  %661 = vst.msk [vmem:[%s3123_s22 + $0x1ed8] sm:$0xff] %vm167_vm0, %v3034_v3 }
 0x126   : > { %662 = vst.msk [vmem:[%s3123_s22 + $0x1ee8] sm:$0xff] %vm167_vm0, %v3034_v3  ;;  %663 = vst.msk [vmem:[%s3123_s22 + $0x1ef8] sm:$0xff] %vm167_vm0, %v3034_v3 }
 0x127   : > { %664 = vst.msk [vmem:[%s3123_s22 + $0x1f08] sm:$0xff] %vm167_vm0, %v3034_v3  ;;  %665 = vst.msk [vmem:[%s3123_s22 + $0x1f18] sm:$0xff] %vm167_vm0, %v3034_v3 }
 0x128   : > { %666 = vst.msk [vmem:[%s3123_s22 + $0x1f28] sm:$0xff] %vm167_vm0, %v3034_v3  ;;  %667 = vst.msk [vmem:[%s3123_s22 + $0x1f38] sm:$0xff] %vm167_vm0, %v3034_v3 }
 0x129   : > { %668 = vst.msk [vmem:[%s3123_s22 + $0x1f48] sm:$0xff] %vm167_vm0, %v3034_v3  ;;  %669 = vst.msk [vmem:[%s3123_s22 + $0x1f58] sm:$0xff] %vm167_vm0, %v3034_v3 }
 0x12a   : > { %670 = vst.msk [vmem:[%s3123_s22 + $0x1f68] sm:$0xff] %vm167_vm0, %v3034_v3  ;;  %671 = vst.msk [vmem:[%s3123_s22 + $0x1f78] sm:$0xff] %vm167_vm0, %v3034_v3 }
 0x12b   : > { %672 = vst.msk [vmem:[%s3123_s22 + $0x1f88] sm:$0xff] %vm167_vm0, %v3034_v3  ;;  %673 = vst.msk [vmem:[%s3123_s22 + $0x1f98] sm:$0xff] %vm167_vm0, %v3034_v3 }
 0x12c   : > { %674 = vst.msk [vmem:[%s3123_s22 + $0x1fa8] sm:$0xff] %vm167_vm0, %v3034_v3  ;;  %675 = vst.msk [vmem:[%s3123_s22 + $0x1fb8] sm:$0xff] %vm167_vm0, %v3034_v3 }
 0x12d   : > { %676 = vst.msk [vmem:[%s3123_s22 + $0x1fc8] sm:$0xff] %vm167_vm0, %v3034_v3  ;;  %677 = vst.msk [vmem:[%s3123_s22 + $0x1fd8] sm:$0xff] %vm167_vm0, %v3034_v3 }
 0x12e   : > { %678 = vst.msk [vmem:[%s3123_s22 + $0x1fe8] sm:$0xff] %vm167_vm0, %v3034_v3  ;;  %679 = vst.msk [vmem:[%s3123_s22 + $0x1ff8] sm:$0xff] %vm167_vm0, %v3034_v3 }
 0x12f   : > { %680 = vst.msk [vmem:[%s3123_s22 + $0x2008] sm:$0xff] %vm167_vm0, %v3034_v3  ;;  %681 = vst.msk [vmem:[%s3123_s22 + $0x2018] sm:$0xff] %vm167_vm0, %v3034_v3 }
 0x130   : > { %682 = vst.msk [vmem:[%s3123_s22 + $0x2028] sm:$0xff] %vm167_vm0, %v3034_v3  ;;  %683 = vst.msk [vmem:[%s3123_s22 + $0x2038] sm:$0xff] %vm167_vm0, %v3034_v3 }
 0x131   : > { %684 = vst.msk [vmem:[%s3123_s22 + $0x2048] sm:$0xff] %vm167_vm0, %v3034_v3  ;;  %685 = vst.msk [vmem:[%s3123_s22 + $0x2058] sm:$0xff] %vm167_vm0, %v3034_v3 }
 0x132   : > { %686 = vst.msk [vmem:[%s3123_s22 + $0x2068] sm:$0xff] %vm167_vm0, %v3034_v3  ;;  %687 = vst.msk [vmem:[%s3123_s22 + $0x2078] sm:$0xff] %vm167_vm0, %v3034_v3 }
 0x133   : > { %688 = vst.msk [vmem:[%s3123_s22 + $0x2088] sm:$0xff] %vm167_vm0, %v3034_v3  ;;  %689 = vst.msk [vmem:[%s3123_s22 + $0x2098] sm:$0xff] %vm167_vm0, %v3034_v3 }
 0x134   : > { %690 = vst.msk [vmem:[%s3123_s22 + $0x20a8] sm:$0xff] %vm167_vm0, %v3034_v3  ;;  %691 = vst.msk [vmem:[%s3123_s22 + $0x20b8] sm:$0xff] %vm167_vm0, %v3034_v3 }
 0x135   : > { %692 = vst.msk [vmem:[%s3123_s22 + $0x20c8] sm:$0xff] %vm167_vm0, %v3034_v3  ;;  %693 = vst.msk [vmem:[%s3123_s22 + $0x20d8] sm:$0xff] %vm167_vm0, %v3034_v3 }
 0x136   : > { %694 = vst.msk [vmem:[%s3123_s22 + $0x20e8] sm:$0xff] %vm167_vm0, %v3034_v3  ;;  %695 = vst.msk [vmem:[%s3123_s22 + $0x20f8] sm:$0xff] %vm167_vm0, %v3034_v3 }
 0x137   : > { %696 = vst.msk [vmem:[%s3123_s22 + $0x2108] sm:$0xff] %vm167_vm0, %v3034_v3  ;;  %697 = vst.msk [vmem:[%s3123_s22 + $0x2118] sm:$0xff] %vm167_vm0, %v3034_v3 }
 0x138   : > { %698 = vst.msk [vmem:[%s3123_s22 + $0x2128] sm:$0xff] %vm167_vm0, %v3034_v3  ;;  %699 = vst.msk [vmem:[%s3123_s22 + $0x2138] sm:$0xff] %vm167_vm0, %v3034_v3 }
 0x139   : > { %700 = vst.msk [vmem:[%s3123_s22 + $0x2148] sm:$0xff] %vm167_vm0, %v3034_v3  ;;  %701 = vst.msk [vmem:[%s3123_s22 + $0x2158] sm:$0xff] %vm167_vm0, %v3034_v3 }
 0x13a   : > { %702 = vst.msk [vmem:[%s3123_s22 + $0x2168] sm:$0xff] %vm167_vm0, %v3034_v3  ;;  %703 = vst.msk [vmem:[%s3123_s22 + $0x2178] sm:$0xff] %vm167_vm0, %v3034_v3 }
 0x13b   : > { %704 = vst.msk [vmem:[%s3123_s22 + $0x2188] sm:$0xff] %vm167_vm0, %v3034_v3  ;;  %705 = vst.msk [vmem:[%s3123_s22 + $0x2198] sm:$0xff] %vm167_vm0, %v3034_v3 }
 0x13c   : > { %706 = vst.msk [vmem:[%s3123_s22 + $0x21a8] sm:$0xff] %vm167_vm0, %v3034_v3  ;;  %707 = vst.msk [vmem:[%s3123_s22 + $0x21b8] sm:$0xff] %vm167_vm0, %v3034_v3 }
 0x13d   : > { %708 = vst.msk [vmem:[%s3123_s22 + $0x21c8] sm:$0xff] %vm167_vm0, %v3034_v3  ;;  %709 = vst.msk [vmem:[%s3123_s22 + $0x21d8] sm:$0xff] %vm167_vm0, %v3034_v3 }
 0x13e   : > { %710 = vst.msk [vmem:[%s3123_s22 + $0x21e8] sm:$0xff] %vm167_vm0, %v3034_v3  ;;  %711 = vst.msk [vmem:[%s3123_s22 + $0x21f8] sm:$0xff] %vm167_vm0, %v3034_v3 }
 0x13f   : > { %712 = vst.msk [vmem:[%s3123_s22 + $0x2208] sm:$0xff] %vm167_vm0, %v3034_v3  ;;  %713 = vst.msk [vmem:[%s3123_s22 + $0x2218] sm:$0xff] %vm167_vm0, %v3034_v3 }
 0x140   : > { %714 = vst.msk [vmem:[%s3123_s22 + $0x2228] sm:$0xff] %vm167_vm0, %v3034_v3  ;;  %715 = vst.msk [vmem:[%s3123_s22 + $0x2238] sm:$0xff] %vm167_vm0, %v3034_v3 }
 0x141   : > { %716 = vst.msk [vmem:[%s3123_s22 + $0x2248] sm:$0xff] %vm167_vm0, %v3034_v3  ;;  %717 = vst.msk [vmem:[%s3123_s22 + $0x2258] sm:$0xff] %vm167_vm0, %v3034_v3 }
 0x142   : > { %718 = vst.msk [vmem:[%s3123_s22 + $0x2268] sm:$0xff] %vm167_vm0, %v3034_v3  ;;  %719 = vst.msk [vmem:[%s3123_s22 + $0x2278] sm:$0xff] %vm167_vm0, %v3034_v3 }
 0x143   : > { %720 = vst.msk [vmem:[%s3123_s22 + $0x2288] sm:$0xff] %vm167_vm0, %v3034_v3  ;;  %721 = vst.msk [vmem:[%s3123_s22 + $0x2298] sm:$0xff] %vm167_vm0, %v3034_v3 }
 0x144   : > { %722 = vst.msk [vmem:[%s3123_s22 + $0x22a8] sm:$0xff] %vm167_vm0, %v3034_v3  ;;  %723 = vst.msk [vmem:[%s3123_s22 + $0x22b8] sm:$0xff] %vm167_vm0, %v3034_v3 }
 0x145   : > { %724 = vst.msk [vmem:[%s3123_s22 + $0x22c8] sm:$0xff] %vm167_vm0, %v3034_v3  ;;  %725 = vst.msk [vmem:[%s3123_s22 + $0x22d8] sm:$0xff] %vm167_vm0, %v3034_v3 }
 0x146   : > { %726 = vst.msk [vmem:[%s3123_s22 + $0x22e8] sm:$0xff] %vm167_vm0, %v3034_v3  ;;  %727 = vst.msk [vmem:[%s3123_s22 + $0x22f8] sm:$0xff] %vm167_vm0, %v3034_v3 }
 0x147   : > { %728 = vst.msk [vmem:[%s3123_s22 + $0x2308] sm:$0xff] %vm167_vm0, %v3034_v3  ;;  %729 = vst.msk [vmem:[%s3123_s22 + $0x2318] sm:$0xff] %vm167_vm0, %v3034_v3 }
 0x148   : > { %730 = vst.msk [vmem:[%s3123_s22 + $0x2328] sm:$0xff] %vm167_vm0, %v3034_v3  ;;  %731 = vst.msk [vmem:[%s3123_s22 + $0x2338] sm:$0xff] %vm167_vm0, %v3034_v3 }
 0x149   : > { %732 = vst.msk [vmem:[%s3123_s22 + $0x2348] sm:$0xff] %vm167_vm0, %v3034_v3  ;;  %733 = vst.msk [vmem:[%s3123_s22 + $0x2358] sm:$0xff] %vm167_vm0, %v3034_v3 }
 0x14a   : > { %734 = vst.msk [vmem:[%s3123_s22 + $0x2368] sm:$0xff] %vm167_vm0, %v3034_v3  ;;  %735 = vst.msk [vmem:[%s3123_s22 + $0x2378] sm:$0xff] %vm167_vm0, %v3034_v3 }
 0x14b   : > { %736 = vst.msk [vmem:[%s3123_s22 + $0x2388] sm:$0xff] %vm167_vm0, %v3034_v3  ;;  %737 = vst.msk [vmem:[%s3123_s22 + $0x2398] sm:$0xff] %vm167_vm0, %v3034_v3 }
 0x14c   : > { %738 = vst.msk [vmem:[%s3123_s22 + $0x23a8] sm:$0xff] %vm167_vm0, %v3034_v3  ;;  %739 = vst.msk [vmem:[%s3123_s22 + $0x23b8] sm:$0xff] %vm167_vm0, %v3034_v3 }
 0x14d   : > { %740 = vst.msk [vmem:[%s3123_s22 + $0x23c8] sm:$0xff] %vm167_vm0, %v3034_v3  ;;  %741 = vst.msk [vmem:[%s3123_s22 + $0x23d8] sm:$0xff] %vm167_vm0, %v3034_v3 }
 0x14e   : > { %742 = vst.msk [vmem:[%s3123_s22 + $0x23e8] sm:$0xff] %vm167_vm0, %v3034_v3  ;;  %743 = vst.msk [vmem:[%s3123_s22 + $0x23f8] sm:$0xff] %vm167_vm0, %v3034_v3 }
 0x14f   : > { %744 = vst.msk [vmem:[%s3123_s22 + $0x2408] sm:$0xff] %vm167_vm0, %v3034_v3  ;;  %745 = vst.msk [vmem:[%s3123_s22 + $0x2418] sm:$0xff] %vm167_vm0, %v3034_v3 }
 0x150   : > { %746 = vst.msk [vmem:[%s3123_s22 + $0x2428] sm:$0xff] %vm167_vm0, %v3034_v3  ;;  %747 = vst.msk [vmem:[%s3123_s22 + $0x2438] sm:$0xff] %vm167_vm0, %v3034_v3 }
 0x151   : > { %748 = vst.msk [vmem:[%s3123_s22 + $0x2448] sm:$0xff] %vm167_vm0, %v3034_v3  ;;  %749 = vst.msk [vmem:[%s3123_s22 + $0x2458] sm:$0xff] %vm167_vm0, %v3034_v3 }
 0x152   : > { %750 = vst.msk [vmem:[%s3123_s22 + $0x2468] sm:$0xff] %vm167_vm0, %v3034_v3  ;;  %751 = vst.msk [vmem:[%s3123_s22 + $0x2478] sm:$0xff] %vm167_vm0, %v3034_v3 }
 0x153   : > { %752 = vst.msk [vmem:[%s3123_s22 + $0x2488] sm:$0xff] %vm167_vm0, %v3034_v3  ;;  %753 = vst.msk [vmem:[%s3123_s22 + $0x2498] sm:$0xff] %vm167_vm0, %v3034_v3 }
 0x154   : > { %754 = vst.msk [vmem:[%s3123_s22 + $0x24a8] sm:$0xff] %vm167_vm0, %v3034_v3  ;;  %755 = vst.msk [vmem:[%s3123_s22 + $0x24b8] sm:$0xff] %vm167_vm0, %v3034_v3 }
 0x155   : > { %756 = vst.msk [vmem:[%s3123_s22 + $0x24c8] sm:$0xff] %vm167_vm0, %v3034_v3  ;;  %757 = vst.msk [vmem:[%s3123_s22 + $0x24d8] sm:$0xff] %vm167_vm0, %v3034_v3 }
 0x156   : > { %758 = vst.msk [vmem:[%s3123_s22 + $0x24e8] sm:$0xff] %vm167_vm0, %v3034_v3  ;;  %759 = vst.msk [vmem:[%s3123_s22 + $0x24f8] sm:$0xff] %vm167_vm0, %v3034_v3 }
 0x157   : > { %760 = vst.msk [vmem:[%s3123_s22 + $0x2508] sm:$0xff] %vm167_vm0, %v3034_v3  ;;  %761 = vst.msk [vmem:[%s3123_s22 + $0x2518] sm:$0xff] %vm167_vm0, %v3034_v3 }
 0x158   : > { %762 = vst.msk [vmem:[%s3123_s22 + $0x2528] sm:$0xff] %vm167_vm0, %v3034_v3  ;;  %763 = vst.msk [vmem:[%s3123_s22 + $0x2538] sm:$0xff] %vm167_vm0, %v3034_v3 }
 0x159   : > { %764 = vst.msk [vmem:[%s3123_s22 + $0x2548] sm:$0xff] %vm167_vm0, %v3034_v3  ;;  %765 = vst.msk [vmem:[%s3123_s22 + $0x2558] sm:$0xff] %vm167_vm0, %v3034_v3 }
 0x15a   : > { %766 = vst.msk [vmem:[%s3123_s22 + $0x2568] sm:$0xff] %vm167_vm0, %v3034_v3  ;;  %767 = vst.msk [vmem:[%s3123_s22 + $0x2578] sm:$0xff] %vm167_vm0, %v3034_v3 }
 0x15b   : > { %768 = vst.msk [vmem:[%s3123_s22 + $0x2588] sm:$0xff] %vm167_vm0, %v3034_v3  ;;  %769 = vst.msk [vmem:[%s3123_s22 + $0x2598] sm:$0xff] %vm167_vm0, %v3034_v3 }
 0x15c   : > { %770 = vst.msk [vmem:[%s3123_s22 + $0x25a8] sm:$0xff] %vm167_vm0, %v3034_v3  ;;  %771 = vst.msk [vmem:[%s3123_s22 + $0x25b8] sm:$0xff] %vm167_vm0, %v3034_v3 }
 0x15d   : > { %772 = vst.msk [vmem:[%s3123_s22 + $0x25c8] sm:$0xff] %vm167_vm0, %v3034_v3  ;;  %773 = vst.msk [vmem:[%s3123_s22 + $0x25d8] sm:$0xff] %vm167_vm0, %v3034_v3 }
 0x15e   : > { %774 = vst.msk [vmem:[%s3123_s22 + $0x25e8] sm:$0xff] %vm167_vm0, %v3034_v3  ;;  %775 = vst.msk [vmem:[%s3123_s22 + $0x25f8] sm:$0xff] %vm167_vm0, %v3034_v3 }
 0x15f   : > { %776 = vst.msk [vmem:[%s3123_s22 + $0x2608] sm:$0xff] %vm167_vm0, %v3034_v3  ;;  %777 = vst.msk [vmem:[%s3123_s22 + $0x2618] sm:$0xff] %vm167_vm0, %v3034_v3 }
 0x160   : > { %778 = vst.msk [vmem:[%s3123_s22 + $0x2628] sm:$0xff] %vm167_vm0, %v3034_v3  ;;  %779 = vst.msk [vmem:[%s3123_s22 + $0x2638] sm:$0xff] %vm167_vm0, %v3034_v3 }
 0x161   : > { %780 = vst.msk [vmem:[%s3123_s22 + $0x2648] sm:$0xff] %vm167_vm0, %v3034_v3  ;;  %781 = vst.msk [vmem:[%s3123_s22 + $0x2658] sm:$0xff] %vm167_vm0, %v3034_v3 }
 0x162   : > { %782 = vst.msk [vmem:[%s3123_s22 + $0x2668] sm:$0xff] %vm167_vm0, %v3034_v3  ;;  %783 = vst.msk [vmem:[%s3123_s22 + $0x2678] sm:$0xff] %vm167_vm0, %v3034_v3 }
 0x163   : > { %784 = vst.msk [vmem:[%s3123_s22 + $0x2688] sm:$0xff] %vm167_vm0, %v3034_v3  ;;  %785 = vst.msk [vmem:[%s3123_s22 + $0x2698] sm:$0xff] %vm167_vm0, %v3034_v3 }
 0x164   : > { %786 = vst.msk [vmem:[%s3123_s22 + $0x26a8] sm:$0xff] %vm167_vm0, %v3034_v3  ;;  %787 = vst.msk [vmem:[%s3123_s22 + $0x26b8] sm:$0xff] %vm167_vm0, %v3034_v3 }
 0x165   : > { %788 = vst.msk [vmem:[%s3123_s22 + $0x26c8] sm:$0xff] %vm167_vm0, %v3034_v3  ;;  %789 = vst.msk [vmem:[%s3123_s22 + $0x26d8] sm:$0xff] %vm167_vm0, %v3034_v3 }
 0x166   : > { %790 = vst.msk [vmem:[%s3123_s22 + $0x26e8] sm:$0xff] %vm167_vm0, %v3034_v3  ;;  %791 = vst.msk [vmem:[%s3123_s22 + $0x26f8] sm:$0xff] %vm167_vm0, %v3034_v3 }
 0x167   : > { %792 = vst.msk [vmem:[%s3123_s22 + $0x2708] sm:$0xff] %vm167_vm0, %v3034_v3  ;;  %793 = vst.msk [vmem:[%s3123_s22 + $0x2718] sm:$0xff] %vm167_vm0, %v3034_v3 }
 0x168   : > { %794 = vst.msk [vmem:[%s3123_s22 + $0x2728] sm:$0xff] %vm167_vm0, %v3034_v3  ;;  %795 = vst.msk [vmem:[%s3123_s22 + $0x2738] sm:$0xff] %vm167_vm0, %v3034_v3 }
 0x169   : > { %796 = vst.msk [vmem:[%s3123_s22 + $0x2748] sm:$0xff] %vm167_vm0, %v3034_v3  ;;  %797 = vst.msk [vmem:[%s3123_s22 + $0x2758] sm:$0xff] %vm167_vm0, %v3034_v3 }
 0x16a   : > { %798 = vst.msk [vmem:[%s3123_s22 + $0x2768] sm:$0xff] %vm167_vm0, %v3034_v3  ;;  %799 = vst.msk [vmem:[%s3123_s22 + $0x2778] sm:$0xff] %vm167_vm0, %v3034_v3 }
 0x16b   : > { %800 = vst.msk [vmem:[%s3123_s22 + $0x2788] sm:$0xff] %vm167_vm0, %v3034_v3  ;;  %801 = vst.msk [vmem:[%s3123_s22 + $0x2798] sm:$0xff] %vm167_vm0, %v3034_v3 }
 0x16c   : > { %802 = vst.msk [vmem:[%s3123_s22 + $0x27a8] sm:$0xff] %vm167_vm0, %v3034_v3  ;;  %803 = vst.msk [vmem:[%s3123_s22 + $0x27b8] sm:$0xff] %vm167_vm0, %v3034_v3 }
 0x16d   : > { %804 = vst.msk [vmem:[%s3123_s22 + $0x27c8] sm:$0xff] %vm167_vm0, %v3034_v3  ;;  %805 = vst.msk [vmem:[%s3123_s22 + $0x27d8] sm:$0xff] %vm167_vm0, %v3034_v3 }
 0x16e   : > { %806 = vst.msk [vmem:[%s3123_s22 + $0x27e8] sm:$0xff] %vm167_vm0, %v3034_v3  ;;  %807 = vst.msk [vmem:[%s3123_s22 + $0x27f8] sm:$0xff] %vm167_vm0, %v3034_v3 }
 0x16f   : > { %808 = vst.msk [vmem:[%s3123_s22 + $0x2808] sm:$0xff] %vm167_vm0, %v3034_v3  ;;  %809 = vst.msk [vmem:[%s3123_s22 + $0x2818] sm:$0xff] %vm167_vm0, %v3034_v3 }
 0x170   : > { %810 = vst.msk [vmem:[%s3123_s22 + $0x2828] sm:$0xff] %vm167_vm0, %v3034_v3  ;;  %811 = vst.msk [vmem:[%s3123_s22 + $0x2838] sm:$0xff] %vm167_vm0, %v3034_v3 }
 0x171   : > { %812 = vst.msk [vmem:[%s3123_s22 + $0x2848] sm:$0xff] %vm167_vm0, %v3034_v3  ;;  %813 = vst.msk [vmem:[%s3123_s22 + $0x2858] sm:$0xff] %vm167_vm0, %v3034_v3 }
 0x172   : > { %814 = vst.msk [vmem:[%s3123_s22 + $0x2868] sm:$0xff] %vm167_vm0, %v3034_v3  ;;  %815 = vst.msk [vmem:[%s3123_s22 + $0x2878] sm:$0xff] %vm167_vm0, %v3034_v3 }
 0x173   : > { %816 = vst.msk [vmem:[%s3123_s22 + $0x2888] sm:$0xff] %vm167_vm0, %v3034_v3  ;;  %817 = vst.msk [vmem:[%s3123_s22 + $0x2898] sm:$0xff] %vm167_vm0, %v3034_v3 }
 0x174   : > { %818 = vst.msk [vmem:[%s3123_s22 + $0x28a8] sm:$0xff] %vm167_vm0, %v3034_v3  ;;  %819 = vst.msk [vmem:[%s3123_s22 + $0x28b8] sm:$0xff] %vm167_vm0, %v3034_v3 }
 0x175   : > { %820 = vst.msk [vmem:[%s3123_s22 + $0x28c8] sm:$0xff] %vm167_vm0, %v3034_v3  ;;  %821 = vst.msk [vmem:[%s3123_s22 + $0x28d8] sm:$0xff] %vm167_vm0, %v3034_v3 }
 0x176   : > { %822 = vst.msk [vmem:[%s3123_s22 + $0x28e8] sm:$0xff] %vm167_vm0, %v3034_v3  ;;  %823 = vst.msk [vmem:[%s3123_s22 + $0x28f8] sm:$0xff] %vm167_vm0, %v3034_v3 }
 0x177   : > { %824 = vst.msk [vmem:[%s3123_s22 + $0x2908] sm:$0xff] %vm167_vm0, %v3034_v3  ;;  %825 = vst.msk [vmem:[%s3123_s22 + $0x2918] sm:$0xff] %vm167_vm0, %v3034_v3 }
 0x178   : > { %826 = vst.msk [vmem:[%s3123_s22 + $0x2928] sm:$0xff] %vm167_vm0, %v3034_v3  ;;  %827 = vst.msk [vmem:[%s3123_s22 + $0x2938] sm:$0xff] %vm167_vm0, %v3034_v3 }
 0x179   : > { %828 = vst.msk [vmem:[%s3123_s22 + $0x2948] sm:$0xff] %vm167_vm0, %v3034_v3  ;;  %829 = vst.msk [vmem:[%s3123_s22 + $0x2958] sm:$0xff] %vm167_vm0, %v3034_v3 }
 0x17a   : > { %830 = vst.msk [vmem:[%s3123_s22 + $0x2968] sm:$0xff] %vm167_vm0, %v3034_v3  ;;  %831 = vst.msk [vmem:[%s3123_s22 + $0x2978] sm:$0xff] %vm167_vm0, %v3034_v3 }
 0x17b   : > { %832 = vst.msk [vmem:[%s3123_s22 + $0x2988] sm:$0xff] %vm167_vm0, %v3034_v3  ;;  %833 = vst.msk [vmem:[%s3123_s22 + $0x2998] sm:$0xff] %vm167_vm0, %v3034_v3 }
 0x17c   : > { %834 = vst.msk [vmem:[%s3123_s22 + $0x29a8] sm:$0xff] %vm167_vm0, %v3034_v3  ;;  %835 = vst.msk [vmem:[%s3123_s22 + $0x29b8] sm:$0xff] %vm167_vm0, %v3034_v3 }
 0x17d   : > { %836 = vst.msk [vmem:[%s3123_s22 + $0x29c8] sm:$0xff] %vm167_vm0, %v3034_v3  ;;  %837 = vst.msk [vmem:[%s3123_s22 + $0x29d8] sm:$0xff] %vm167_vm0, %v3034_v3 }
 0x17e   : > { %838 = vst.msk [vmem:[%s3123_s22 + $0x29e8] sm:$0xff] %vm167_vm0, %v3034_v3  ;;  %839 = vst.msk [vmem:[%s3123_s22 + $0x29f8] sm:$0xff] %vm167_vm0, %v3034_v3 }
 0x17f   : > { %840 = vst.msk [vmem:[%s3123_s22 + $0x2a08] sm:$0xff] %vm167_vm0, %v3034_v3  ;;  %841 = vst.msk [vmem:[%s3123_s22 + $0x2a18] sm:$0xff] %vm167_vm0, %v3034_v3 }
 0x180   : > { %842 = vst.msk [vmem:[%s3123_s22 + $0x2a28] sm:$0xff] %vm167_vm0, %v3034_v3  ;;  %843 = vst.msk [vmem:[%s3123_s22 + $0x2a38] sm:$0xff] %vm167_vm0, %v3034_v3 }
 0x181   : > { %844 = vst.msk [vmem:[%s3123_s22 + $0x2a48] sm:$0xff] %vm167_vm0, %v3034_v3  ;;  %845 = vst.msk [vmem:[%s3123_s22 + $0x2a58] sm:$0xff] %vm167_vm0, %v3034_v3 }
 0x182   : > { %846 = vst.msk [vmem:[%s3123_s22 + $0x2a68] sm:$0xff] %vm167_vm0, %v3034_v3  ;;  %847 = vst.msk [vmem:[%s3123_s22 + $0x2a78] sm:$0xff] %vm167_vm0, %v3034_v3 }
 0x183   : > { %848 = vst.msk [vmem:[%s3123_s22 + $0x2a88] sm:$0xff] %vm167_vm0, %v3034_v3  ;;  %849 = vst.msk [vmem:[%s3123_s22 + $0x2a98] sm:$0xff] %vm167_vm0, %v3034_v3 }
 0x184   : > { %850 = vst.msk [vmem:[%s3123_s22 + $0x2aa8] sm:$0xff] %vm167_vm0, %v3034_v3  ;;  %851 = vst.msk [vmem:[%s3123_s22 + $0x2ab8] sm:$0xff] %vm167_vm0, %v3034_v3 }
 0x185   : > { %852 = vst.msk [vmem:[%s3123_s22 + $0x2ac8] sm:$0xff] %vm167_vm0, %v3034_v3  ;;  %853 = vst.msk [vmem:[%s3123_s22 + $0x2ad8] sm:$0xff] %vm167_vm0, %v3034_v3 }
 0x186   : > { %854 = vst.msk [vmem:[%s3123_s22 + $0x2ae8] sm:$0xff] %vm167_vm0, %v3034_v3  ;;  %855 = vst.msk [vmem:[%s3123_s22 + $0x2af8] sm:$0xff] %vm167_vm0, %v3034_v3 }
 0x187   : > { %856 = vst.msk [vmem:[%s3123_s22 + $0x2b08] sm:$0xff] %vm167_vm0, %v3034_v3  ;;  %857 = vst.msk [vmem:[%s3123_s22 + $0x2b18] sm:$0xff] %vm167_vm0, %v3034_v3 }
 0x188   : > { %858 = vst.msk [vmem:[%s3123_s22 + $0x2b28] sm:$0xff] %vm167_vm0, %v3034_v3  ;;  %859 = vst.msk [vmem:[%s3123_s22 + $0x2b38] sm:$0xff] %vm167_vm0, %v3034_v3 }
 0x189   : > { %860 = vst.msk [vmem:[%s3123_s22 + $0x2b48] sm:$0xff] %vm167_vm0, %v3034_v3  ;;  %861 = vst.msk [vmem:[%s3123_s22 + $0x2b58] sm:$0xff] %vm167_vm0, %v3034_v3 }
 0x18a   : > { %862 = vst.msk [vmem:[%s3123_s22 + $0x2b68] sm:$0xff] %vm167_vm0, %v3034_v3  ;;  %863 = vst.msk [vmem:[%s3123_s22 + $0x2b78] sm:$0xff] %vm167_vm0, %v3034_v3 }
 0x18b   : > { %864 = vst.msk [vmem:[%s3123_s22 + $0x2b88] sm:$0xff] %vm167_vm0, %v3034_v3  ;;  %865 = vst.msk [vmem:[%s3123_s22 + $0x2b98] sm:$0xff] %vm167_vm0, %v3034_v3 }
 0x18c   : > { %866 = vst.msk [vmem:[%s3123_s22 + $0x2ba8] sm:$0xff] %vm167_vm0, %v3034_v3  ;;  %867 = vst.msk [vmem:[%s3123_s22 + $0x2bb8] sm:$0xff] %vm167_vm0, %v3034_v3 }
 0x18d   : > { %868 = vst.msk [vmem:[%s3123_s22 + $0x2bc8] sm:$0xff] %vm167_vm0, %v3034_v3  ;;  %869 = vst.msk [vmem:[%s3123_s22 + $0x2bd8] sm:$0xff] %vm167_vm0, %v3034_v3 }
 0x18e   : > { %870 = vst.msk [vmem:[%s3123_s22 + $0x2be8] sm:$0xff] %vm167_vm0, %v3034_v3  ;;  %871 = vst.msk [vmem:[%s3123_s22 + $0x2bf8] sm:$0xff] %vm167_vm0, %v3034_v3 }
 0x18f   : > { %872 = vst.msk [vmem:[%s3123_s22 + $0x2c08] sm:$0xff] %vm167_vm0, %v3034_v3  ;;  %873 = vst.msk [vmem:[%s3123_s22 + $0x2c18] sm:$0xff] %vm167_vm0, %v3034_v3 }
 0x190   : > { %874 = vst.msk [vmem:[%s3123_s22 + $0x2c28] sm:$0xff] %vm167_vm0, %v3034_v3  ;;  %875 = vst.msk [vmem:[%s3123_s22 + $0x2c38] sm:$0xff] %vm167_vm0, %v3034_v3 }
 0x191   : > { %876 = vst.msk [vmem:[%s3123_s22 + $0x2c48] sm:$0xff] %vm167_vm0, %v3034_v3  ;;  %877 = vst.msk [vmem:[%s3123_s22 + $0x2c58] sm:$0xff] %vm167_vm0, %v3034_v3 }
 0x192   : > { %878 = vst.msk [vmem:[%s3123_s22 + $0x2c68] sm:$0xff] %vm167_vm0, %v3034_v3  ;;  %879 = vst.msk [vmem:[%s3123_s22 + $0x2c78] sm:$0xff] %vm167_vm0, %v3034_v3 }
 0x193   : > { %880 = vst.msk [vmem:[%s3123_s22 + $0x2c88] sm:$0xff] %vm167_vm0, %v3034_v3  ;;  %881 = vst.msk [vmem:[%s3123_s22 + $0x2c98] sm:$0xff] %vm167_vm0, %v3034_v3 }
 0x194   : > { %882 = vst.msk [vmem:[%s3123_s22 + $0x2ca8] sm:$0xff] %vm167_vm0, %v3034_v3  ;;  %883 = vst.msk [vmem:[%s3123_s22 + $0x2cb8] sm:$0xff] %vm167_vm0, %v3034_v3 }
 0x195   : > { %884 = vst.msk [vmem:[%s3123_s22 + $0x2cc8] sm:$0xff] %vm167_vm0, %v3034_v3  ;;  %885 = vst.msk [vmem:[%s3123_s22 + $0x2cd8] sm:$0xff] %vm167_vm0, %v3034_v3 }
 0x196   : > { %886 = vst.msk [vmem:[%s3123_s22 + $0x2ce8] sm:$0xff] %vm167_vm0, %v3034_v3  ;;  %887 = vst.msk [vmem:[%s3123_s22 + $0x2cf8] sm:$0xff] %vm167_vm0, %v3034_v3 }
 0x197   : > { %888 = vst.msk [vmem:[%s3123_s22 + $0x2d08] sm:$0xff] %vm167_vm0, %v3034_v3  ;;  %889 = vst.msk [vmem:[%s3123_s22 + $0x2d18] sm:$0xff] %vm167_vm0, %v3034_v3 }
 0x198   : > { %890 = vst.msk [vmem:[%s3123_s22 + $0x2d28] sm:$0xff] %vm167_vm0, %v3034_v3  ;;  %891 = vst.msk [vmem:[%s3123_s22 + $0x2d38] sm:$0xff] %vm167_vm0, %v3034_v3 }
 0x199   : > { %892 = vst.msk [vmem:[%s3123_s22 + $0x2d48] sm:$0xff] %vm167_vm0, %v3034_v3  ;;  %893 = vst.msk [vmem:[%s3123_s22 + $0x2d58] sm:$0xff] %vm167_vm0, %v3034_v3 }
 0x19a   : > { %894 = vst.msk [vmem:[%s3123_s22 + $0x2d68] sm:$0xff] %vm167_vm0, %v3034_v3  ;;  %895 = vst.msk [vmem:[%s3123_s22 + $0x2d78] sm:$0xff] %vm167_vm0, %v3034_v3 }
 0x19b   : > { %896 = vst.msk [vmem:[%s3123_s22 + $0x2d88] sm:$0xff] %vm167_vm0, %v3034_v3  ;;  %897 = vst.msk [vmem:[%s3123_s22 + $0x2d98] sm:$0xff] %vm167_vm0, %v3034_v3 }
 0x19c   : > { %898 = vst.msk [vmem:[%s3123_s22 + $0x2da8] sm:$0xff] %vm167_vm0, %v3034_v3  ;;  %899 = vst.msk [vmem:[%s3123_s22 + $0x2db8] sm:$0xff] %vm167_vm0, %v3034_v3 }
 0x19d   : > { %900 = vst.msk [vmem:[%s3123_s22 + $0x2dc8] sm:$0xff] %vm167_vm0, %v3034_v3  ;;  %901 = vst.msk [vmem:[%s3123_s22 + $0x2dd8] sm:$0xff] %vm167_vm0, %v3034_v3 }
 0x19e   : > { %902 = vst.msk [vmem:[%s3123_s22 + $0x2de8] sm:$0xff] %vm167_vm0, %v3034_v3  ;;  %903 = vst.msk [vmem:[%s3123_s22 + $0x2df8] sm:$0xff] %vm167_vm0, %v3034_v3 }
 0x19f   : > { %904 = vst.msk [vmem:[%s3123_s22 + $0x2e08] sm:$0xff] %vm167_vm0, %v3034_v3  ;;  %905 = vst.msk [vmem:[%s3123_s22 + $0x2e18] sm:$0xff] %vm167_vm0, %v3034_v3 }
 0x1a0   : > { %906 = vst.msk [vmem:[%s3123_s22 + $0x2e28] sm:$0xff] %vm167_vm0, %v3034_v3  ;;  %907 = vst.msk [vmem:[%s3123_s22 + $0x2e38] sm:$0xff] %vm167_vm0, %v3034_v3 }
 0x1a1   : > { %908 = vst.msk [vmem:[%s3123_s22 + $0x2e48] sm:$0xff] %vm167_vm0, %v3034_v3  ;;  %909 = vst.msk [vmem:[%s3123_s22 + $0x2e58] sm:$0xff] %vm167_vm0, %v3034_v3 }
 0x1a2   : > { %910 = vst.msk [vmem:[%s3123_s22 + $0x2e68] sm:$0xff] %vm167_vm0, %v3034_v3  ;;  %911 = vst.msk [vmem:[%s3123_s22 + $0x2e78] sm:$0xff] %vm167_vm0, %v3034_v3 }
 0x1a3   : > { %912 = vst.msk [vmem:[%s3123_s22 + $0x2e88] sm:$0xff] %vm167_vm0, %v3034_v3  ;;  %913 = vst.msk [vmem:[%s3123_s22 + $0x2e98] sm:$0xff] %vm167_vm0, %v3034_v3 }
 0x1a4   : > { %914 = vst.msk [vmem:[%s3123_s22 + $0x2ea8] sm:$0xff] %vm167_vm0, %v3034_v3  ;;  %915 = vst.msk [vmem:[%s3123_s22 + $0x2eb8] sm:$0xff] %vm167_vm0, %v3034_v3 }
 0x1a5   : > { %916 = vst.msk [vmem:[%s3123_s22 + $0x2ec8] sm:$0xff] %vm167_vm0, %v3034_v3  ;;  %917 = vst.msk [vmem:[%s3123_s22 + $0x2ed8] sm:$0xff] %vm167_vm0, %v3034_v3 }
 0x1a6   : > { %918 = vst.msk [vmem:[%s3123_s22 + $0x2ee8] sm:$0xff] %vm167_vm0, %v3034_v3  ;;  %919 = vst.msk [vmem:[%s3123_s22 + $0x2ef8] sm:$0xff] %vm167_vm0, %v3034_v3 }
 0x1a7   : > { %920 = vst.msk [vmem:[%s3123_s22 + $0x2f08] sm:$0xff] %vm167_vm0, %v3034_v3  ;;  %921 = vst.msk [vmem:[%s3123_s22 + $0x2f18] sm:$0xff] %vm167_vm0, %v3034_v3 }
 0x1a8   : > { %922 = vst.msk [vmem:[%s3123_s22 + $0x2f28] sm:$0xff] %vm167_vm0, %v3034_v3  ;;  %923 = vst.msk [vmem:[%s3123_s22 + $0x2f38] sm:$0xff] %vm167_vm0, %v3034_v3 }
 0x1a9   : > { %924 = vst.msk [vmem:[%s3123_s22 + $0x2f48] sm:$0xff] %vm167_vm0, %v3034_v3  ;;  %925 = vst.msk [vmem:[%s3123_s22 + $0x2f58] sm:$0xff] %vm167_vm0, %v3034_v3 }
 0x1aa   : > { %926 = vst.msk [vmem:[%s3123_s22 + $0x2f68] sm:$0xff] %vm167_vm0, %v3034_v3  ;;  %927 = vst.msk [vmem:[%s3123_s22 + $0x2f78] sm:$0xff] %vm167_vm0, %v3034_v3 }
 0x1ab   : > { %928 = vst.msk [vmem:[%s3123_s22 + $0x2f88] sm:$0xff] %vm167_vm0, %v3034_v3  ;;  %929 = vst.msk [vmem:[%s3123_s22 + $0x2f98] sm:$0xff] %vm167_vm0, %v3034_v3 }
 0x1ac   : > { %930 = vst.msk [vmem:[%s3123_s22 + $0x2fa8] sm:$0xff] %vm167_vm0, %v3034_v3  ;;  %931 = vst.msk [vmem:[%s3123_s22 + $0x2fb8] sm:$0xff] %vm167_vm0, %v3034_v3 }
 0x1ad   : > { %932 = vst.msk [vmem:[%s3123_s22 + $0x2fc8] sm:$0xff] %vm167_vm0, %v3034_v3  ;;  %933 = vst.msk [vmem:[%s3123_s22 + $0x2fd8] sm:$0xff] %vm167_vm0, %v3034_v3 }
 0x1ae   : > { %934 = vst.msk [vmem:[%s3123_s22 + $0x2fe8] sm:$0xff] %vm167_vm0, %v3034_v3  ;;  %935 = vst.msk [vmem:[%s3123_s22 + $0x2ff8] sm:$0xff] %vm167_vm0, %v3034_v3 }
 0x1af   : > { %936 = vst.msk [vmem:[%s3123_s22 + $0x3008] sm:$0xff] %vm167_vm0, %v3034_v3  ;;  %937 = vst.msk [vmem:[%s3123_s22 + $0x3018] sm:$0xff] %vm167_vm0, %v3034_v3 }
 0x1b0   : > { %938 = vst.msk [vmem:[%s3123_s22 + $0x3028] sm:$0xff] %vm167_vm0, %v3034_v3  ;;  %939 = vst.msk [vmem:[%s3123_s22 + $0x3038] sm:$0xff] %vm167_vm0, %v3034_v3 }
 0x1b1   : > { %940 = vst.msk [vmem:[%s3123_s22 + $0x3048] sm:$0xff] %vm167_vm0, %v3034_v3  ;;  %941 = vst.msk [vmem:[%s3123_s22 + $0x3058] sm:$0xff] %vm167_vm0, %v3034_v3 }
 0x1b2   : > { %942 = vst.msk [vmem:[%s3123_s22 + $0x3068] sm:$0xff] %vm167_vm0, %v3034_v3  ;;  %943 = vst.msk [vmem:[%s3123_s22 + $0x3078] sm:$0xff] %vm167_vm0, %v3034_v3 }
 0x1b3   : > { %944 = vst.msk [vmem:[%s3123_s22 + $0x3088] sm:$0xff] %vm167_vm0, %v3034_v3  ;;  %945 = vst.msk [vmem:[%s3123_s22 + $0x3098] sm:$0xff] %vm167_vm0, %v3034_v3 }
 0x1b4   : > { %946 = vst.msk [vmem:[%s3123_s22 + $0x30a8] sm:$0xff] %vm167_vm0, %v3034_v3  ;;  %947 = vst.msk [vmem:[%s3123_s22 + $0x30b8] sm:$0xff] %vm167_vm0, %v3034_v3 }
 0x1b5   : > { %948 = vst.msk [vmem:[%s3123_s22 + $0x30c8] sm:$0xff] %vm167_vm0, %v3034_v3  ;;  %949 = vst.msk [vmem:[%s3123_s22 + $0x30d8] sm:$0xff] %vm167_vm0, %v3034_v3 }
 0x1b6   : > { %950 = vst.msk [vmem:[%s3123_s22 + $0x30e8] sm:$0xff] %vm167_vm0, %v3034_v3  ;;  %951 = vst.msk [vmem:[%s3123_s22 + $0x30f8] sm:$0xff] %vm167_vm0, %v3034_v3 }
 0x1b7   : > { %952 = vst.msk [vmem:[%s3123_s22 + $0x3108] sm:$0xff] %vm167_vm0, %v3034_v3  ;;  %953 = vst.msk [vmem:[%s3123_s22 + $0x3118] sm:$0xff] %vm167_vm0, %v3034_v3 }
 0x1b8   : > { %954 = vst.msk [vmem:[%s3123_s22 + $0x3128] sm:$0xff] %vm167_vm0, %v3034_v3  ;;  %955 = vst.msk [vmem:[%s3123_s22 + $0x3138] sm:$0xff] %vm167_vm0, %v3034_v3 }
 0x1b9   : > { %956 = vst.msk [vmem:[%s3123_s22 + $0x3148] sm:$0xff] %vm167_vm0, %v3034_v3  ;;  %957 = vst.msk [vmem:[%s3123_s22 + $0x3158] sm:$0xff] %vm167_vm0, %v3034_v3 }
 0x1ba   : > { %958 = vst.msk [vmem:[%s3123_s22 + $0x3168] sm:$0xff] %vm167_vm0, %v3034_v3  ;;  %959 = vst.msk [vmem:[%s3123_s22 + $0x3178] sm:$0xff] %vm167_vm0, %v3034_v3 }
 0x1bb   : > { %960 = vst.msk [vmem:[%s3123_s22 + $0x3188] sm:$0xff] %vm167_vm0, %v3034_v3  ;;  %961 = vst.msk [vmem:[%s3123_s22 + $0x3198] sm:$0xff] %vm167_vm0, %v3034_v3 }
 0x1bc   : > { %962 = vst.msk [vmem:[%s3123_s22 + $0x31a8] sm:$0xff] %vm167_vm0, %v3034_v3  ;;  %963 = vst.msk [vmem:[%s3123_s22 + $0x31b8] sm:$0xff] %vm167_vm0, %v3034_v3 }
 0x1bd   : > { %964 = vst.msk [vmem:[%s3123_s22 + $0x31c8] sm:$0xff] %vm167_vm0, %v3034_v3  ;;  %965 = vst.msk [vmem:[%s3123_s22 + $0x31d8] sm:$0xff] %vm167_vm0, %v3034_v3 }
 0x1be   : > { %966 = vst.msk [vmem:[%s3123_s22 + $0x31e8] sm:$0xff] %vm167_vm0, %v3034_v3  ;;  %967 = vst.msk [vmem:[%s3123_s22 + $0x31f8] sm:$0xff] %vm167_vm0, %v3034_v3 }
 0x1bf   : > { %968 = vst.msk [vmem:[%s3123_s22 + $0x3208] sm:$0xff] %vm167_vm0, %v3034_v3  ;;  %969 = vst.msk [vmem:[%s3123_s22 + $0x3218] sm:$0xff] %vm167_vm0, %v3034_v3 }
 0x1c0   : > { %970 = vst.msk [vmem:[%s3123_s22 + $0x3228] sm:$0xff] %vm167_vm0, %v3034_v3  ;;  %971 = vst.msk [vmem:[%s3123_s22 + $0x3238] sm:$0xff] %vm167_vm0, %v3034_v3 }
 0x1c1   : > { %972 = vst.msk [vmem:[%s3123_s22 + $0x3248] sm:$0xff] %vm167_vm0, %v3034_v3  ;;  %973 = vst.msk [vmem:[%s3123_s22 + $0x3258] sm:$0xff] %vm167_vm0, %v3034_v3 }
 0x1c2   : > { %974 = vst.msk [vmem:[%s3123_s22 + $0x3268] sm:$0xff] %vm167_vm0, %v3034_v3  ;;  %975 = vst.msk [vmem:[%s3123_s22 + $0x3278] sm:$0xff] %vm167_vm0, %v3034_v3 }
 0x1c3   : > { %976 = vst.msk [vmem:[%s3123_s22 + $0x3288] sm:$0xff] %vm167_vm0, %v3034_v3  ;;  %977 = vst.msk [vmem:[%s3123_s22 + $0x3298] sm:$0xff] %vm167_vm0, %v3034_v3 }
 0x1c4   : > { %978 = vst.msk [vmem:[%s3123_s22 + $0x32a8] sm:$0xff] %vm167_vm0, %v3034_v3  ;;  %979 = vst.msk [vmem:[%s3123_s22 + $0x32b8] sm:$0xff] %vm167_vm0, %v3034_v3 }
 0x1c5   : > { %980 = vst.msk [vmem:[%s3123_s22 + $0x32c8] sm:$0xff] %vm167_vm0, %v3034_v3  ;;  %981 = vst.msk [vmem:[%s3123_s22 + $0x32d8] sm:$0xff] %vm167_vm0, %v3034_v3 }
 0x1c6   : > { %982 = vst.msk [vmem:[%s3123_s22 + $0x32e8] sm:$0xff] %vm167_vm0, %v3034_v3  ;;  %983 = vst.msk [vmem:[%s3123_s22 + $0x32f8] sm:$0xff] %vm167_vm0, %v3034_v3 }
 0x1c7   : > { %984 = vst.msk [vmem:[%s3123_s22 + $0x3308] sm:$0xff] %vm167_vm0, %v3034_v3  ;;  %985 = vst.msk [vmem:[%s3123_s22 + $0x3318] sm:$0xff] %vm167_vm0, %v3034_v3 }
 0x1c8   : > { %986 = vst.msk [vmem:[%s3123_s22 + $0x3328] sm:$0xff] %vm167_vm0, %v3034_v3  ;;  %987 = vst.msk [vmem:[%s3123_s22 + $0x3338] sm:$0xff] %vm167_vm0, %v3034_v3 }
 0x1c9   : > { %988 = vst.msk [vmem:[%s3123_s22 + $0x3348] sm:$0xff] %vm167_vm0, %v3034_v3  ;;  %989 = vst.msk [vmem:[%s3123_s22 + $0x3358] sm:$0xff] %vm167_vm0, %v3034_v3 }
 0x1ca   : > { %990 = vst.msk [vmem:[%s3123_s22 + $0x3368] sm:$0xff] %vm167_vm0, %v3034_v3  ;;  %991 = vst.msk [vmem:[%s3123_s22 + $0x3378] sm:$0xff] %vm167_vm0, %v3034_v3 }
 0x1cb   : > { %992 = vst.msk [vmem:[%s3123_s22 + $0x3388] sm:$0xff] %vm167_vm0, %v3034_v3  ;;  %993 = vst.msk [vmem:[%s3123_s22 + $0x3398] sm:$0xff] %vm167_vm0, %v3034_v3 }
 0x1cc   : > { %994 = vst.msk [vmem:[%s3123_s22 + $0x33a8] sm:$0xff] %vm167_vm0, %v3034_v3  ;;  %995 = vst.msk [vmem:[%s3123_s22 + $0x33b8] sm:$0xff] %vm167_vm0, %v3034_v3 }
 0x1cd   : > { %996 = vst.msk [vmem:[%s3123_s22 + $0x33c8] sm:$0xff] %vm167_vm0, %v3034_v3  ;;  %997 = vst.msk [vmem:[%s3123_s22 + $0x33d8] sm:$0xff] %vm167_vm0, %v3034_v3 }
 0x1ce   : > { %998 = vst.msk [vmem:[%s3123_s22 + $0x33e8] sm:$0xff] %vm167_vm0, %v3034_v3  ;;  %999 = vst.msk [vmem:[%s3123_s22 + $0x33f8] sm:$0xff] %vm167_vm0, %v3034_v3 }
 0x1cf   : > { %1000 = vst.msk [vmem:[%s3123_s22 + $0x3408] sm:$0xff] %vm167_vm0, %v3034_v3  ;;  %1001 = vst.msk [vmem:[%s3123_s22 + $0x3418] sm:$0xff] %vm167_vm0, %v3034_v3 }
 0x1d0   : > { %1002 = vst.msk [vmem:[%s3123_s22 + $0x3428] sm:$0xff] %vm167_vm0, %v3034_v3  ;;  %1003 = vst.msk [vmem:[%s3123_s22 + $0x3438] sm:$0xff] %vm167_vm0, %v3034_v3 }
 0x1d1   : > { %1004 = vst.msk [vmem:[%s3123_s22 + $0x3448] sm:$0xff] %vm167_vm0, %v3034_v3  ;;  %1005 = vst.msk [vmem:[%s3123_s22 + $0x3458] sm:$0xff] %vm167_vm0, %v3034_v3 }
 0x1d2   : > { %1006 = vst.msk [vmem:[%s3123_s22 + $0x3468] sm:$0xff] %vm167_vm0, %v3034_v3  ;;  %1007 = vst.msk [vmem:[%s3123_s22 + $0x3478] sm:$0xff] %vm167_vm0, %v3034_v3 }
 0x1d3   : > { %1008 = vst.msk [vmem:[%s3123_s22 + $0x3488] sm:$0xff] %vm167_vm0, %v3034_v3  ;;  %1009 = vst.msk [vmem:[%s3123_s22 + $0x3498] sm:$0xff] %vm167_vm0, %v3034_v3 }
 0x1d4   : > { %1010 = vst.msk [vmem:[%s3123_s22 + $0x34a8] sm:$0xff] %vm167_vm0, %v3034_v3  ;;  %1011 = vst.msk [vmem:[%s3123_s22 + $0x34b8] sm:$0xff] %vm167_vm0, %v3034_v3 }
 0x1d5   : > { %1012 = vst.msk [vmem:[%s3123_s22 + $0x34c8] sm:$0xff] %vm167_vm0, %v3034_v3  ;;  %1013 = vst.msk [vmem:[%s3123_s22 + $0x34d8] sm:$0xff] %vm167_vm0, %v3034_v3 }
 0x1d6   : > { %1014 = vst.msk [vmem:[%s3123_s22 + $0x34e8] sm:$0xff] %vm167_vm0, %v3034_v3  ;;  %1015 = vst.msk [vmem:[%s3123_s22 + $0x34f8] sm:$0xff] %vm167_vm0, %v3034_v3 }
 0x1d7   : > { %1016 = vst.msk [vmem:[%s3123_s22 + $0x3508] sm:$0xff] %vm167_vm0, %v3034_v3  ;;  %1017 = vst.msk [vmem:[%s3123_s22 + $0x3518] sm:$0xff] %vm167_vm0, %v3034_v3 }
 0x1d8   : > { %1018 = vst.msk [vmem:[%s3123_s22 + $0x3528] sm:$0xff] %vm167_vm0, %v3034_v3  ;;  %1019 = vst.msk [vmem:[%s3123_s22 + $0x3538] sm:$0xff] %vm167_vm0, %v3034_v3 }
 0x1d9   : > { %1020 = vst.msk [vmem:[%s3123_s22 + $0x3548] sm:$0xff] %vm167_vm0, %v3034_v3  ;;  %1021 = vst.msk [vmem:[%s3123_s22 + $0x3558] sm:$0xff] %vm167_vm0, %v3034_v3 }
 0x1da   : > { %1022 = vst.msk [vmem:[%s3123_s22 + $0x3568] sm:$0xff] %vm167_vm0, %v3034_v3  ;;  %1023 = vst.msk [vmem:[%s3123_s22 + $0x3578] sm:$0xff] %vm167_vm0, %v3034_v3 }
 0x1db   : > { %1024 = vst.msk [vmem:[%s3123_s22 + $0x3588] sm:$0xff] %vm167_vm0, %v3034_v3  ;;  %1025 = vst.msk [vmem:[%s3123_s22 + $0x3598] sm:$0xff] %vm167_vm0, %v3034_v3 }
 0x1dc   : > { %1026 = vst.msk [vmem:[%s3123_s22 + $0x35a8] sm:$0xff] %vm167_vm0, %v3034_v3  ;;  %1027 = vst.msk [vmem:[%s3123_s22 + $0x35b8] sm:$0xff] %vm167_vm0, %v3034_v3 }
 0x1dd   : > { %1028 = vst.msk [vmem:[%s3123_s22 + $0x35c8] sm:$0xff] %vm167_vm0, %v3034_v3  ;;  %1029 = vst.msk [vmem:[%s3123_s22 + $0x35d8] sm:$0xff] %vm167_vm0, %v3034_v3 }
 0x1de   : > { %1030 = vst.msk [vmem:[%s3123_s22 + $0x35e8] sm:$0xff] %vm167_vm0, %v3034_v3  ;;  %1031 = vst.msk [vmem:[%s3123_s22 + $0x35f8] sm:$0xff] %vm167_vm0, %v3034_v3 }
 0x1df   : > { %1032 = vst.msk [vmem:[%s3123_s22 + $0x3608] sm:$0xff] %vm167_vm0, %v3034_v3  ;;  %1033 = vst.msk [vmem:[%s3123_s22 + $0x3618] sm:$0xff] %vm167_vm0, %v3034_v3 }
 0x1e0   : > { %1034 = vst.msk [vmem:[%s3123_s22 + $0x3628] sm:$0xff] %vm167_vm0, %v3034_v3  ;;  %1035 = vst.msk [vmem:[%s3123_s22 + $0x3638] sm:$0xff] %vm167_vm0, %v3034_v3 }
 0x1e1   : > { %1036 = vst.msk [vmem:[%s3123_s22 + $0x3648] sm:$0xff] %vm167_vm0, %v3034_v3  ;;  %1037 = vst.msk [vmem:[%s3123_s22 + $0x3658] sm:$0xff] %vm167_vm0, %v3034_v3 }
 0x1e2   : > { %1038 = vst.msk [vmem:[%s3123_s22 + $0x3668] sm:$0xff] %vm167_vm0, %v3034_v3  ;;  %1039 = vst.msk [vmem:[%s3123_s22 + $0x3678] sm:$0xff] %vm167_vm0, %v3034_v3 }
 0x1e3   : > { %1040 = vst.msk [vmem:[%s3123_s22 + $0x3688] sm:$0xff] %vm167_vm0, %v3034_v3  ;;  %1041 = vst.msk [vmem:[%s3123_s22 + $0x3698] sm:$0xff] %vm167_vm0, %v3034_v3 }
 0x1e4   : > { %1042 = vst.msk [vmem:[%s3123_s22 + $0x36a8] sm:$0xff] %vm167_vm0, %v3034_v3  ;;  %1043 = vst.msk [vmem:[%s3123_s22 + $0x36b8] sm:$0xff] %vm167_vm0, %v3034_v3 }
 0x1e5   : > { %1044 = vst.msk [vmem:[%s3123_s22 + $0x36c8] sm:$0xff] %vm167_vm0, %v3034_v3  ;;  %1045 = vst.msk [vmem:[%s3123_s22 + $0x36d8] sm:$0xff] %vm167_vm0, %v3034_v3 }
 0x1e6   : > { %1046 = vst.msk [vmem:[%s3123_s22 + $0x36e8] sm:$0xff] %vm167_vm0, %v3034_v3  ;;  %1047 = vst.msk [vmem:[%s3123_s22 + $0x36f8] sm:$0xff] %vm167_vm0, %v3034_v3 }
 0x1e7   : > { %1048 = vst.msk [vmem:[%s3123_s22 + $0x3708] sm:$0xff] %vm167_vm0, %v3034_v3  ;;  %1049 = vst.msk [vmem:[%s3123_s22 + $0x3718] sm:$0xff] %vm167_vm0, %v3034_v3 }
 0x1e8   : > { %1050 = vst.msk [vmem:[%s3123_s22 + $0x3728] sm:$0xff] %vm167_vm0, %v3034_v3  ;;  %1051 = vst.msk [vmem:[%s3123_s22 + $0x3738] sm:$0xff] %vm167_vm0, %v3034_v3 }
 0x1e9   : > { %1052 = vst.msk [vmem:[%s3123_s22 + $0x3748] sm:$0xff] %vm167_vm0, %v3034_v3  ;;  %1053 = vst.msk [vmem:[%s3123_s22 + $0x3758] sm:$0xff] %vm167_vm0, %v3034_v3 }
 0x1ea   : > { %1054 = vst.msk [vmem:[%s3123_s22 + $0x3768] sm:$0xff] %vm167_vm0, %v3034_v3  ;;  %1055 = vst.msk [vmem:[%s3123_s22 + $0x3778] sm:$0xff] %vm167_vm0, %v3034_v3 }
 0x1eb   : > { %1056 = vst.msk [vmem:[%s3123_s22 + $0x3788] sm:$0xff] %vm167_vm0, %v3034_v3  ;;  %1057 = vst.msk [vmem:[%s3123_s22 + $0x3798] sm:$0xff] %vm167_vm0, %v3034_v3 }
 0x1ec   : > { %1058 = vst.msk [vmem:[%s3123_s22 + $0x37a8] sm:$0xff] %vm167_vm0, %v3034_v3  ;;  %1059 = vst.msk [vmem:[%s3123_s22 + $0x37b8] sm:$0xff] %vm167_vm0, %v3034_v3 }
 0x1ed   : > { %1060 = vst.msk [vmem:[%s3123_s22 + $0x37c8] sm:$0xff] %vm167_vm0, %v3034_v3  ;;  %1061 = vst.msk [vmem:[%s3123_s22 + $0x37d8] sm:$0xff] %vm167_vm0, %v3034_v3 }
 0x1ee   : > { %1062 = vst.msk [vmem:[%s3123_s22 + $0x37e8] sm:$0xff] %vm167_vm0, %v3034_v3  ;;  %1063 = vst.msk [vmem:[%s3123_s22 + $0x37f8] sm:$0xff] %vm167_vm0, %v3034_v3  ;;  %v1130_v3 = vld [vmem:[%s3112_s19 + $0x210] sm:$0xff] }
 0x1ef   : > { %1960 = vst [vmem:[%s3123_s22] sm:$0xff] %v3126_v0  ;;  %1961 = vst [vmem:[%s3123_s22 + $0x10] sm:$0xff] %v3129_v1  ;;  %v1127_v0 = vld [vmem:[%s3112_s19 + $0x1f8] sm:$0xff]  ;;  %v1128_v1 = vld [vmem:[%s3112_s19 + $0x200] sm:$0xff] }
 0x1f0   : > { %1962 = vst [vmem:[%s3123_s22 + $0x20] sm:$0xff] %v3132_v2  ;;  %1963 = vst [vmem:[%s3123_s22 + $0x30] sm:$0xff] %v1067_v4  ;;  %v1129_v2 = vld [vmem:[%s3112_s19 + $0x208] sm:$0xff]  ;;  %v1131_v4 = vld [vmem:[%s3112_s19 + $0x218] sm:$0xff] }
 0x1f1   : > { %1964 = vst [vmem:[%s3123_s22 + $0x40] sm:$0xff] %v1068_v5  ;;  %1965 = vst [vmem:[%s3123_s22 + $0x50] sm:$0xff] %v1069_v6  ;;  %v1132_v5 = vld [vmem:[%s3112_s19 + $0x220] sm:$0xff]  ;;  %v1133_v6 = vld [vmem:[%s3112_s19 + $0x228] sm:$0xff] }
 0x1f2   : > { %1966 = vst [vmem:[%s3123_s22 + $0x60] sm:$0xff] %v1070_v7  ;;  %1967 = vst [vmem:[%s3123_s22 + $0x70] sm:$0xff] %v1071_v8  ;;  %v1134_v7 = vld [vmem:[%s3112_s19 + $0x230] sm:$0xff]  ;;  %v1135_v8 = vld [vmem:[%s3112_s19 + $0x238] sm:$0xff] }
 0x1f3   : > { %1968 = vst [vmem:[%s3123_s22 + $0x80] sm:$0xff] %v1072_v9  ;;  %1969 = vst [vmem:[%s3123_s22 + $0x90] sm:$0xff] %v1073_v10  ;;  %v1136_v9 = vld [vmem:[%s3112_s19 + $0x240] sm:$0xff]  ;;  %v1137_v10 = vld [vmem:[%s3112_s19 + $0x248] sm:$0xff] }
 0x1f4   : > { %1970 = vst [vmem:[%s3123_s22 + $0xa0] sm:$0xff] %v1074_v11  ;;  %1971 = vst [vmem:[%s3123_s22 + $0xb0] sm:$0xff] %v1075_v12  ;;  %v1138_v11 = vld [vmem:[%s3112_s19 + $0x250] sm:$0xff]  ;;  %v1139_v12 = vld [vmem:[%s3112_s19 + $0x258] sm:$0xff] }
 0x1f5   : > { %1972 = vst [vmem:[%s3123_s22 + $0xc0] sm:$0xff] %v1076_v13  ;;  %1973 = vst [vmem:[%s3123_s22 + $0xd0] sm:$0xff] %v1077_v14  ;;  %v1140_v13 = vld [vmem:[%s3112_s19 + $0x260] sm:$0xff]  ;;  %v1141_v14 = vld [vmem:[%s3112_s19 + $0x268] sm:$0xff] }
 0x1f6   : > { %1974 = vst [vmem:[%s3123_s22 + $0xe0] sm:$0xff] %v1078_v15  ;;  %1975 = vst [vmem:[%s3123_s22 + $0xf0] sm:$0xff] %v1079_v16  ;;  %v1142_v15 = vld [vmem:[%s3112_s19 + $0x270] sm:$0xff]  ;;  %v1143_v16 = vld [vmem:[%s3112_s19 + $0x278] sm:$0xff] }
 0x1f7   : > { %1976 = vst [vmem:[%s3123_s22 + $0x100] sm:$0xff] %v1080_v17  ;;  %1977 = vst [vmem:[%s3123_s22 + $0x110] sm:$0xff] %v1081_v18  ;;  %v1144_v17 = vld [vmem:[%s3112_s19 + $0x280] sm:$0xff]  ;;  %v1145_v18 = vld [vmem:[%s3112_s19 + $0x288] sm:$0xff] }
 0x1f8   : > { %1978 = vst [vmem:[%s3123_s22 + $0x120] sm:$0xff] %v1082_v19  ;;  %1979 = vst [vmem:[%s3123_s22 + $0x130] sm:$0xff] %v1083_v20  ;;  %v1146_v19 = vld [vmem:[%s3112_s19 + $0x290] sm:$0xff]  ;;  %v1147_v20 = vld [vmem:[%s3112_s19 + $0x298] sm:$0xff] }
 0x1f9   : > { %1980 = vst [vmem:[%s3123_s22 + $0x140] sm:$0xff] %v1084_v21  ;;  %1981 = vst [vmem:[%s3123_s22 + $0x150] sm:$0xff] %v1085_v22  ;;  %v1148_v21 = vld [vmem:[%s3112_s19 + $0x2a0] sm:$0xff]  ;;  %v1149_v22 = vld [vmem:[%s3112_s19 + $0x2a8] sm:$0xff] }
 0x1fa   : > { %1982 = vst [vmem:[%s3123_s22 + $0x160] sm:$0xff] %v1086_v23  ;;  %1983 = vst [vmem:[%s3123_s22 + $0x170] sm:$0xff] %v1087_v24  ;;  %v1150_v23 = vld [vmem:[%s3112_s19 + $0x2b0] sm:$0xff]  ;;  %v1151_v24 = vld [vmem:[%s3112_s19 + $0x2b8] sm:$0xff] }
 0x1fb   : > { %1984 = vst [vmem:[%s3123_s22 + $0x180] sm:$0xff] %v1088_v25  ;;  %1985 = vst [vmem:[%s3123_s22 + $0x190] sm:$0xff] %v1089_v26  ;;  %v1152_v25 = vld [vmem:[%s3112_s19 + $0x2c0] sm:$0xff]  ;;  %v1153_v26 = vld [vmem:[%s3112_s19 + $0x2c8] sm:$0xff] }
 0x1fc   : > { %1986 = vst [vmem:[%s3123_s22 + $0x1a0] sm:$0xff] %v1090_v27  ;;  %1987 = vst [vmem:[%s3123_s22 + $0x1b0] sm:$0xff] %v1091_v28  ;;  %v1154_v27 = vld [vmem:[%s3112_s19 + $0x2d0] sm:$0xff]  ;;  %v1155_v28 = vld [vmem:[%s3112_s19 + $0x2d8] sm:$0xff] }
 0x1fd   : > { %1988 = vst [vmem:[%s3123_s22 + $0x1c0] sm:$0xff] %v1092_v29  ;;  %1989 = vst [vmem:[%s3123_s22 + $0x1d0] sm:$0xff] %v1093_v30  ;;  %v1156_v29 = vld [vmem:[%s3112_s19 + $0x2e0] sm:$0xff]  ;;  %v1157_v30 = vld [vmem:[%s3112_s19 + $0x2e8] sm:$0xff] }
 0x1fe   : > { %1990 = vst [vmem:[%s3123_s22 + $0x1e0] sm:$0xff] %v1094_v31  ;;  %1991 = vst [vmem:[%s3123_s22 + $0x1f0] sm:$0xff] %v1095_v32  ;;  %v1158_v31 = vld [vmem:[%s3112_s19 + $0x2f0] sm:$0xff]  ;;  %v1159_v32 = vld [vmem:[%s3112_s19 + $0x2f8] sm:$0xff] }
 0x1ff   : > { %1992 = vst [vmem:[%s3123_s22 + $0x200] sm:$0xff] %v1096_v33  ;;  %1993 = vst [vmem:[%s3123_s22 + $0x210] sm:$0xff] %v1097_v34  ;;  %v1160_v33 = vld [vmem:[%s3112_s19 + $0x300] sm:$0xff]  ;;  %v1161_v34 = vld [vmem:[%s3112_s19 + $0x308] sm:$0xff] }
 0x200   : > { %1994 = vst [vmem:[%s3123_s22 + $0x220] sm:$0xff] %v1098_v35  ;;  %1995 = vst [vmem:[%s3123_s22 + $0x230] sm:$0xff] %v1099_v36  ;;  %v1162_v35 = vld [vmem:[%s3112_s19 + $0x310] sm:$0xff]  ;;  %v1163_v36 = vld [vmem:[%s3112_s19 + $0x318] sm:$0xff] }
 0x201   : > { %1996 = vst [vmem:[%s3123_s22 + $0x240] sm:$0xff] %v1100_v37  ;;  %1997 = vst [vmem:[%s3123_s22 + $0x250] sm:$0xff] %v1101_v38  ;;  %v1164_v37 = vld [vmem:[%s3112_s19 + $0x320] sm:$0xff]  ;;  %v1165_v38 = vld [vmem:[%s3112_s19 + $0x328] sm:$0xff] }
 0x202   : > { %1998 = vst [vmem:[%s3123_s22 + $0x260] sm:$0xff] %v1102_v39  ;;  %1999 = vst [vmem:[%s3123_s22 + $0x270] sm:$0xff] %v1103_v40  ;;  %v1166_v39 = vld [vmem:[%s3112_s19 + $0x330] sm:$0xff]  ;;  %v1167_v40 = vld [vmem:[%s3112_s19 + $0x338] sm:$0xff] }
 0x203   : > { %2000 = vst [vmem:[%s3123_s22 + $0x280] sm:$0xff] %v1104_v41  ;;  %2001 = vst [vmem:[%s3123_s22 + $0x290] sm:$0xff] %v1105_v42  ;;  %v1168_v41 = vld [vmem:[%s3112_s19 + $0x340] sm:$0xff]  ;;  %v1169_v42 = vld [vmem:[%s3112_s19 + $0x348] sm:$0xff] }
 0x204   : > { %2002 = vst [vmem:[%s3123_s22 + $0x2a0] sm:$0xff] %v1106_v43  ;;  %2003 = vst [vmem:[%s3123_s22 + $0x2b0] sm:$0xff] %v1107_v44  ;;  %v1170_v43 = vld [vmem:[%s3112_s19 + $0x350] sm:$0xff]  ;;  %v1171_v44 = vld [vmem:[%s3112_s19 + $0x358] sm:$0xff] }
 0x205   : > { %2004 = vst [vmem:[%s3123_s22 + $0x2c0] sm:$0xff] %v1108_v45  ;;  %2005 = vst [vmem:[%s3123_s22 + $0x2d0] sm:$0xff] %v1109_v46  ;;  %v1172_v45 = vld [vmem:[%s3112_s19 + $0x360] sm:$0xff]  ;;  %v1173_v46 = vld [vmem:[%s3112_s19 + $0x368] sm:$0xff] }
 0x206   : > { %2006 = vst [vmem:[%s3123_s22 + $0x2e0] sm:$0xff] %v1110_v47  ;;  %2007 = vst [vmem:[%s3123_s22 + $0x2f0] sm:$0xff] %v1111_v48  ;;  %v1174_v47 = vld [vmem:[%s3112_s19 + $0x370] sm:$0xff]  ;;  %v1175_v48 = vld [vmem:[%s3112_s19 + $0x378] sm:$0xff] }
 0x207   : > { %2008 = vst [vmem:[%s3123_s22 + $0x300] sm:$0xff] %v1112_v49  ;;  %2009 = vst [vmem:[%s3123_s22 + $0x310] sm:$0xff] %v1113_v50  ;;  %v1176_v49 = vld [vmem:[%s3112_s19 + $0x380] sm:$0xff]  ;;  %v1177_v50 = vld [vmem:[%s3112_s19 + $0x388] sm:$0xff] }
 0x208   : > { %2010 = vst [vmem:[%s3123_s22 + $0x320] sm:$0xff] %v1114_v51  ;;  %2011 = vst [vmem:[%s3123_s22 + $0x330] sm:$0xff] %v1115_v52  ;;  %v1178_v51 = vld [vmem:[%s3112_s19 + $0x390] sm:$0xff]  ;;  %v1179_v52 = vld [vmem:[%s3112_s19 + $0x398] sm:$0xff] }
 0x209   : > { %2012 = vst [vmem:[%s3123_s22 + $0x340] sm:$0xff] %v1116_v53  ;;  %2013 = vst [vmem:[%s3123_s22 + $0x350] sm:$0xff] %v1117_v54  ;;  %v1180_v53 = vld [vmem:[%s3112_s19 + $0x3a0] sm:$0xff]  ;;  %v1181_v54 = vld [vmem:[%s3112_s19 + $0x3a8] sm:$0xff] }
 0x20a   : > { %2014 = vst [vmem:[%s3123_s22 + $0x360] sm:$0xff] %v1118_v55  ;;  %2015 = vst [vmem:[%s3123_s22 + $0x370] sm:$0xff] %v1119_v56  ;;  %v1182_v55 = vld [vmem:[%s3112_s19 + $0x3b0] sm:$0xff]  ;;  %v1183_v56 = vld [vmem:[%s3112_s19 + $0x3b8] sm:$0xff] }
 0x20b   : > { %2016 = vst [vmem:[%s3123_s22 + $0x380] sm:$0xff] %v1120_v57  ;;  %2017 = vst [vmem:[%s3123_s22 + $0x390] sm:$0xff] %v1121_v58  ;;  %v1184_v57 = vld [vmem:[%s3112_s19 + $0x3c0] sm:$0xff]  ;;  %v1185_v58 = vld [vmem:[%s3112_s19 + $0x3c8] sm:$0xff] }
 0x20c   : > { %2018 = vst [vmem:[%s3123_s22 + $0x3a0] sm:$0xff] %v1122_v59  ;;  %2019 = vst [vmem:[%s3123_s22 + $0x3b0] sm:$0xff] %v1123_v60  ;;  %v1186_v59 = vld [vmem:[%s3112_s19 + $0x3d0] sm:$0xff]  ;;  %v1187_v60 = vld [vmem:[%s3112_s19 + $0x3d8] sm:$0xff] }
 0x20d   : > { %2020 = vst [vmem:[%s3123_s22 + $0x3c0] sm:$0xff] %v1124_v61  ;;  %2021 = vst [vmem:[%s3123_s22 + $0x3d0] sm:$0xff] %v1125_v62  ;;  %v1188_v61 = vld [vmem:[%s3112_s19 + $0x3e0] sm:$0xff]  ;;  %v1189_v62 = vld [vmem:[%s3112_s19 + $0x3e8] sm:$0xff] }
 0x20e   : > { %2022 = vst [vmem:[%s3123_s22 + $0x3e0] sm:$0xff] %v1126_v63  ;;  %2023 = vst [vmem:[%s3123_s22 + $0x3f0] sm:$0xff] %v1127_v0  ;;  %v1190_v63 = vld [vmem:[%s3112_s19 + $0x3f0] sm:$0xff]  ;;  %v1191_v0 = vld [vmem:[%s3112_s19 + $0x3f8] sm:$0xff] }
 0x20f   : > { %2024 = vst [vmem:[%s3123_s22 + $0x400] sm:$0xff] %v1128_v1  ;;  %2025 = vst [vmem:[%s3123_s22 + $0x410] sm:$0xff] %v1129_v2  ;;  %v1192_v1 = vld [vmem:[%s3112_s19 + $0x400] sm:$0xff]  ;;  %v1193_v2 = vld [vmem:[%s3112_s19 + $0x408] sm:$0xff] }
 0x210   : > { %2026 = vst [vmem:[%s3123_s22 + $0x420] sm:$0xff] %v1130_v3  ;;  %2027 = vst [vmem:[%s3123_s22 + $0x430] sm:$0xff] %v1131_v4  ;;  %v1194_v3 = vld [vmem:[%s3112_s19 + $0x410] sm:$0xff]  ;;  %v1195_v4 = vld [vmem:[%s3112_s19 + $0x418] sm:$0xff] }
 0x211   : > { %2028 = vst [vmem:[%s3123_s22 + $0x440] sm:$0xff] %v1132_v5  ;;  %2029 = vst [vmem:[%s3123_s22 + $0x450] sm:$0xff] %v1133_v6  ;;  %v1196_v5 = vld [vmem:[%s3112_s19 + $0x420] sm:$0xff]  ;;  %v1197_v6 = vld [vmem:[%s3112_s19 + $0x428] sm:$0xff] }
 0x212   : > { %2030 = vst [vmem:[%s3123_s22 + $0x460] sm:$0xff] %v1134_v7  ;;  %2031 = vst [vmem:[%s3123_s22 + $0x470] sm:$0xff] %v1135_v8  ;;  %v1198_v7 = vld [vmem:[%s3112_s19 + $0x430] sm:$0xff]  ;;  %v1199_v8 = vld [vmem:[%s3112_s19 + $0x438] sm:$0xff] }
 0x213   : > { %2032 = vst [vmem:[%s3123_s22 + $0x480] sm:$0xff] %v1136_v9  ;;  %2033 = vst [vmem:[%s3123_s22 + $0x490] sm:$0xff] %v1137_v10  ;;  %v1200_v9 = vld [vmem:[%s3112_s19 + $0x440] sm:$0xff]  ;;  %v1201_v10 = vld [vmem:[%s3112_s19 + $0x448] sm:$0xff] }
 0x214   : > { %2034 = vst [vmem:[%s3123_s22 + $0x4a0] sm:$0xff] %v1138_v11  ;;  %2035 = vst [vmem:[%s3123_s22 + $0x4b0] sm:$0xff] %v1139_v12  ;;  %v1202_v11 = vld [vmem:[%s3112_s19 + $0x450] sm:$0xff]  ;;  %v1203_v12 = vld [vmem:[%s3112_s19 + $0x458] sm:$0xff] }
 0x215   : > { %2036 = vst [vmem:[%s3123_s22 + $0x4c0] sm:$0xff] %v1140_v13  ;;  %2037 = vst [vmem:[%s3123_s22 + $0x4d0] sm:$0xff] %v1141_v14  ;;  %v1204_v13 = vld [vmem:[%s3112_s19 + $0x460] sm:$0xff]  ;;  %v1205_v14 = vld [vmem:[%s3112_s19 + $0x468] sm:$0xff] }
 0x216   : > { %2038 = vst [vmem:[%s3123_s22 + $0x4e0] sm:$0xff] %v1142_v15  ;;  %2039 = vst [vmem:[%s3123_s22 + $0x4f0] sm:$0xff] %v1143_v16  ;;  %v1206_v15 = vld [vmem:[%s3112_s19 + $0x470] sm:$0xff]  ;;  %v1207_v16 = vld [vmem:[%s3112_s19 + $0x478] sm:$0xff] }
 0x217   : > { %2040 = vst [vmem:[%s3123_s22 + $0x500] sm:$0xff] %v1144_v17  ;;  %2041 = vst [vmem:[%s3123_s22 + $0x510] sm:$0xff] %v1145_v18  ;;  %v1208_v17 = vld [vmem:[%s3112_s19 + $0x480] sm:$0xff]  ;;  %v1209_v18 = vld [vmem:[%s3112_s19 + $0x488] sm:$0xff] }
 0x218   : > { %2042 = vst [vmem:[%s3123_s22 + $0x520] sm:$0xff] %v1146_v19  ;;  %2043 = vst [vmem:[%s3123_s22 + $0x530] sm:$0xff] %v1147_v20  ;;  %v1210_v19 = vld [vmem:[%s3112_s19 + $0x490] sm:$0xff]  ;;  %v1211_v20 = vld [vmem:[%s3112_s19 + $0x498] sm:$0xff] }
 0x219   : > { %2044 = vst [vmem:[%s3123_s22 + $0x540] sm:$0xff] %v1148_v21  ;;  %2045 = vst [vmem:[%s3123_s22 + $0x550] sm:$0xff] %v1149_v22  ;;  %v1212_v21 = vld [vmem:[%s3112_s19 + $0x4a0] sm:$0xff]  ;;  %v1213_v22 = vld [vmem:[%s3112_s19 + $0x4a8] sm:$0xff] }
 0x21a   : > { %2046 = vst [vmem:[%s3123_s22 + $0x560] sm:$0xff] %v1150_v23  ;;  %2047 = vst [vmem:[%s3123_s22 + $0x570] sm:$0xff] %v1151_v24  ;;  %v1214_v23 = vld [vmem:[%s3112_s19 + $0x4b0] sm:$0xff]  ;;  %v1215_v24 = vld [vmem:[%s3112_s19 + $0x4b8] sm:$0xff] }
 0x21b   : > { %2048 = vst [vmem:[%s3123_s22 + $0x580] sm:$0xff] %v1152_v25  ;;  %2049 = vst [vmem:[%s3123_s22 + $0x590] sm:$0xff] %v1153_v26  ;;  %v1216_v25 = vld [vmem:[%s3112_s19 + $0x4c0] sm:$0xff]  ;;  %v1217_v26 = vld [vmem:[%s3112_s19 + $0x4c8] sm:$0xff] }
 0x21c   : > { %2050 = vst [vmem:[%s3123_s22 + $0x5a0] sm:$0xff] %v1154_v27  ;;  %2051 = vst [vmem:[%s3123_s22 + $0x5b0] sm:$0xff] %v1155_v28  ;;  %v1218_v27 = vld [vmem:[%s3112_s19 + $0x4d0] sm:$0xff]  ;;  %v1219_v28 = vld [vmem:[%s3112_s19 + $0x4d8] sm:$0xff] }
 0x21d   : > { %2052 = vst [vmem:[%s3123_s22 + $0x5c0] sm:$0xff] %v1156_v29  ;;  %2053 = vst [vmem:[%s3123_s22 + $0x5d0] sm:$0xff] %v1157_v30  ;;  %v1220_v29 = vld [vmem:[%s3112_s19 + $0x4e0] sm:$0xff]  ;;  %v1221_v30 = vld [vmem:[%s3112_s19 + $0x4e8] sm:$0xff] }
 0x21e   : > { %2054 = vst [vmem:[%s3123_s22 + $0x5e0] sm:$0xff] %v1158_v31  ;;  %2055 = vst [vmem:[%s3123_s22 + $0x5f0] sm:$0xff] %v1159_v32  ;;  %v1222_v31 = vld [vmem:[%s3112_s19 + $0x4f0] sm:$0xff]  ;;  %v1223_v32 = vld [vmem:[%s3112_s19 + $0x4f8] sm:$0xff] }
 0x21f   : > { %2056 = vst [vmem:[%s3123_s22 + $0x600] sm:$0xff] %v1160_v33  ;;  %2057 = vst [vmem:[%s3123_s22 + $0x610] sm:$0xff] %v1161_v34  ;;  %v1224_v33 = vld [vmem:[%s3112_s19 + $0x500] sm:$0xff]  ;;  %v1225_v34 = vld [vmem:[%s3112_s19 + $0x508] sm:$0xff] }
 0x220   : > { %2058 = vst [vmem:[%s3123_s22 + $0x620] sm:$0xff] %v1162_v35  ;;  %2059 = vst [vmem:[%s3123_s22 + $0x630] sm:$0xff] %v1163_v36  ;;  %v1226_v35 = vld [vmem:[%s3112_s19 + $0x510] sm:$0xff]  ;;  %v1227_v36 = vld [vmem:[%s3112_s19 + $0x518] sm:$0xff] }
 0x221   : > { %2060 = vst [vmem:[%s3123_s22 + $0x640] sm:$0xff] %v1164_v37  ;;  %2061 = vst [vmem:[%s3123_s22 + $0x650] sm:$0xff] %v1165_v38  ;;  %v1228_v37 = vld [vmem:[%s3112_s19 + $0x520] sm:$0xff]  ;;  %v1229_v38 = vld [vmem:[%s3112_s19 + $0x528] sm:$0xff] }
 0x222   : > { %2062 = vst [vmem:[%s3123_s22 + $0x660] sm:$0xff] %v1166_v39  ;;  %2063 = vst [vmem:[%s3123_s22 + $0x670] sm:$0xff] %v1167_v40  ;;  %v1230_v39 = vld [vmem:[%s3112_s19 + $0x530] sm:$0xff]  ;;  %v1231_v40 = vld [vmem:[%s3112_s19 + $0x538] sm:$0xff] }
 0x223   : > { %2064 = vst [vmem:[%s3123_s22 + $0x680] sm:$0xff] %v1168_v41  ;;  %2065 = vst [vmem:[%s3123_s22 + $0x690] sm:$0xff] %v1169_v42  ;;  %v1232_v41 = vld [vmem:[%s3112_s19 + $0x540] sm:$0xff]  ;;  %v1233_v42 = vld [vmem:[%s3112_s19 + $0x548] sm:$0xff] }
 0x224   : > { %2066 = vst [vmem:[%s3123_s22 + $0x6a0] sm:$0xff] %v1170_v43  ;;  %2067 = vst [vmem:[%s3123_s22 + $0x6b0] sm:$0xff] %v1171_v44  ;;  %v1234_v43 = vld [vmem:[%s3112_s19 + $0x550] sm:$0xff]  ;;  %v1235_v44 = vld [vmem:[%s3112_s19 + $0x558] sm:$0xff] }
 0x225   : > { %2068 = vst [vmem:[%s3123_s22 + $0x6c0] sm:$0xff] %v1172_v45  ;;  %2069 = vst [vmem:[%s3123_s22 + $0x6d0] sm:$0xff] %v1173_v46  ;;  %v1236_v45 = vld [vmem:[%s3112_s19 + $0x560] sm:$0xff]  ;;  %v1237_v46 = vld [vmem:[%s3112_s19 + $0x568] sm:$0xff] }
 0x226   : > { %2070 = vst [vmem:[%s3123_s22 + $0x6e0] sm:$0xff] %v1174_v47  ;;  %2071 = vst [vmem:[%s3123_s22 + $0x6f0] sm:$0xff] %v1175_v48  ;;  %v1238_v47 = vld [vmem:[%s3112_s19 + $0x570] sm:$0xff]  ;;  %v1239_v48 = vld [vmem:[%s3112_s19 + $0x578] sm:$0xff] }
 0x227   : > { %2072 = vst [vmem:[%s3123_s22 + $0x700] sm:$0xff] %v1176_v49  ;;  %2073 = vst [vmem:[%s3123_s22 + $0x710] sm:$0xff] %v1177_v50  ;;  %v1240_v49 = vld [vmem:[%s3112_s19 + $0x580] sm:$0xff]  ;;  %v1241_v50 = vld [vmem:[%s3112_s19 + $0x588] sm:$0xff] }
 0x228   : > { %2074 = vst [vmem:[%s3123_s22 + $0x720] sm:$0xff] %v1178_v51  ;;  %2075 = vst [vmem:[%s3123_s22 + $0x730] sm:$0xff] %v1179_v52  ;;  %v1242_v51 = vld [vmem:[%s3112_s19 + $0x590] sm:$0xff]  ;;  %v1243_v52 = vld [vmem:[%s3112_s19 + $0x598] sm:$0xff] }
 0x229   : > { %2076 = vst [vmem:[%s3123_s22 + $0x740] sm:$0xff] %v1180_v53  ;;  %2077 = vst [vmem:[%s3123_s22 + $0x750] sm:$0xff] %v1181_v54  ;;  %v1244_v53 = vld [vmem:[%s3112_s19 + $0x5a0] sm:$0xff]  ;;  %v1245_v54 = vld [vmem:[%s3112_s19 + $0x5a8] sm:$0xff] }
 0x22a   : > { %2078 = vst [vmem:[%s3123_s22 + $0x760] sm:$0xff] %v1182_v55  ;;  %2079 = vst [vmem:[%s3123_s22 + $0x770] sm:$0xff] %v1183_v56  ;;  %v1246_v55 = vld [vmem:[%s3112_s19 + $0x5b0] sm:$0xff]  ;;  %v1247_v56 = vld [vmem:[%s3112_s19 + $0x5b8] sm:$0xff] }
 0x22b   : > { %2080 = vst [vmem:[%s3123_s22 + $0x780] sm:$0xff] %v1184_v57  ;;  %2081 = vst [vmem:[%s3123_s22 + $0x790] sm:$0xff] %v1185_v58  ;;  %v1248_v57 = vld [vmem:[%s3112_s19 + $0x5c0] sm:$0xff]  ;;  %v1249_v58 = vld [vmem:[%s3112_s19 + $0x5c8] sm:$0xff] }
 0x22c   : > { %2082 = vst [vmem:[%s3123_s22 + $0x7a0] sm:$0xff] %v1186_v59  ;;  %2083 = vst [vmem:[%s3123_s22 + $0x7b0] sm:$0xff] %v1187_v60  ;;  %v1250_v59 = vld [vmem:[%s3112_s19 + $0x5d0] sm:$0xff]  ;;  %v1251_v60 = vld [vmem:[%s3112_s19 + $0x5d8] sm:$0xff] }
 0x22d   : > { %2084 = vst [vmem:[%s3123_s22 + $0x7c0] sm:$0xff] %v1188_v61  ;;  %2085 = vst [vmem:[%s3123_s22 + $0x7d0] sm:$0xff] %v1189_v62  ;;  %v1252_v61 = vld [vmem:[%s3112_s19 + $0x5e0] sm:$0xff]  ;;  %v1253_v62 = vld [vmem:[%s3112_s19 + $0x5e8] sm:$0xff] }
 0x22e   : > { %2086 = vst [vmem:[%s3123_s22 + $0x7e0] sm:$0xff] %v1190_v63  ;;  %2087 = vst [vmem:[%s3123_s22 + $0x7f0] sm:$0xff] %v1191_v0  ;;  %v1254_v63 = vld [vmem:[%s3112_s19 + $0x5f0] sm:$0xff]  ;;  %v1255_v0 = vld [vmem:[%s3112_s19 + $0x5f8] sm:$0xff] }
 0x22f   : > { %2088 = vst [vmem:[%s3123_s22 + $0x800] sm:$0xff] %v1192_v1  ;;  %2089 = vst [vmem:[%s3123_s22 + $0x810] sm:$0xff] %v1193_v2  ;;  %v1256_v1 = vld [vmem:[%s3112_s19 + $0x600] sm:$0xff]  ;;  %v1257_v2 = vld [vmem:[%s3112_s19 + $0x608] sm:$0xff] }
 0x230   : > { %2090 = vst [vmem:[%s3123_s22 + $0x820] sm:$0xff] %v1194_v3  ;;  %2091 = vst [vmem:[%s3123_s22 + $0x830] sm:$0xff] %v1195_v4  ;;  %v1258_v3 = vld [vmem:[%s3112_s19 + $0x610] sm:$0xff]  ;;  %v1259_v4 = vld [vmem:[%s3112_s19 + $0x618] sm:$0xff] }
 0x231   : > { %2092 = vst [vmem:[%s3123_s22 + $0x840] sm:$0xff] %v1196_v5  ;;  %2093 = vst [vmem:[%s3123_s22 + $0x850] sm:$0xff] %v1197_v6  ;;  %v1260_v5 = vld [vmem:[%s3112_s19 + $0x620] sm:$0xff]  ;;  %v1261_v6 = vld [vmem:[%s3112_s19 + $0x628] sm:$0xff] }
 0x232   : > { %2094 = vst [vmem:[%s3123_s22 + $0x860] sm:$0xff] %v1198_v7  ;;  %2095 = vst [vmem:[%s3123_s22 + $0x870] sm:$0xff] %v1199_v8  ;;  %v1262_v7 = vld [vmem:[%s3112_s19 + $0x630] sm:$0xff]  ;;  %v1263_v8 = vld [vmem:[%s3112_s19 + $0x638] sm:$0xff] }
 0x233   : > { %2096 = vst [vmem:[%s3123_s22 + $0x880] sm:$0xff] %v1200_v9  ;;  %2097 = vst [vmem:[%s3123_s22 + $0x890] sm:$0xff] %v1201_v10  ;;  %v1264_v9 = vld [vmem:[%s3112_s19 + $0x640] sm:$0xff]  ;;  %v1265_v10 = vld [vmem:[%s3112_s19 + $0x648] sm:$0xff] }
 0x234   : > { %2098 = vst [vmem:[%s3123_s22 + $0x8a0] sm:$0xff] %v1202_v11  ;;  %2099 = vst [vmem:[%s3123_s22 + $0x8b0] sm:$0xff] %v1203_v12  ;;  %v1266_v11 = vld [vmem:[%s3112_s19 + $0x650] sm:$0xff]  ;;  %v1267_v12 = vld [vmem:[%s3112_s19 + $0x658] sm:$0xff] }
 0x235   : > { %2100 = vst [vmem:[%s3123_s22 + $0x8c0] sm:$0xff] %v1204_v13  ;;  %2101 = vst [vmem:[%s3123_s22 + $0x8d0] sm:$0xff] %v1205_v14  ;;  %v1268_v13 = vld [vmem:[%s3112_s19 + $0x660] sm:$0xff]  ;;  %v1269_v14 = vld [vmem:[%s3112_s19 + $0x668] sm:$0xff] }
 0x236   : > { %2102 = vst [vmem:[%s3123_s22 + $0x8e0] sm:$0xff] %v1206_v15  ;;  %2103 = vst [vmem:[%s3123_s22 + $0x8f0] sm:$0xff] %v1207_v16  ;;  %v1270_v15 = vld [vmem:[%s3112_s19 + $0x670] sm:$0xff]  ;;  %v1271_v16 = vld [vmem:[%s3112_s19 + $0x678] sm:$0xff] }
 0x237   : > { %2104 = vst [vmem:[%s3123_s22 + $0x900] sm:$0xff] %v1208_v17  ;;  %2105 = vst [vmem:[%s3123_s22 + $0x910] sm:$0xff] %v1209_v18  ;;  %v1272_v17 = vld [vmem:[%s3112_s19 + $0x680] sm:$0xff]  ;;  %v1273_v18 = vld [vmem:[%s3112_s19 + $0x688] sm:$0xff] }
 0x238   : > { %2106 = vst [vmem:[%s3123_s22 + $0x920] sm:$0xff] %v1210_v19  ;;  %2107 = vst [vmem:[%s3123_s22 + $0x930] sm:$0xff] %v1211_v20  ;;  %v1274_v19 = vld [vmem:[%s3112_s19 + $0x690] sm:$0xff]  ;;  %v1275_v20 = vld [vmem:[%s3112_s19 + $0x698] sm:$0xff] }
 0x239   : > { %2108 = vst [vmem:[%s3123_s22 + $0x940] sm:$0xff] %v1212_v21  ;;  %2109 = vst [vmem:[%s3123_s22 + $0x950] sm:$0xff] %v1213_v22  ;;  %v1276_v21 = vld [vmem:[%s3112_s19 + $0x6a0] sm:$0xff]  ;;  %v1277_v22 = vld [vmem:[%s3112_s19 + $0x6a8] sm:$0xff] }
 0x23a   : > { %2110 = vst [vmem:[%s3123_s22 + $0x960] sm:$0xff] %v1214_v23  ;;  %2111 = vst [vmem:[%s3123_s22 + $0x970] sm:$0xff] %v1215_v24  ;;  %v1278_v23 = vld [vmem:[%s3112_s19 + $0x6b0] sm:$0xff]  ;;  %v1279_v24 = vld [vmem:[%s3112_s19 + $0x6b8] sm:$0xff] }
 0x23b   : > { %2112 = vst [vmem:[%s3123_s22 + $0x980] sm:$0xff] %v1216_v25  ;;  %2113 = vst [vmem:[%s3123_s22 + $0x990] sm:$0xff] %v1217_v26  ;;  %v1280_v25 = vld [vmem:[%s3112_s19 + $0x6c0] sm:$0xff]  ;;  %v1281_v26 = vld [vmem:[%s3112_s19 + $0x6c8] sm:$0xff] }
 0x23c   : > { %2114 = vst [vmem:[%s3123_s22 + $0x9a0] sm:$0xff] %v1218_v27  ;;  %2115 = vst [vmem:[%s3123_s22 + $0x9b0] sm:$0xff] %v1219_v28  ;;  %v1282_v27 = vld [vmem:[%s3112_s19 + $0x6d0] sm:$0xff]  ;;  %v1283_v28 = vld [vmem:[%s3112_s19 + $0x6d8] sm:$0xff] }
 0x23d   : > { %2116 = vst [vmem:[%s3123_s22 + $0x9c0] sm:$0xff] %v1220_v29  ;;  %2117 = vst [vmem:[%s3123_s22 + $0x9d0] sm:$0xff] %v1221_v30  ;;  %v1284_v29 = vld [vmem:[%s3112_s19 + $0x6e0] sm:$0xff]  ;;  %v1285_v30 = vld [vmem:[%s3112_s19 + $0x6e8] sm:$0xff] }
 0x23e   : > { %2118 = vst [vmem:[%s3123_s22 + $0x9e0] sm:$0xff] %v1222_v31  ;;  %2119 = vst [vmem:[%s3123_s22 + $0x9f0] sm:$0xff] %v1223_v32  ;;  %v1286_v31 = vld [vmem:[%s3112_s19 + $0x6f0] sm:$0xff]  ;;  %v1287_v32 = vld [vmem:[%s3112_s19 + $0x6f8] sm:$0xff] }
 0x23f   : > { %2120 = vst [vmem:[%s3123_s22 + $0xa00] sm:$0xff] %v1224_v33  ;;  %2121 = vst [vmem:[%s3123_s22 + $0xa10] sm:$0xff] %v1225_v34  ;;  %v1288_v33 = vld [vmem:[%s3112_s19 + $0x700] sm:$0xff]  ;;  %v1289_v34 = vld [vmem:[%s3112_s19 + $0x708] sm:$0xff] }
 0x240   : > { %2122 = vst [vmem:[%s3123_s22 + $0xa20] sm:$0xff] %v1226_v35  ;;  %2123 = vst [vmem:[%s3123_s22 + $0xa30] sm:$0xff] %v1227_v36  ;;  %v1290_v35 = vld [vmem:[%s3112_s19 + $0x710] sm:$0xff]  ;;  %v1291_v36 = vld [vmem:[%s3112_s19 + $0x718] sm:$0xff] }
 0x241   : > { %2124 = vst [vmem:[%s3123_s22 + $0xa40] sm:$0xff] %v1228_v37  ;;  %2125 = vst [vmem:[%s3123_s22 + $0xa50] sm:$0xff] %v1229_v38  ;;  %v1292_v37 = vld [vmem:[%s3112_s19 + $0x720] sm:$0xff]  ;;  %v1293_v38 = vld [vmem:[%s3112_s19 + $0x728] sm:$0xff] }
 0x242   : > { %2126 = vst [vmem:[%s3123_s22 + $0xa60] sm:$0xff] %v1230_v39  ;;  %2127 = vst [vmem:[%s3123_s22 + $0xa70] sm:$0xff] %v1231_v40  ;;  %v1294_v39 = vld [vmem:[%s3112_s19 + $0x730] sm:$0xff]  ;;  %v1295_v40 = vld [vmem:[%s3112_s19 + $0x738] sm:$0xff] }
 0x243   : > { %2128 = vst [vmem:[%s3123_s22 + $0xa80] sm:$0xff] %v1232_v41  ;;  %2129 = vst [vmem:[%s3123_s22 + $0xa90] sm:$0xff] %v1233_v42  ;;  %v1296_v41 = vld [vmem:[%s3112_s19 + $0x740] sm:$0xff]  ;;  %v1297_v42 = vld [vmem:[%s3112_s19 + $0x748] sm:$0xff] }
 0x244   : > { %2130 = vst [vmem:[%s3123_s22 + $0xaa0] sm:$0xff] %v1234_v43  ;;  %2131 = vst [vmem:[%s3123_s22 + $0xab0] sm:$0xff] %v1235_v44  ;;  %v1298_v43 = vld [vmem:[%s3112_s19 + $0x750] sm:$0xff]  ;;  %v1299_v44 = vld [vmem:[%s3112_s19 + $0x758] sm:$0xff] }
 0x245   : > { %2132 = vst [vmem:[%s3123_s22 + $0xac0] sm:$0xff] %v1236_v45  ;;  %2133 = vst [vmem:[%s3123_s22 + $0xad0] sm:$0xff] %v1237_v46  ;;  %v1300_v45 = vld [vmem:[%s3112_s19 + $0x760] sm:$0xff]  ;;  %v1301_v46 = vld [vmem:[%s3112_s19 + $0x768] sm:$0xff] }
 0x246   : > { %2134 = vst [vmem:[%s3123_s22 + $0xae0] sm:$0xff] %v1238_v47  ;;  %2135 = vst [vmem:[%s3123_s22 + $0xaf0] sm:$0xff] %v1239_v48  ;;  %v1302_v47 = vld [vmem:[%s3112_s19 + $0x770] sm:$0xff]  ;;  %v1303_v48 = vld [vmem:[%s3112_s19 + $0x778] sm:$0xff] }
 0x247   : > { %2136 = vst [vmem:[%s3123_s22 + $0xb00] sm:$0xff] %v1240_v49  ;;  %2137 = vst [vmem:[%s3123_s22 + $0xb10] sm:$0xff] %v1241_v50  ;;  %v1304_v49 = vld [vmem:[%s3112_s19 + $0x780] sm:$0xff]  ;;  %v1305_v50 = vld [vmem:[%s3112_s19 + $0x788] sm:$0xff] }
 0x248   : > { %2138 = vst [vmem:[%s3123_s22 + $0xb20] sm:$0xff] %v1242_v51  ;;  %2139 = vst [vmem:[%s3123_s22 + $0xb30] sm:$0xff] %v1243_v52  ;;  %v1306_v51 = vld [vmem:[%s3112_s19 + $0x790] sm:$0xff]  ;;  %v1307_v52 = vld [vmem:[%s3112_s19 + $0x798] sm:$0xff] }
 0x249   : > { %2140 = vst [vmem:[%s3123_s22 + $0xb40] sm:$0xff] %v1244_v53  ;;  %2141 = vst [vmem:[%s3123_s22 + $0xb50] sm:$0xff] %v1245_v54  ;;  %v1308_v53 = vld [vmem:[%s3112_s19 + $0x7a0] sm:$0xff]  ;;  %v1309_v54 = vld [vmem:[%s3112_s19 + $0x7a8] sm:$0xff] }
 0x24a   : > { %2142 = vst [vmem:[%s3123_s22 + $0xb60] sm:$0xff] %v1246_v55  ;;  %2143 = vst [vmem:[%s3123_s22 + $0xb70] sm:$0xff] %v1247_v56  ;;  %v1310_v55 = vld [vmem:[%s3112_s19 + $0x7b0] sm:$0xff]  ;;  %v1311_v56 = vld [vmem:[%s3112_s19 + $0x7b8] sm:$0xff] }
 0x24b   : > { %2144 = vst [vmem:[%s3123_s22 + $0xb80] sm:$0xff] %v1248_v57  ;;  %2145 = vst [vmem:[%s3123_s22 + $0xb90] sm:$0xff] %v1249_v58  ;;  %v1312_v57 = vld [vmem:[%s3112_s19 + $0x7c0] sm:$0xff]  ;;  %v1313_v58 = vld [vmem:[%s3112_s19 + $0x7c8] sm:$0xff] }
 0x24c   : > { %2146 = vst [vmem:[%s3123_s22 + $0xba0] sm:$0xff] %v1250_v59  ;;  %2147 = vst [vmem:[%s3123_s22 + $0xbb0] sm:$0xff] %v1251_v60  ;;  %v1314_v59 = vld [vmem:[%s3112_s19 + $0x7d0] sm:$0xff]  ;;  %v1315_v60 = vld [vmem:[%s3112_s19 + $0x7d8] sm:$0xff] }
 0x24d   : > { %2148 = vst [vmem:[%s3123_s22 + $0xbc0] sm:$0xff] %v1252_v61  ;;  %2149 = vst [vmem:[%s3123_s22 + $0xbd0] sm:$0xff] %v1253_v62  ;;  %v1316_v61 = vld [vmem:[%s3112_s19 + $0x7e0] sm:$0xff]  ;;  %v1317_v62 = vld [vmem:[%s3112_s19 + $0x7e8] sm:$0xff] }
 0x24e   : > { %2150 = vst [vmem:[%s3123_s22 + $0xbe0] sm:$0xff] %v1254_v63  ;;  %2151 = vst [vmem:[%s3123_s22 + $0xbf0] sm:$0xff] %v1255_v0  ;;  %v1318_v63 = vld [vmem:[%s3112_s19 + $0x7f0] sm:$0xff]  ;;  %v1319_v0 = vld [vmem:[%s3112_s19 + $0x7f8] sm:$0xff] }
 0x24f   : > { %2152 = vst [vmem:[%s3123_s22 + $0xc00] sm:$0xff] %v1256_v1  ;;  %2153 = vst [vmem:[%s3123_s22 + $0xc10] sm:$0xff] %v1257_v2  ;;  %v1320_v1 = vld [vmem:[%s3112_s19 + $0x800] sm:$0xff]  ;;  %v1321_v2 = vld [vmem:[%s3112_s19 + $0x808] sm:$0xff] }
 0x250   : > { %2154 = vst [vmem:[%s3123_s22 + $0xc20] sm:$0xff] %v1258_v3  ;;  %2155 = vst [vmem:[%s3123_s22 + $0xc30] sm:$0xff] %v1259_v4  ;;  %v1322_v3 = vld [vmem:[%s3112_s19 + $0x810] sm:$0xff]  ;;  %v1323_v4 = vld [vmem:[%s3112_s19 + $0x818] sm:$0xff] }
 0x251   : > { %2156 = vst [vmem:[%s3123_s22 + $0xc40] sm:$0xff] %v1260_v5  ;;  %2157 = vst [vmem:[%s3123_s22 + $0xc50] sm:$0xff] %v1261_v6  ;;  %v1324_v5 = vld [vmem:[%s3112_s19 + $0x820] sm:$0xff]  ;;  %v1325_v6 = vld [vmem:[%s3112_s19 + $0x828] sm:$0xff] }
 0x252   : > { %2158 = vst [vmem:[%s3123_s22 + $0xc60] sm:$0xff] %v1262_v7  ;;  %2159 = vst [vmem:[%s3123_s22 + $0xc70] sm:$0xff] %v1263_v8  ;;  %v1326_v7 = vld [vmem:[%s3112_s19 + $0x830] sm:$0xff]  ;;  %v1327_v8 = vld [vmem:[%s3112_s19 + $0x838] sm:$0xff] }
 0x253   : > { %2160 = vst [vmem:[%s3123_s22 + $0xc80] sm:$0xff] %v1264_v9  ;;  %2161 = vst [vmem:[%s3123_s22 + $0xc90] sm:$0xff] %v1265_v10  ;;  %v1328_v9 = vld [vmem:[%s3112_s19 + $0x840] sm:$0xff]  ;;  %v1329_v10 = vld [vmem:[%s3112_s19 + $0x848] sm:$0xff] }
 0x254   : > { %2162 = vst [vmem:[%s3123_s22 + $0xca0] sm:$0xff] %v1266_v11  ;;  %2163 = vst [vmem:[%s3123_s22 + $0xcb0] sm:$0xff] %v1267_v12  ;;  %v1330_v11 = vld [vmem:[%s3112_s19 + $0x850] sm:$0xff]  ;;  %v1331_v12 = vld [vmem:[%s3112_s19 + $0x858] sm:$0xff] }
 0x255   : > { %2164 = vst [vmem:[%s3123_s22 + $0xcc0] sm:$0xff] %v1268_v13  ;;  %2165 = vst [vmem:[%s3123_s22 + $0xcd0] sm:$0xff] %v1269_v14  ;;  %v1332_v13 = vld [vmem:[%s3112_s19 + $0x860] sm:$0xff]  ;;  %v1333_v14 = vld [vmem:[%s3112_s19 + $0x868] sm:$0xff] }
 0x256   : > { %2166 = vst [vmem:[%s3123_s22 + $0xce0] sm:$0xff] %v1270_v15  ;;  %2167 = vst [vmem:[%s3123_s22 + $0xcf0] sm:$0xff] %v1271_v16  ;;  %v1334_v15 = vld [vmem:[%s3112_s19 + $0x870] sm:$0xff]  ;;  %v1335_v16 = vld [vmem:[%s3112_s19 + $0x878] sm:$0xff] }
 0x257   : > { %2168 = vst [vmem:[%s3123_s22 + $0xd00] sm:$0xff] %v1272_v17  ;;  %2169 = vst [vmem:[%s3123_s22 + $0xd10] sm:$0xff] %v1273_v18  ;;  %v1336_v17 = vld [vmem:[%s3112_s19 + $0x880] sm:$0xff]  ;;  %v1337_v18 = vld [vmem:[%s3112_s19 + $0x888] sm:$0xff] }
 0x258   : > { %2170 = vst [vmem:[%s3123_s22 + $0xd20] sm:$0xff] %v1274_v19  ;;  %2171 = vst [vmem:[%s3123_s22 + $0xd30] sm:$0xff] %v1275_v20  ;;  %v1338_v19 = vld [vmem:[%s3112_s19 + $0x890] sm:$0xff]  ;;  %v1339_v20 = vld [vmem:[%s3112_s19 + $0x898] sm:$0xff] }
 0x259   : > { %2172 = vst [vmem:[%s3123_s22 + $0xd40] sm:$0xff] %v1276_v21  ;;  %2173 = vst [vmem:[%s3123_s22 + $0xd50] sm:$0xff] %v1277_v22  ;;  %v1340_v21 = vld [vmem:[%s3112_s19 + $0x8a0] sm:$0xff]  ;;  %v1341_v22 = vld [vmem:[%s3112_s19 + $0x8a8] sm:$0xff] }
 0x25a   : > { %2174 = vst [vmem:[%s3123_s22 + $0xd60] sm:$0xff] %v1278_v23  ;;  %2175 = vst [vmem:[%s3123_s22 + $0xd70] sm:$0xff] %v1279_v24  ;;  %v1342_v23 = vld [vmem:[%s3112_s19 + $0x8b0] sm:$0xff]  ;;  %v1343_v24 = vld [vmem:[%s3112_s19 + $0x8b8] sm:$0xff] }
 0x25b   : > { %2176 = vst [vmem:[%s3123_s22 + $0xd80] sm:$0xff] %v1280_v25  ;;  %2177 = vst [vmem:[%s3123_s22 + $0xd90] sm:$0xff] %v1281_v26  ;;  %v1344_v25 = vld [vmem:[%s3112_s19 + $0x8c0] sm:$0xff]  ;;  %v1345_v26 = vld [vmem:[%s3112_s19 + $0x8c8] sm:$0xff] }
 0x25c   : > { %2178 = vst [vmem:[%s3123_s22 + $0xda0] sm:$0xff] %v1282_v27  ;;  %2179 = vst [vmem:[%s3123_s22 + $0xdb0] sm:$0xff] %v1283_v28  ;;  %v1346_v27 = vld [vmem:[%s3112_s19 + $0x8d0] sm:$0xff]  ;;  %v1347_v28 = vld [vmem:[%s3112_s19 + $0x8d8] sm:$0xff] }
 0x25d   : > { %2180 = vst [vmem:[%s3123_s22 + $0xdc0] sm:$0xff] %v1284_v29  ;;  %2181 = vst [vmem:[%s3123_s22 + $0xdd0] sm:$0xff] %v1285_v30  ;;  %v1348_v29 = vld [vmem:[%s3112_s19 + $0x8e0] sm:$0xff]  ;;  %v1349_v30 = vld [vmem:[%s3112_s19 + $0x8e8] sm:$0xff] }
 0x25e   : > { %2182 = vst [vmem:[%s3123_s22 + $0xde0] sm:$0xff] %v1286_v31  ;;  %2183 = vst [vmem:[%s3123_s22 + $0xdf0] sm:$0xff] %v1287_v32  ;;  %v1350_v31 = vld [vmem:[%s3112_s19 + $0x8f0] sm:$0xff]  ;;  %v1351_v32 = vld [vmem:[%s3112_s19 + $0x8f8] sm:$0xff] }
 0x25f   : > { %2184 = vst [vmem:[%s3123_s22 + $0xe00] sm:$0xff] %v1288_v33  ;;  %2185 = vst [vmem:[%s3123_s22 + $0xe10] sm:$0xff] %v1289_v34  ;;  %v1352_v33 = vld [vmem:[%s3112_s19 + $0x900] sm:$0xff]  ;;  %v1353_v34 = vld [vmem:[%s3112_s19 + $0x908] sm:$0xff] }
 0x260   : > { %2186 = vst [vmem:[%s3123_s22 + $0xe20] sm:$0xff] %v1290_v35  ;;  %2187 = vst [vmem:[%s3123_s22 + $0xe30] sm:$0xff] %v1291_v36  ;;  %v1354_v35 = vld [vmem:[%s3112_s19 + $0x910] sm:$0xff]  ;;  %v1355_v36 = vld [vmem:[%s3112_s19 + $0x918] sm:$0xff] }
 0x261   : > { %2188 = vst [vmem:[%s3123_s22 + $0xe40] sm:$0xff] %v1292_v37  ;;  %2189 = vst [vmem:[%s3123_s22 + $0xe50] sm:$0xff] %v1293_v38  ;;  %v1356_v37 = vld [vmem:[%s3112_s19 + $0x920] sm:$0xff]  ;;  %v1357_v38 = vld [vmem:[%s3112_s19 + $0x928] sm:$0xff] }
 0x262   : > { %2190 = vst [vmem:[%s3123_s22 + $0xe60] sm:$0xff] %v1294_v39  ;;  %2191 = vst [vmem:[%s3123_s22 + $0xe70] sm:$0xff] %v1295_v40  ;;  %v1358_v39 = vld [vmem:[%s3112_s19 + $0x930] sm:$0xff]  ;;  %v1359_v40 = vld [vmem:[%s3112_s19 + $0x938] sm:$0xff] }
 0x263   : > { %2192 = vst [vmem:[%s3123_s22 + $0xe80] sm:$0xff] %v1296_v41  ;;  %2193 = vst [vmem:[%s3123_s22 + $0xe90] sm:$0xff] %v1297_v42  ;;  %v1360_v41 = vld [vmem:[%s3112_s19 + $0x940] sm:$0xff]  ;;  %v1361_v42 = vld [vmem:[%s3112_s19 + $0x948] sm:$0xff] }
 0x264   : > { %2194 = vst [vmem:[%s3123_s22 + $0xea0] sm:$0xff] %v1298_v43  ;;  %2195 = vst [vmem:[%s3123_s22 + $0xeb0] sm:$0xff] %v1299_v44  ;;  %v1362_v43 = vld [vmem:[%s3112_s19 + $0x950] sm:$0xff]  ;;  %v1363_v44 = vld [vmem:[%s3112_s19 + $0x958] sm:$0xff] }
 0x265   : > { %2196 = vst [vmem:[%s3123_s22 + $0xec0] sm:$0xff] %v1300_v45  ;;  %2197 = vst [vmem:[%s3123_s22 + $0xed0] sm:$0xff] %v1301_v46  ;;  %v1364_v45 = vld [vmem:[%s3112_s19 + $0x960] sm:$0xff]  ;;  %v1365_v46 = vld [vmem:[%s3112_s19 + $0x968] sm:$0xff] }
 0x266   : > { %2198 = vst [vmem:[%s3123_s22 + $0xee0] sm:$0xff] %v1302_v47  ;;  %2199 = vst [vmem:[%s3123_s22 + $0xef0] sm:$0xff] %v1303_v48  ;;  %v1366_v47 = vld [vmem:[%s3112_s19 + $0x970] sm:$0xff]  ;;  %v1367_v48 = vld [vmem:[%s3112_s19 + $0x978] sm:$0xff] }
 0x267   : > { %2200 = vst [vmem:[%s3123_s22 + $0xf00] sm:$0xff] %v1304_v49  ;;  %2201 = vst [vmem:[%s3123_s22 + $0xf10] sm:$0xff] %v1305_v50  ;;  %v1368_v49 = vld [vmem:[%s3112_s19 + $0x980] sm:$0xff]  ;;  %v1369_v50 = vld [vmem:[%s3112_s19 + $0x988] sm:$0xff] }
 0x268   : > { %2202 = vst [vmem:[%s3123_s22 + $0xf20] sm:$0xff] %v1306_v51  ;;  %2203 = vst [vmem:[%s3123_s22 + $0xf30] sm:$0xff] %v1307_v52  ;;  %v1370_v51 = vld [vmem:[%s3112_s19 + $0x990] sm:$0xff]  ;;  %v1371_v52 = vld [vmem:[%s3112_s19 + $0x998] sm:$0xff] }
 0x269   : > { %2204 = vst [vmem:[%s3123_s22 + $0xf40] sm:$0xff] %v1308_v53  ;;  %2205 = vst [vmem:[%s3123_s22 + $0xf50] sm:$0xff] %v1309_v54  ;;  %v1372_v53 = vld [vmem:[%s3112_s19 + $0x9a0] sm:$0xff]  ;;  %v1373_v54 = vld [vmem:[%s3112_s19 + $0x9a8] sm:$0xff] }
 0x26a   : > { %2206 = vst [vmem:[%s3123_s22 + $0xf60] sm:$0xff] %v1310_v55  ;;  %2207 = vst [vmem:[%s3123_s22 + $0xf70] sm:$0xff] %v1311_v56  ;;  %v1374_v55 = vld [vmem:[%s3112_s19 + $0x9b0] sm:$0xff]  ;;  %v1375_v56 = vld [vmem:[%s3112_s19 + $0x9b8] sm:$0xff] }
 0x26b   : > { %2208 = vst [vmem:[%s3123_s22 + $0xf80] sm:$0xff] %v1312_v57  ;;  %2209 = vst [vmem:[%s3123_s22 + $0xf90] sm:$0xff] %v1313_v58  ;;  %v1376_v57 = vld [vmem:[%s3112_s19 + $0x9c0] sm:$0xff]  ;;  %v1377_v58 = vld [vmem:[%s3112_s19 + $0x9c8] sm:$0xff] }
 0x26c   : > { %2210 = vst [vmem:[%s3123_s22 + $0xfa0] sm:$0xff] %v1314_v59  ;;  %2211 = vst [vmem:[%s3123_s22 + $0xfb0] sm:$0xff] %v1315_v60  ;;  %v1378_v59 = vld [vmem:[%s3112_s19 + $0x9d0] sm:$0xff]  ;;  %v1379_v60 = vld [vmem:[%s3112_s19 + $0x9d8] sm:$0xff] }
 0x26d   : > { %2212 = vst [vmem:[%s3123_s22 + $0xfc0] sm:$0xff] %v1316_v61  ;;  %2213 = vst [vmem:[%s3123_s22 + $0xfd0] sm:$0xff] %v1317_v62  ;;  %v1380_v61 = vld [vmem:[%s3112_s19 + $0x9e0] sm:$0xff]  ;;  %v1381_v62 = vld [vmem:[%s3112_s19 + $0x9e8] sm:$0xff] }
 0x26e   : > { %2214 = vst [vmem:[%s3123_s22 + $0xfe0] sm:$0xff] %v1318_v63  ;;  %2215 = vst [vmem:[%s3123_s22 + $0xff0] sm:$0xff] %v1319_v0  ;;  %v1382_v63 = vld [vmem:[%s3112_s19 + $0x9f0] sm:$0xff]  ;;  %v1383_v0 = vld [vmem:[%s3112_s19 + $0x9f8] sm:$0xff] }
 0x26f   : > { %2216 = vst [vmem:[%s3123_s22 + $0x1000] sm:$0xff] %v1320_v1  ;;  %2217 = vst [vmem:[%s3123_s22 + $0x1010] sm:$0xff] %v1321_v2  ;;  %v1384_v1 = vld [vmem:[%s3112_s19 + $0xa00] sm:$0xff]  ;;  %v1385_v2 = vld [vmem:[%s3112_s19 + $0xa08] sm:$0xff] }
 0x270   : > { %2218 = vst [vmem:[%s3123_s22 + $0x1020] sm:$0xff] %v1322_v3  ;;  %2219 = vst [vmem:[%s3123_s22 + $0x1030] sm:$0xff] %v1323_v4  ;;  %v1386_v3 = vld [vmem:[%s3112_s19 + $0xa10] sm:$0xff]  ;;  %v1387_v4 = vld [vmem:[%s3112_s19 + $0xa18] sm:$0xff] }
 0x271   : > { %2220 = vst [vmem:[%s3123_s22 + $0x1040] sm:$0xff] %v1324_v5  ;;  %2221 = vst [vmem:[%s3123_s22 + $0x1050] sm:$0xff] %v1325_v6  ;;  %v1388_v5 = vld [vmem:[%s3112_s19 + $0xa20] sm:$0xff]  ;;  %v1389_v6 = vld [vmem:[%s3112_s19 + $0xa28] sm:$0xff] }
 0x272   : > { %2222 = vst [vmem:[%s3123_s22 + $0x1060] sm:$0xff] %v1326_v7  ;;  %2223 = vst [vmem:[%s3123_s22 + $0x1070] sm:$0xff] %v1327_v8  ;;  %v1390_v7 = vld [vmem:[%s3112_s19 + $0xa30] sm:$0xff]  ;;  %v1391_v8 = vld [vmem:[%s3112_s19 + $0xa38] sm:$0xff] }
 0x273   : > { %2224 = vst [vmem:[%s3123_s22 + $0x1080] sm:$0xff] %v1328_v9  ;;  %2225 = vst [vmem:[%s3123_s22 + $0x1090] sm:$0xff] %v1329_v10  ;;  %v1392_v9 = vld [vmem:[%s3112_s19 + $0xa40] sm:$0xff]  ;;  %v1393_v10 = vld [vmem:[%s3112_s19 + $0xa48] sm:$0xff] }
 0x274   : > { %2226 = vst [vmem:[%s3123_s22 + $0x10a0] sm:$0xff] %v1330_v11  ;;  %2227 = vst [vmem:[%s3123_s22 + $0x10b0] sm:$0xff] %v1331_v12  ;;  %v1394_v11 = vld [vmem:[%s3112_s19 + $0xa50] sm:$0xff]  ;;  %v1395_v12 = vld [vmem:[%s3112_s19 + $0xa58] sm:$0xff] }
 0x275   : > { %2228 = vst [vmem:[%s3123_s22 + $0x10c0] sm:$0xff] %v1332_v13  ;;  %2229 = vst [vmem:[%s3123_s22 + $0x10d0] sm:$0xff] %v1333_v14  ;;  %v1396_v13 = vld [vmem:[%s3112_s19 + $0xa60] sm:$0xff]  ;;  %v1397_v14 = vld [vmem:[%s3112_s19 + $0xa68] sm:$0xff] }
 0x276   : > { %2230 = vst [vmem:[%s3123_s22 + $0x10e0] sm:$0xff] %v1334_v15  ;;  %2231 = vst [vmem:[%s3123_s22 + $0x10f0] sm:$0xff] %v1335_v16  ;;  %v1398_v15 = vld [vmem:[%s3112_s19 + $0xa70] sm:$0xff]  ;;  %v1399_v16 = vld [vmem:[%s3112_s19 + $0xa78] sm:$0xff] }
 0x277   : > { %2232 = vst [vmem:[%s3123_s22 + $0x1100] sm:$0xff] %v1336_v17  ;;  %2233 = vst [vmem:[%s3123_s22 + $0x1110] sm:$0xff] %v1337_v18  ;;  %v1400_v17 = vld [vmem:[%s3112_s19 + $0xa80] sm:$0xff]  ;;  %v1401_v18 = vld [vmem:[%s3112_s19 + $0xa88] sm:$0xff] }
 0x278   : > { %2234 = vst [vmem:[%s3123_s22 + $0x1120] sm:$0xff] %v1338_v19  ;;  %2235 = vst [vmem:[%s3123_s22 + $0x1130] sm:$0xff] %v1339_v20  ;;  %v1402_v19 = vld [vmem:[%s3112_s19 + $0xa90] sm:$0xff]  ;;  %v1403_v20 = vld [vmem:[%s3112_s19 + $0xa98] sm:$0xff] }
 0x279   : > { %2236 = vst [vmem:[%s3123_s22 + $0x1140] sm:$0xff] %v1340_v21  ;;  %2237 = vst [vmem:[%s3123_s22 + $0x1150] sm:$0xff] %v1341_v22  ;;  %v1404_v21 = vld [vmem:[%s3112_s19 + $0xaa0] sm:$0xff]  ;;  %v1405_v22 = vld [vmem:[%s3112_s19 + $0xaa8] sm:$0xff] }
 0x27a   : > { %2238 = vst [vmem:[%s3123_s22 + $0x1160] sm:$0xff] %v1342_v23  ;;  %2239 = vst [vmem:[%s3123_s22 + $0x1170] sm:$0xff] %v1343_v24  ;;  %v1406_v23 = vld [vmem:[%s3112_s19 + $0xab0] sm:$0xff]  ;;  %v1407_v24 = vld [vmem:[%s3112_s19 + $0xab8] sm:$0xff] }
 0x27b   : > { %2240 = vst [vmem:[%s3123_s22 + $0x1180] sm:$0xff] %v1344_v25  ;;  %2241 = vst [vmem:[%s3123_s22 + $0x1190] sm:$0xff] %v1345_v26  ;;  %v1408_v25 = vld [vmem:[%s3112_s19 + $0xac0] sm:$0xff]  ;;  %v1409_v26 = vld [vmem:[%s3112_s19 + $0xac8] sm:$0xff] }
 0x27c   : > { %2242 = vst [vmem:[%s3123_s22 + $0x11a0] sm:$0xff] %v1346_v27  ;;  %2243 = vst [vmem:[%s3123_s22 + $0x11b0] sm:$0xff] %v1347_v28  ;;  %v1410_v27 = vld [vmem:[%s3112_s19 + $0xad0] sm:$0xff]  ;;  %v1411_v28 = vld [vmem:[%s3112_s19 + $0xad8] sm:$0xff] }
 0x27d   : > { %2244 = vst [vmem:[%s3123_s22 + $0x11c0] sm:$0xff] %v1348_v29  ;;  %2245 = vst [vmem:[%s3123_s22 + $0x11d0] sm:$0xff] %v1349_v30  ;;  %v1412_v29 = vld [vmem:[%s3112_s19 + $0xae0] sm:$0xff]  ;;  %v1413_v30 = vld [vmem:[%s3112_s19 + $0xae8] sm:$0xff] }
 0x27e   : > { %2246 = vst [vmem:[%s3123_s22 + $0x11e0] sm:$0xff] %v1350_v31  ;;  %2247 = vst [vmem:[%s3123_s22 + $0x11f0] sm:$0xff] %v1351_v32  ;;  %v1414_v31 = vld [vmem:[%s3112_s19 + $0xaf0] sm:$0xff]  ;;  %v1415_v32 = vld [vmem:[%s3112_s19 + $0xaf8] sm:$0xff] }
 0x27f   : > { %2248 = vst [vmem:[%s3123_s22 + $0x1200] sm:$0xff] %v1352_v33  ;;  %2249 = vst [vmem:[%s3123_s22 + $0x1210] sm:$0xff] %v1353_v34  ;;  %v1416_v33 = vld [vmem:[%s3112_s19 + $0xb00] sm:$0xff]  ;;  %v1417_v34 = vld [vmem:[%s3112_s19 + $0xb08] sm:$0xff] }
 0x280   : > { %2250 = vst [vmem:[%s3123_s22 + $0x1220] sm:$0xff] %v1354_v35  ;;  %2251 = vst [vmem:[%s3123_s22 + $0x1230] sm:$0xff] %v1355_v36  ;;  %v1418_v35 = vld [vmem:[%s3112_s19 + $0xb10] sm:$0xff]  ;;  %v1419_v36 = vld [vmem:[%s3112_s19 + $0xb18] sm:$0xff] }
 0x281   : > { %2252 = vst [vmem:[%s3123_s22 + $0x1240] sm:$0xff] %v1356_v37  ;;  %2253 = vst [vmem:[%s3123_s22 + $0x1250] sm:$0xff] %v1357_v38  ;;  %v1420_v37 = vld [vmem:[%s3112_s19 + $0xb20] sm:$0xff]  ;;  %v1421_v38 = vld [vmem:[%s3112_s19 + $0xb28] sm:$0xff] }
 0x282   : > { %2254 = vst [vmem:[%s3123_s22 + $0x1260] sm:$0xff] %v1358_v39  ;;  %2255 = vst [vmem:[%s3123_s22 + $0x1270] sm:$0xff] %v1359_v40  ;;  %v1422_v39 = vld [vmem:[%s3112_s19 + $0xb30] sm:$0xff]  ;;  %v1423_v40 = vld [vmem:[%s3112_s19 + $0xb38] sm:$0xff] }
 0x283   : > { %2256 = vst [vmem:[%s3123_s22 + $0x1280] sm:$0xff] %v1360_v41  ;;  %2257 = vst [vmem:[%s3123_s22 + $0x1290] sm:$0xff] %v1361_v42  ;;  %v1424_v41 = vld [vmem:[%s3112_s19 + $0xb40] sm:$0xff]  ;;  %v1425_v42 = vld [vmem:[%s3112_s19 + $0xb48] sm:$0xff] }
 0x284   : > { %2258 = vst [vmem:[%s3123_s22 + $0x12a0] sm:$0xff] %v1362_v43  ;;  %2259 = vst [vmem:[%s3123_s22 + $0x12b0] sm:$0xff] %v1363_v44  ;;  %v1426_v43 = vld [vmem:[%s3112_s19 + $0xb50] sm:$0xff]  ;;  %v1427_v44 = vld [vmem:[%s3112_s19 + $0xb58] sm:$0xff] }
 0x285   : > { %2260 = vst [vmem:[%s3123_s22 + $0x12c0] sm:$0xff] %v1364_v45  ;;  %2261 = vst [vmem:[%s3123_s22 + $0x12d0] sm:$0xff] %v1365_v46  ;;  %v1428_v45 = vld [vmem:[%s3112_s19 + $0xb60] sm:$0xff]  ;;  %v1429_v46 = vld [vmem:[%s3112_s19 + $0xb68] sm:$0xff] }
 0x286   : > { %2262 = vst [vmem:[%s3123_s22 + $0x12e0] sm:$0xff] %v1366_v47  ;;  %2263 = vst [vmem:[%s3123_s22 + $0x12f0] sm:$0xff] %v1367_v48  ;;  %v1430_v47 = vld [vmem:[%s3112_s19 + $0xb70] sm:$0xff]  ;;  %v1431_v48 = vld [vmem:[%s3112_s19 + $0xb78] sm:$0xff] }
 0x287   : > { %2264 = vst [vmem:[%s3123_s22 + $0x1300] sm:$0xff] %v1368_v49  ;;  %2265 = vst [vmem:[%s3123_s22 + $0x1310] sm:$0xff] %v1369_v50  ;;  %v1432_v49 = vld [vmem:[%s3112_s19 + $0xb80] sm:$0xff]  ;;  %v1433_v50 = vld [vmem:[%s3112_s19 + $0xb88] sm:$0xff] }
 0x288   : > { %2266 = vst [vmem:[%s3123_s22 + $0x1320] sm:$0xff] %v1370_v51  ;;  %2267 = vst [vmem:[%s3123_s22 + $0x1330] sm:$0xff] %v1371_v52  ;;  %v1434_v51 = vld [vmem:[%s3112_s19 + $0xb90] sm:$0xff]  ;;  %v1435_v52 = vld [vmem:[%s3112_s19 + $0xb98] sm:$0xff] }
 0x289   : > { %2268 = vst [vmem:[%s3123_s22 + $0x1340] sm:$0xff] %v1372_v53  ;;  %2269 = vst [vmem:[%s3123_s22 + $0x1350] sm:$0xff] %v1373_v54  ;;  %v1436_v53 = vld [vmem:[%s3112_s19 + $0xba0] sm:$0xff]  ;;  %v1437_v54 = vld [vmem:[%s3112_s19 + $0xba8] sm:$0xff] }
 0x28a   : > { %2270 = vst [vmem:[%s3123_s22 + $0x1360] sm:$0xff] %v1374_v55  ;;  %2271 = vst [vmem:[%s3123_s22 + $0x1370] sm:$0xff] %v1375_v56  ;;  %v1438_v55 = vld [vmem:[%s3112_s19 + $0xbb0] sm:$0xff]  ;;  %v1439_v56 = vld [vmem:[%s3112_s19 + $0xbb8] sm:$0xff] }
 0x28b   : > { %2272 = vst [vmem:[%s3123_s22 + $0x1380] sm:$0xff] %v1376_v57  ;;  %2273 = vst [vmem:[%s3123_s22 + $0x1390] sm:$0xff] %v1377_v58  ;;  %v1440_v57 = vld [vmem:[%s3112_s19 + $0xbc0] sm:$0xff]  ;;  %v1441_v58 = vld [vmem:[%s3112_s19 + $0xbc8] sm:$0xff] }
 0x28c   : > { %2274 = vst [vmem:[%s3123_s22 + $0x13a0] sm:$0xff] %v1378_v59  ;;  %2275 = vst [vmem:[%s3123_s22 + $0x13b0] sm:$0xff] %v1379_v60  ;;  %v1442_v59 = vld [vmem:[%s3112_s19 + $0xbd0] sm:$0xff]  ;;  %v1443_v60 = vld [vmem:[%s3112_s19 + $0xbd8] sm:$0xff] }
 0x28d   : > { %2276 = vst [vmem:[%s3123_s22 + $0x13c0] sm:$0xff] %v1380_v61  ;;  %2277 = vst [vmem:[%s3123_s22 + $0x13d0] sm:$0xff] %v1381_v62  ;;  %v1444_v61 = vld [vmem:[%s3112_s19 + $0xbe0] sm:$0xff]  ;;  %v1445_v62 = vld [vmem:[%s3112_s19 + $0xbe8] sm:$0xff] }
 0x28e   : > { %2278 = vst [vmem:[%s3123_s22 + $0x13e0] sm:$0xff] %v1382_v63  ;;  %2279 = vst [vmem:[%s3123_s22 + $0x13f0] sm:$0xff] %v1383_v0  ;;  %v1446_v63 = vld [vmem:[%s3112_s19 + $0xbf0] sm:$0xff]  ;;  %v1447_v0 = vld [vmem:[%s3112_s19 + $0xbf8] sm:$0xff] }
 0x28f   : > { %2280 = vst [vmem:[%s3123_s22 + $0x1400] sm:$0xff] %v1384_v1  ;;  %2281 = vst [vmem:[%s3123_s22 + $0x1410] sm:$0xff] %v1385_v2  ;;  %v1448_v1 = vld [vmem:[%s3112_s19 + $0xc00] sm:$0xff]  ;;  %v1449_v2 = vld [vmem:[%s3112_s19 + $0xc08] sm:$0xff] }
 0x290   : > { %2282 = vst [vmem:[%s3123_s22 + $0x1420] sm:$0xff] %v1386_v3  ;;  %2283 = vst [vmem:[%s3123_s22 + $0x1430] sm:$0xff] %v1387_v4  ;;  %v1450_v3 = vld [vmem:[%s3112_s19 + $0xc10] sm:$0xff]  ;;  %v1451_v4 = vld [vmem:[%s3112_s19 + $0xc18] sm:$0xff] }
 0x291   : > { %2284 = vst [vmem:[%s3123_s22 + $0x1440] sm:$0xff] %v1388_v5  ;;  %2285 = vst [vmem:[%s3123_s22 + $0x1450] sm:$0xff] %v1389_v6  ;;  %v1452_v5 = vld [vmem:[%s3112_s19 + $0xc20] sm:$0xff]  ;;  %v1453_v6 = vld [vmem:[%s3112_s19 + $0xc28] sm:$0xff] }
 0x292   : > { %2286 = vst [vmem:[%s3123_s22 + $0x1460] sm:$0xff] %v1390_v7  ;;  %2287 = vst [vmem:[%s3123_s22 + $0x1470] sm:$0xff] %v1391_v8  ;;  %v1454_v7 = vld [vmem:[%s3112_s19 + $0xc30] sm:$0xff]  ;;  %v1455_v8 = vld [vmem:[%s3112_s19 + $0xc38] sm:$0xff] }
 0x293   : > { %2288 = vst [vmem:[%s3123_s22 + $0x1480] sm:$0xff] %v1392_v9  ;;  %2289 = vst [vmem:[%s3123_s22 + $0x1490] sm:$0xff] %v1393_v10  ;;  %v1456_v9 = vld [vmem:[%s3112_s19 + $0xc40] sm:$0xff]  ;;  %v1457_v10 = vld [vmem:[%s3112_s19 + $0xc48] sm:$0xff] }
 0x294   : > { %2290 = vst [vmem:[%s3123_s22 + $0x14a0] sm:$0xff] %v1394_v11  ;;  %2291 = vst [vmem:[%s3123_s22 + $0x14b0] sm:$0xff] %v1395_v12  ;;  %v1458_v11 = vld [vmem:[%s3112_s19 + $0xc50] sm:$0xff]  ;;  %v1459_v12 = vld [vmem:[%s3112_s19 + $0xc58] sm:$0xff] }
 0x295   : > { %2292 = vst [vmem:[%s3123_s22 + $0x14c0] sm:$0xff] %v1396_v13  ;;  %2293 = vst [vmem:[%s3123_s22 + $0x14d0] sm:$0xff] %v1397_v14  ;;  %v1460_v13 = vld [vmem:[%s3112_s19 + $0xc60] sm:$0xff]  ;;  %v1461_v14 = vld [vmem:[%s3112_s19 + $0xc68] sm:$0xff] }
 0x296   : > { %2294 = vst [vmem:[%s3123_s22 + $0x14e0] sm:$0xff] %v1398_v15  ;;  %2295 = vst [vmem:[%s3123_s22 + $0x14f0] sm:$0xff] %v1399_v16  ;;  %v1462_v15 = vld [vmem:[%s3112_s19 + $0xc70] sm:$0xff]  ;;  %v1463_v16 = vld [vmem:[%s3112_s19 + $0xc78] sm:$0xff] }
 0x297   : > { %2296 = vst [vmem:[%s3123_s22 + $0x1500] sm:$0xff] %v1400_v17  ;;  %2297 = vst [vmem:[%s3123_s22 + $0x1510] sm:$0xff] %v1401_v18  ;;  %v1464_v17 = vld [vmem:[%s3112_s19 + $0xc80] sm:$0xff]  ;;  %v1465_v18 = vld [vmem:[%s3112_s19 + $0xc88] sm:$0xff] }
 0x298   : > { %2298 = vst [vmem:[%s3123_s22 + $0x1520] sm:$0xff] %v1402_v19  ;;  %2299 = vst [vmem:[%s3123_s22 + $0x1530] sm:$0xff] %v1403_v20  ;;  %v1466_v19 = vld [vmem:[%s3112_s19 + $0xc90] sm:$0xff]  ;;  %v1467_v20 = vld [vmem:[%s3112_s19 + $0xc98] sm:$0xff] }
 0x299   : > { %2300 = vst [vmem:[%s3123_s22 + $0x1540] sm:$0xff] %v1404_v21  ;;  %2301 = vst [vmem:[%s3123_s22 + $0x1550] sm:$0xff] %v1405_v22  ;;  %v1468_v21 = vld [vmem:[%s3112_s19 + $0xca0] sm:$0xff]  ;;  %v1469_v22 = vld [vmem:[%s3112_s19 + $0xca8] sm:$0xff] }
 0x29a   : > { %2302 = vst [vmem:[%s3123_s22 + $0x1560] sm:$0xff] %v1406_v23  ;;  %2303 = vst [vmem:[%s3123_s22 + $0x1570] sm:$0xff] %v1407_v24  ;;  %v1470_v23 = vld [vmem:[%s3112_s19 + $0xcb0] sm:$0xff]  ;;  %v1471_v24 = vld [vmem:[%s3112_s19 + $0xcb8] sm:$0xff] }
 0x29b   : > { %2304 = vst [vmem:[%s3123_s22 + $0x1580] sm:$0xff] %v1408_v25  ;;  %2305 = vst [vmem:[%s3123_s22 + $0x1590] sm:$0xff] %v1409_v26  ;;  %v1472_v25 = vld [vmem:[%s3112_s19 + $0xcc0] sm:$0xff]  ;;  %v1473_v26 = vld [vmem:[%s3112_s19 + $0xcc8] sm:$0xff] }
 0x29c   : > { %2306 = vst [vmem:[%s3123_s22 + $0x15a0] sm:$0xff] %v1410_v27  ;;  %2307 = vst [vmem:[%s3123_s22 + $0x15b0] sm:$0xff] %v1411_v28  ;;  %v1474_v27 = vld [vmem:[%s3112_s19 + $0xcd0] sm:$0xff]  ;;  %v1475_v28 = vld [vmem:[%s3112_s19 + $0xcd8] sm:$0xff] }
 0x29d   : > { %2308 = vst [vmem:[%s3123_s22 + $0x15c0] sm:$0xff] %v1412_v29  ;;  %2309 = vst [vmem:[%s3123_s22 + $0x15d0] sm:$0xff] %v1413_v30  ;;  %v1476_v29 = vld [vmem:[%s3112_s19 + $0xce0] sm:$0xff]  ;;  %v1477_v30 = vld [vmem:[%s3112_s19 + $0xce8] sm:$0xff] }
 0x29e   : > { %2310 = vst [vmem:[%s3123_s22 + $0x15e0] sm:$0xff] %v1414_v31  ;;  %2311 = vst [vmem:[%s3123_s22 + $0x15f0] sm:$0xff] %v1415_v32  ;;  %v1478_v31 = vld [vmem:[%s3112_s19 + $0xcf0] sm:$0xff]  ;;  %v1479_v32 = vld [vmem:[%s3112_s19 + $0xcf8] sm:$0xff] }
 0x29f   : > { %2312 = vst [vmem:[%s3123_s22 + $0x1600] sm:$0xff] %v1416_v33  ;;  %2313 = vst [vmem:[%s3123_s22 + $0x1610] sm:$0xff] %v1417_v34  ;;  %v1480_v33 = vld [vmem:[%s3112_s19 + $0xd00] sm:$0xff]  ;;  %v1481_v34 = vld [vmem:[%s3112_s19 + $0xd08] sm:$0xff] }
 0x2a0   : > { %2314 = vst [vmem:[%s3123_s22 + $0x1620] sm:$0xff] %v1418_v35  ;;  %2315 = vst [vmem:[%s3123_s22 + $0x1630] sm:$0xff] %v1419_v36  ;;  %v1482_v35 = vld [vmem:[%s3112_s19 + $0xd10] sm:$0xff]  ;;  %v1483_v36 = vld [vmem:[%s3112_s19 + $0xd18] sm:$0xff] }
 0x2a1   : > { %2316 = vst [vmem:[%s3123_s22 + $0x1640] sm:$0xff] %v1420_v37  ;;  %2317 = vst [vmem:[%s3123_s22 + $0x1650] sm:$0xff] %v1421_v38  ;;  %v1484_v37 = vld [vmem:[%s3112_s19 + $0xd20] sm:$0xff]  ;;  %v1485_v38 = vld [vmem:[%s3112_s19 + $0xd28] sm:$0xff] }
 0x2a2   : > { %2318 = vst [vmem:[%s3123_s22 + $0x1660] sm:$0xff] %v1422_v39  ;;  %2319 = vst [vmem:[%s3123_s22 + $0x1670] sm:$0xff] %v1423_v40  ;;  %v1486_v39 = vld [vmem:[%s3112_s19 + $0xd30] sm:$0xff]  ;;  %v1487_v40 = vld [vmem:[%s3112_s19 + $0xd38] sm:$0xff] }
 0x2a3   : > { %2320 = vst [vmem:[%s3123_s22 + $0x1680] sm:$0xff] %v1424_v41  ;;  %2321 = vst [vmem:[%s3123_s22 + $0x1690] sm:$0xff] %v1425_v42  ;;  %v1488_v41 = vld [vmem:[%s3112_s19 + $0xd40] sm:$0xff]  ;;  %v1489_v42 = vld [vmem:[%s3112_s19 + $0xd48] sm:$0xff] }
 0x2a4   : > { %2322 = vst [vmem:[%s3123_s22 + $0x16a0] sm:$0xff] %v1426_v43  ;;  %2323 = vst [vmem:[%s3123_s22 + $0x16b0] sm:$0xff] %v1427_v44  ;;  %v1490_v43 = vld [vmem:[%s3112_s19 + $0xd50] sm:$0xff]  ;;  %v1491_v44 = vld [vmem:[%s3112_s19 + $0xd58] sm:$0xff] }
 0x2a5   : > { %2324 = vst [vmem:[%s3123_s22 + $0x16c0] sm:$0xff] %v1428_v45  ;;  %2325 = vst [vmem:[%s3123_s22 + $0x16d0] sm:$0xff] %v1429_v46  ;;  %v1492_v45 = vld [vmem:[%s3112_s19 + $0xd60] sm:$0xff]  ;;  %v1493_v46 = vld [vmem:[%s3112_s19 + $0xd68] sm:$0xff] }
 0x2a6   : > { %2326 = vst [vmem:[%s3123_s22 + $0x16e0] sm:$0xff] %v1430_v47  ;;  %2327 = vst [vmem:[%s3123_s22 + $0x16f0] sm:$0xff] %v1431_v48  ;;  %v1494_v47 = vld [vmem:[%s3112_s19 + $0xd70] sm:$0xff]  ;;  %v1495_v48 = vld [vmem:[%s3112_s19 + $0xd78] sm:$0xff] }
 0x2a7   : > { %2328 = vst [vmem:[%s3123_s22 + $0x1700] sm:$0xff] %v1432_v49  ;;  %2329 = vst [vmem:[%s3123_s22 + $0x1710] sm:$0xff] %v1433_v50  ;;  %v1496_v49 = vld [vmem:[%s3112_s19 + $0xd80] sm:$0xff]  ;;  %v1497_v50 = vld [vmem:[%s3112_s19 + $0xd88] sm:$0xff] }
 0x2a8   : > { %2330 = vst [vmem:[%s3123_s22 + $0x1720] sm:$0xff] %v1434_v51  ;;  %2331 = vst [vmem:[%s3123_s22 + $0x1730] sm:$0xff] %v1435_v52  ;;  %v1498_v51 = vld [vmem:[%s3112_s19 + $0xd90] sm:$0xff]  ;;  %v1499_v52 = vld [vmem:[%s3112_s19 + $0xd98] sm:$0xff] }
 0x2a9   : > { %2332 = vst [vmem:[%s3123_s22 + $0x1740] sm:$0xff] %v1436_v53  ;;  %2333 = vst [vmem:[%s3123_s22 + $0x1750] sm:$0xff] %v1437_v54  ;;  %v1500_v53 = vld [vmem:[%s3112_s19 + $0xda0] sm:$0xff]  ;;  %v1501_v54 = vld [vmem:[%s3112_s19 + $0xda8] sm:$0xff] }
 0x2aa   : > { %2334 = vst [vmem:[%s3123_s22 + $0x1760] sm:$0xff] %v1438_v55  ;;  %2335 = vst [vmem:[%s3123_s22 + $0x1770] sm:$0xff] %v1439_v56  ;;  %v1502_v55 = vld [vmem:[%s3112_s19 + $0xdb0] sm:$0xff]  ;;  %v1503_v56 = vld [vmem:[%s3112_s19 + $0xdb8] sm:$0xff] }
 0x2ab   : > { %2336 = vst [vmem:[%s3123_s22 + $0x1780] sm:$0xff] %v1440_v57  ;;  %2337 = vst [vmem:[%s3123_s22 + $0x1790] sm:$0xff] %v1441_v58  ;;  %v1504_v57 = vld [vmem:[%s3112_s19 + $0xdc0] sm:$0xff]  ;;  %v1505_v58 = vld [vmem:[%s3112_s19 + $0xdc8] sm:$0xff] }
 0x2ac   : > { %2338 = vst [vmem:[%s3123_s22 + $0x17a0] sm:$0xff] %v1442_v59  ;;  %2339 = vst [vmem:[%s3123_s22 + $0x17b0] sm:$0xff] %v1443_v60  ;;  %v1506_v59 = vld [vmem:[%s3112_s19 + $0xdd0] sm:$0xff]  ;;  %v1507_v60 = vld [vmem:[%s3112_s19 + $0xdd8] sm:$0xff] }
 0x2ad   : > { %2340 = vst [vmem:[%s3123_s22 + $0x17c0] sm:$0xff] %v1444_v61  ;;  %2341 = vst [vmem:[%s3123_s22 + $0x17d0] sm:$0xff] %v1445_v62  ;;  %v1508_v61 = vld [vmem:[%s3112_s19 + $0xde0] sm:$0xff]  ;;  %v1509_v62 = vld [vmem:[%s3112_s19 + $0xde8] sm:$0xff] }
 0x2ae   : > { %2342 = vst [vmem:[%s3123_s22 + $0x17e0] sm:$0xff] %v1446_v63  ;;  %2343 = vst [vmem:[%s3123_s22 + $0x17f0] sm:$0xff] %v1447_v0  ;;  %v1510_v63 = vld [vmem:[%s3112_s19 + $0xdf0] sm:$0xff]  ;;  %v1511_v0 = vld [vmem:[%s3112_s19 + $0xdf8] sm:$0xff] }
 0x2af   : > { %2344 = vst [vmem:[%s3123_s22 + $0x1800] sm:$0xff] %v1448_v1  ;;  %2345 = vst [vmem:[%s3123_s22 + $0x1810] sm:$0xff] %v1449_v2  ;;  %v1512_v1 = vld [vmem:[%s3112_s19 + $0xe00] sm:$0xff]  ;;  %v1513_v2 = vld [vmem:[%s3112_s19 + $0xe08] sm:$0xff] }
 0x2b0   : > { %2346 = vst [vmem:[%s3123_s22 + $0x1820] sm:$0xff] %v1450_v3  ;;  %2347 = vst [vmem:[%s3123_s22 + $0x1830] sm:$0xff] %v1451_v4  ;;  %v1514_v3 = vld [vmem:[%s3112_s19 + $0xe10] sm:$0xff]  ;;  %v1515_v4 = vld [vmem:[%s3112_s19 + $0xe18] sm:$0xff] }
 0x2b1   : > { %2348 = vst [vmem:[%s3123_s22 + $0x1840] sm:$0xff] %v1452_v5  ;;  %2349 = vst [vmem:[%s3123_s22 + $0x1850] sm:$0xff] %v1453_v6  ;;  %v1516_v5 = vld [vmem:[%s3112_s19 + $0xe20] sm:$0xff]  ;;  %v1517_v6 = vld [vmem:[%s3112_s19 + $0xe28] sm:$0xff] }
 0x2b2   : > { %2350 = vst [vmem:[%s3123_s22 + $0x1860] sm:$0xff] %v1454_v7  ;;  %2351 = vst [vmem:[%s3123_s22 + $0x1870] sm:$0xff] %v1455_v8  ;;  %v1518_v7 = vld [vmem:[%s3112_s19 + $0xe30] sm:$0xff]  ;;  %v1519_v8 = vld [vmem:[%s3112_s19 + $0xe38] sm:$0xff] }
 0x2b3   : > { %2352 = vst [vmem:[%s3123_s22 + $0x1880] sm:$0xff] %v1456_v9  ;;  %2353 = vst [vmem:[%s3123_s22 + $0x1890] sm:$0xff] %v1457_v10  ;;  %v1520_v9 = vld [vmem:[%s3112_s19 + $0xe40] sm:$0xff]  ;;  %v1521_v10 = vld [vmem:[%s3112_s19 + $0xe48] sm:$0xff] }
 0x2b4   : > { %2354 = vst [vmem:[%s3123_s22 + $0x18a0] sm:$0xff] %v1458_v11  ;;  %2355 = vst [vmem:[%s3123_s22 + $0x18b0] sm:$0xff] %v1459_v12  ;;  %v1522_v11 = vld [vmem:[%s3112_s19 + $0xe50] sm:$0xff]  ;;  %v1523_v12 = vld [vmem:[%s3112_s19 + $0xe58] sm:$0xff] }
 0x2b5   : > { %2356 = vst [vmem:[%s3123_s22 + $0x18c0] sm:$0xff] %v1460_v13  ;;  %2357 = vst [vmem:[%s3123_s22 + $0x18d0] sm:$0xff] %v1461_v14  ;;  %v1524_v13 = vld [vmem:[%s3112_s19 + $0xe60] sm:$0xff]  ;;  %v1525_v14 = vld [vmem:[%s3112_s19 + $0xe68] sm:$0xff] }
 0x2b6   : > { %2358 = vst [vmem:[%s3123_s22 + $0x18e0] sm:$0xff] %v1462_v15  ;;  %2359 = vst [vmem:[%s3123_s22 + $0x18f0] sm:$0xff] %v1463_v16  ;;  %v1526_v15 = vld [vmem:[%s3112_s19 + $0xe70] sm:$0xff]  ;;  %v1527_v16 = vld [vmem:[%s3112_s19 + $0xe78] sm:$0xff] }
 0x2b7   : > { %2360 = vst [vmem:[%s3123_s22 + $0x1900] sm:$0xff] %v1464_v17  ;;  %2361 = vst [vmem:[%s3123_s22 + $0x1910] sm:$0xff] %v1465_v18  ;;  %v1528_v17 = vld [vmem:[%s3112_s19 + $0xe80] sm:$0xff]  ;;  %v1529_v18 = vld [vmem:[%s3112_s19 + $0xe88] sm:$0xff] }
 0x2b8   : > { %2362 = vst [vmem:[%s3123_s22 + $0x1920] sm:$0xff] %v1466_v19  ;;  %2363 = vst [vmem:[%s3123_s22 + $0x1930] sm:$0xff] %v1467_v20  ;;  %v1530_v19 = vld [vmem:[%s3112_s19 + $0xe90] sm:$0xff]  ;;  %v1531_v20 = vld [vmem:[%s3112_s19 + $0xe98] sm:$0xff] }
 0x2b9   : > { %2364 = vst [vmem:[%s3123_s22 + $0x1940] sm:$0xff] %v1468_v21  ;;  %2365 = vst [vmem:[%s3123_s22 + $0x1950] sm:$0xff] %v1469_v22  ;;  %v1532_v21 = vld [vmem:[%s3112_s19 + $0xea0] sm:$0xff]  ;;  %v1533_v22 = vld [vmem:[%s3112_s19 + $0xea8] sm:$0xff] }
 0x2ba   : > { %2366 = vst [vmem:[%s3123_s22 + $0x1960] sm:$0xff] %v1470_v23  ;;  %2367 = vst [vmem:[%s3123_s22 + $0x1970] sm:$0xff] %v1471_v24  ;;  %v1534_v23 = vld [vmem:[%s3112_s19 + $0xeb0] sm:$0xff]  ;;  %v1535_v24 = vld [vmem:[%s3112_s19 + $0xeb8] sm:$0xff] }
 0x2bb   : > { %2368 = vst [vmem:[%s3123_s22 + $0x1980] sm:$0xff] %v1472_v25  ;;  %2369 = vst [vmem:[%s3123_s22 + $0x1990] sm:$0xff] %v1473_v26  ;;  %v1536_v25 = vld [vmem:[%s3112_s19 + $0xec0] sm:$0xff]  ;;  %v1537_v26 = vld [vmem:[%s3112_s19 + $0xec8] sm:$0xff] }
 0x2bc   : > { %2370 = vst [vmem:[%s3123_s22 + $0x19a0] sm:$0xff] %v1474_v27  ;;  %2371 = vst [vmem:[%s3123_s22 + $0x19b0] sm:$0xff] %v1475_v28  ;;  %v1538_v27 = vld [vmem:[%s3112_s19 + $0xed0] sm:$0xff]  ;;  %v1539_v28 = vld [vmem:[%s3112_s19 + $0xed8] sm:$0xff] }
 0x2bd   : > { %2372 = vst [vmem:[%s3123_s22 + $0x19c0] sm:$0xff] %v1476_v29  ;;  %2373 = vst [vmem:[%s3123_s22 + $0x19d0] sm:$0xff] %v1477_v30  ;;  %v1540_v29 = vld [vmem:[%s3112_s19 + $0xee0] sm:$0xff]  ;;  %v1541_v30 = vld [vmem:[%s3112_s19 + $0xee8] sm:$0xff] }
 0x2be   : > { %2374 = vst [vmem:[%s3123_s22 + $0x19e0] sm:$0xff] %v1478_v31  ;;  %2375 = vst [vmem:[%s3123_s22 + $0x19f0] sm:$0xff] %v1479_v32  ;;  %v1542_v31 = vld [vmem:[%s3112_s19 + $0xef0] sm:$0xff]  ;;  %v1543_v32 = vld [vmem:[%s3112_s19 + $0xef8] sm:$0xff] }
 0x2bf   : > { %2376 = vst [vmem:[%s3123_s22 + $0x1a00] sm:$0xff] %v1480_v33  ;;  %2377 = vst [vmem:[%s3123_s22 + $0x1a10] sm:$0xff] %v1481_v34  ;;  %v1544_v33 = vld [vmem:[%s3112_s19 + $0xf00] sm:$0xff]  ;;  %v1545_v34 = vld [vmem:[%s3112_s19 + $0xf08] sm:$0xff] }
 0x2c0   : > { %2378 = vst [vmem:[%s3123_s22 + $0x1a20] sm:$0xff] %v1482_v35  ;;  %2379 = vst [vmem:[%s3123_s22 + $0x1a30] sm:$0xff] %v1483_v36  ;;  %v1546_v35 = vld [vmem:[%s3112_s19 + $0xf10] sm:$0xff]  ;;  %v1547_v36 = vld [vmem:[%s3112_s19 + $0xf18] sm:$0xff] }
 0x2c1   : > { %2380 = vst [vmem:[%s3123_s22 + $0x1a40] sm:$0xff] %v1484_v37  ;;  %2381 = vst [vmem:[%s3123_s22 + $0x1a50] sm:$0xff] %v1485_v38  ;;  %v1548_v37 = vld [vmem:[%s3112_s19 + $0xf20] sm:$0xff]  ;;  %v1549_v38 = vld [vmem:[%s3112_s19 + $0xf28] sm:$0xff] }
 0x2c2   : > { %2382 = vst [vmem:[%s3123_s22 + $0x1a60] sm:$0xff] %v1486_v39  ;;  %2383 = vst [vmem:[%s3123_s22 + $0x1a70] sm:$0xff] %v1487_v40  ;;  %v1550_v39 = vld [vmem:[%s3112_s19 + $0xf30] sm:$0xff]  ;;  %v1551_v40 = vld [vmem:[%s3112_s19 + $0xf38] sm:$0xff] }
 0x2c3   : > { %2384 = vst [vmem:[%s3123_s22 + $0x1a80] sm:$0xff] %v1488_v41  ;;  %2385 = vst [vmem:[%s3123_s22 + $0x1a90] sm:$0xff] %v1489_v42  ;;  %v1552_v41 = vld [vmem:[%s3112_s19 + $0xf40] sm:$0xff]  ;;  %v1553_v42 = vld [vmem:[%s3112_s19 + $0xf48] sm:$0xff] }
 0x2c4   : > { %2386 = vst [vmem:[%s3123_s22 + $0x1aa0] sm:$0xff] %v1490_v43  ;;  %2387 = vst [vmem:[%s3123_s22 + $0x1ab0] sm:$0xff] %v1491_v44  ;;  %v1554_v43 = vld [vmem:[%s3112_s19 + $0xf50] sm:$0xff]  ;;  %v1555_v44 = vld [vmem:[%s3112_s19 + $0xf58] sm:$0xff] }
 0x2c5   : > { %2388 = vst [vmem:[%s3123_s22 + $0x1ac0] sm:$0xff] %v1492_v45  ;;  %2389 = vst [vmem:[%s3123_s22 + $0x1ad0] sm:$0xff] %v1493_v46  ;;  %v1556_v45 = vld [vmem:[%s3112_s19 + $0xf60] sm:$0xff]  ;;  %v1557_v46 = vld [vmem:[%s3112_s19 + $0xf68] sm:$0xff] }
 0x2c6   : > { %2390 = vst [vmem:[%s3123_s22 + $0x1ae0] sm:$0xff] %v1494_v47  ;;  %2391 = vst [vmem:[%s3123_s22 + $0x1af0] sm:$0xff] %v1495_v48  ;;  %v1558_v47 = vld [vmem:[%s3112_s19 + $0xf70] sm:$0xff]  ;;  %v1559_v48 = vld [vmem:[%s3112_s19 + $0xf78] sm:$0xff] }
 0x2c7   : > { %2392 = vst [vmem:[%s3123_s22 + $0x1b00] sm:$0xff] %v1496_v49  ;;  %2393 = vst [vmem:[%s3123_s22 + $0x1b10] sm:$0xff] %v1497_v50  ;;  %v1560_v49 = vld [vmem:[%s3112_s19 + $0xf80] sm:$0xff]  ;;  %v1561_v50 = vld [vmem:[%s3112_s19 + $0xf88] sm:$0xff] }
 0x2c8   : > { %2394 = vst [vmem:[%s3123_s22 + $0x1b20] sm:$0xff] %v1498_v51  ;;  %2395 = vst [vmem:[%s3123_s22 + $0x1b30] sm:$0xff] %v1499_v52  ;;  %v1562_v51 = vld [vmem:[%s3112_s19 + $0xf90] sm:$0xff]  ;;  %v1563_v52 = vld [vmem:[%s3112_s19 + $0xf98] sm:$0xff] }
 0x2c9   : > { %2396 = vst [vmem:[%s3123_s22 + $0x1b40] sm:$0xff] %v1500_v53  ;;  %2397 = vst [vmem:[%s3123_s22 + $0x1b50] sm:$0xff] %v1501_v54  ;;  %v1564_v53 = vld [vmem:[%s3112_s19 + $0xfa0] sm:$0xff]  ;;  %v1565_v54 = vld [vmem:[%s3112_s19 + $0xfa8] sm:$0xff] }
 0x2ca   : > { %2398 = vst [vmem:[%s3123_s22 + $0x1b60] sm:$0xff] %v1502_v55  ;;  %2399 = vst [vmem:[%s3123_s22 + $0x1b70] sm:$0xff] %v1503_v56  ;;  %v1566_v55 = vld [vmem:[%s3112_s19 + $0xfb0] sm:$0xff]  ;;  %v1567_v56 = vld [vmem:[%s3112_s19 + $0xfb8] sm:$0xff] }
 0x2cb   : > { %2400 = vst [vmem:[%s3123_s22 + $0x1b80] sm:$0xff] %v1504_v57  ;;  %2401 = vst [vmem:[%s3123_s22 + $0x1b90] sm:$0xff] %v1505_v58  ;;  %v1568_v57 = vld [vmem:[%s3112_s19 + $0xfc0] sm:$0xff]  ;;  %v1569_v58 = vld [vmem:[%s3112_s19 + $0xfc8] sm:$0xff] }
 0x2cc   : > { %2402 = vst [vmem:[%s3123_s22 + $0x1ba0] sm:$0xff] %v1506_v59  ;;  %2403 = vst [vmem:[%s3123_s22 + $0x1bb0] sm:$0xff] %v1507_v60  ;;  %v1570_v59 = vld [vmem:[%s3112_s19 + $0xfd0] sm:$0xff]  ;;  %v1571_v60 = vld [vmem:[%s3112_s19 + $0xfd8] sm:$0xff] }
 0x2cd   : > { %2404 = vst [vmem:[%s3123_s22 + $0x1bc0] sm:$0xff] %v1508_v61  ;;  %2405 = vst [vmem:[%s3123_s22 + $0x1bd0] sm:$0xff] %v1509_v62  ;;  %v1572_v61 = vld [vmem:[%s3112_s19 + $0xfe0] sm:$0xff]  ;;  %v1573_v62 = vld [vmem:[%s3112_s19 + $0xfe8] sm:$0xff] }
 0x2ce   : > { %2406 = vst [vmem:[%s3123_s22 + $0x1be0] sm:$0xff] %v1510_v63  ;;  %2407 = vst [vmem:[%s3123_s22 + $0x1bf0] sm:$0xff] %v1511_v0  ;;  %v1574_v63 = vld [vmem:[%s3112_s19 + $0xff0] sm:$0xff]  ;;  %v1575_v0 = vld [vmem:[%s3112_s19 + $0xff8] sm:$0xff] }
 0x2cf   : > { %2408 = vst [vmem:[%s3123_s22 + $0x1c00] sm:$0xff] %v1512_v1  ;;  %2409 = vst [vmem:[%s3123_s22 + $0x1c10] sm:$0xff] %v1513_v2  ;;  %v1576_v1 = vld [vmem:[%s3112_s19 + $0x1000] sm:$0xff]  ;;  %v1577_v2 = vld [vmem:[%s3112_s19 + $0x1008] sm:$0xff] }
 0x2d0   : > { %2410 = vst [vmem:[%s3123_s22 + $0x1c20] sm:$0xff] %v1514_v3  ;;  %2411 = vst [vmem:[%s3123_s22 + $0x1c30] sm:$0xff] %v1515_v4  ;;  %v1578_v3 = vld [vmem:[%s3112_s19 + $0x1010] sm:$0xff]  ;;  %v1579_v4 = vld [vmem:[%s3112_s19 + $0x1018] sm:$0xff] }
 0x2d1   : > { %2412 = vst [vmem:[%s3123_s22 + $0x1c40] sm:$0xff] %v1516_v5  ;;  %2413 = vst [vmem:[%s3123_s22 + $0x1c50] sm:$0xff] %v1517_v6  ;;  %v1580_v5 = vld [vmem:[%s3112_s19 + $0x1020] sm:$0xff]  ;;  %v1581_v6 = vld [vmem:[%s3112_s19 + $0x1028] sm:$0xff] }
 0x2d2   : > { %2414 = vst [vmem:[%s3123_s22 + $0x1c60] sm:$0xff] %v1518_v7  ;;  %2415 = vst [vmem:[%s3123_s22 + $0x1c70] sm:$0xff] %v1519_v8  ;;  %v1582_v7 = vld [vmem:[%s3112_s19 + $0x1030] sm:$0xff]  ;;  %v1583_v8 = vld [vmem:[%s3112_s19 + $0x1038] sm:$0xff] }
 0x2d3   : > { %2416 = vst [vmem:[%s3123_s22 + $0x1c80] sm:$0xff] %v1520_v9  ;;  %2417 = vst [vmem:[%s3123_s22 + $0x1c90] sm:$0xff] %v1521_v10  ;;  %v1584_v9 = vld [vmem:[%s3112_s19 + $0x1040] sm:$0xff]  ;;  %v1585_v10 = vld [vmem:[%s3112_s19 + $0x1048] sm:$0xff] }
 0x2d4   : > { %2418 = vst [vmem:[%s3123_s22 + $0x1ca0] sm:$0xff] %v1522_v11  ;;  %2419 = vst [vmem:[%s3123_s22 + $0x1cb0] sm:$0xff] %v1523_v12  ;;  %v1586_v11 = vld [vmem:[%s3112_s19 + $0x1050] sm:$0xff]  ;;  %v1587_v12 = vld [vmem:[%s3112_s19 + $0x1058] sm:$0xff] }
 0x2d5   : > { %2420 = vst [vmem:[%s3123_s22 + $0x1cc0] sm:$0xff] %v1524_v13  ;;  %2421 = vst [vmem:[%s3123_s22 + $0x1cd0] sm:$0xff] %v1525_v14  ;;  %v1588_v13 = vld [vmem:[%s3112_s19 + $0x1060] sm:$0xff]  ;;  %v1589_v14 = vld [vmem:[%s3112_s19 + $0x1068] sm:$0xff] }
 0x2d6   : > { %2422 = vst [vmem:[%s3123_s22 + $0x1ce0] sm:$0xff] %v1526_v15  ;;  %2423 = vst [vmem:[%s3123_s22 + $0x1cf0] sm:$0xff] %v1527_v16  ;;  %v1590_v15 = vld [vmem:[%s3112_s19 + $0x1070] sm:$0xff]  ;;  %v1591_v16 = vld [vmem:[%s3112_s19 + $0x1078] sm:$0xff] }
 0x2d7   : > { %2424 = vst [vmem:[%s3123_s22 + $0x1d00] sm:$0xff] %v1528_v17  ;;  %2425 = vst [vmem:[%s3123_s22 + $0x1d10] sm:$0xff] %v1529_v18  ;;  %v1592_v17 = vld [vmem:[%s3112_s19 + $0x1080] sm:$0xff]  ;;  %v1593_v18 = vld [vmem:[%s3112_s19 + $0x1088] sm:$0xff] }
 0x2d8   : > { %2426 = vst [vmem:[%s3123_s22 + $0x1d20] sm:$0xff] %v1530_v19  ;;  %2427 = vst [vmem:[%s3123_s22 + $0x1d30] sm:$0xff] %v1531_v20  ;;  %v1594_v19 = vld [vmem:[%s3112_s19 + $0x1090] sm:$0xff]  ;;  %v1595_v20 = vld [vmem:[%s3112_s19 + $0x1098] sm:$0xff] }
 0x2d9   : > { %2428 = vst [vmem:[%s3123_s22 + $0x1d40] sm:$0xff] %v1532_v21  ;;  %2429 = vst [vmem:[%s3123_s22 + $0x1d50] sm:$0xff] %v1533_v22  ;;  %v1596_v21 = vld [vmem:[%s3112_s19 + $0x10a0] sm:$0xff]  ;;  %v1597_v22 = vld [vmem:[%s3112_s19 + $0x10a8] sm:$0xff] }
 0x2da   : > { %2430 = vst [vmem:[%s3123_s22 + $0x1d60] sm:$0xff] %v1534_v23  ;;  %2431 = vst [vmem:[%s3123_s22 + $0x1d70] sm:$0xff] %v1535_v24  ;;  %v1598_v23 = vld [vmem:[%s3112_s19 + $0x10b0] sm:$0xff]  ;;  %v1599_v24 = vld [vmem:[%s3112_s19 + $0x10b8] sm:$0xff] }
 0x2db   : > { %2432 = vst [vmem:[%s3123_s22 + $0x1d80] sm:$0xff] %v1536_v25  ;;  %2433 = vst [vmem:[%s3123_s22 + $0x1d90] sm:$0xff] %v1537_v26  ;;  %v1600_v25 = vld [vmem:[%s3112_s19 + $0x10c0] sm:$0xff]  ;;  %v1601_v26 = vld [vmem:[%s3112_s19 + $0x10c8] sm:$0xff] }
 0x2dc   : > { %2434 = vst [vmem:[%s3123_s22 + $0x1da0] sm:$0xff] %v1538_v27  ;;  %2435 = vst [vmem:[%s3123_s22 + $0x1db0] sm:$0xff] %v1539_v28  ;;  %v1602_v27 = vld [vmem:[%s3112_s19 + $0x10d0] sm:$0xff]  ;;  %v1603_v28 = vld [vmem:[%s3112_s19 + $0x10d8] sm:$0xff] }
 0x2dd   : > { %2436 = vst [vmem:[%s3123_s22 + $0x1dc0] sm:$0xff] %v1540_v29  ;;  %2437 = vst [vmem:[%s3123_s22 + $0x1dd0] sm:$0xff] %v1541_v30  ;;  %v1604_v29 = vld [vmem:[%s3112_s19 + $0x10e0] sm:$0xff]  ;;  %v1605_v30 = vld [vmem:[%s3112_s19 + $0x10e8] sm:$0xff] }
 0x2de   : > { %2438 = vst [vmem:[%s3123_s22 + $0x1de0] sm:$0xff] %v1542_v31  ;;  %2439 = vst [vmem:[%s3123_s22 + $0x1df0] sm:$0xff] %v1543_v32  ;;  %v1606_v31 = vld [vmem:[%s3112_s19 + $0x10f0] sm:$0xff]  ;;  %v1607_v32 = vld [vmem:[%s3112_s19 + $0x10f8] sm:$0xff] }
 0x2df   : > { %2440 = vst [vmem:[%s3123_s22 + $0x1e00] sm:$0xff] %v1544_v33  ;;  %2441 = vst [vmem:[%s3123_s22 + $0x1e10] sm:$0xff] %v1545_v34  ;;  %v1608_v33 = vld [vmem:[%s3112_s19 + $0x1100] sm:$0xff]  ;;  %v1609_v34 = vld [vmem:[%s3112_s19 + $0x1108] sm:$0xff] }
 0x2e0   : > { %2442 = vst [vmem:[%s3123_s22 + $0x1e20] sm:$0xff] %v1546_v35  ;;  %2443 = vst [vmem:[%s3123_s22 + $0x1e30] sm:$0xff] %v1547_v36  ;;  %v1610_v35 = vld [vmem:[%s3112_s19 + $0x1110] sm:$0xff]  ;;  %v1611_v36 = vld [vmem:[%s3112_s19 + $0x1118] sm:$0xff] }
 0x2e1   : > { %2444 = vst [vmem:[%s3123_s22 + $0x1e40] sm:$0xff] %v1548_v37  ;;  %2445 = vst [vmem:[%s3123_s22 + $0x1e50] sm:$0xff] %v1549_v38  ;;  %v1612_v37 = vld [vmem:[%s3112_s19 + $0x1120] sm:$0xff]  ;;  %v1613_v38 = vld [vmem:[%s3112_s19 + $0x1128] sm:$0xff] }
 0x2e2   : > { %2446 = vst [vmem:[%s3123_s22 + $0x1e60] sm:$0xff] %v1550_v39  ;;  %2447 = vst [vmem:[%s3123_s22 + $0x1e70] sm:$0xff] %v1551_v40  ;;  %v1614_v39 = vld [vmem:[%s3112_s19 + $0x1130] sm:$0xff]  ;;  %v1615_v40 = vld [vmem:[%s3112_s19 + $0x1138] sm:$0xff] }
 0x2e3   : > { %2448 = vst [vmem:[%s3123_s22 + $0x1e80] sm:$0xff] %v1552_v41  ;;  %2449 = vst [vmem:[%s3123_s22 + $0x1e90] sm:$0xff] %v1553_v42  ;;  %v1616_v41 = vld [vmem:[%s3112_s19 + $0x1140] sm:$0xff]  ;;  %v1617_v42 = vld [vmem:[%s3112_s19 + $0x1148] sm:$0xff] }
 0x2e4   : > { %2450 = vst [vmem:[%s3123_s22 + $0x1ea0] sm:$0xff] %v1554_v43  ;;  %2451 = vst [vmem:[%s3123_s22 + $0x1eb0] sm:$0xff] %v1555_v44  ;;  %v1618_v43 = vld [vmem:[%s3112_s19 + $0x1150] sm:$0xff]  ;;  %v1619_v44 = vld [vmem:[%s3112_s19 + $0x1158] sm:$0xff] }
 0x2e5   : > { %2452 = vst [vmem:[%s3123_s22 + $0x1ec0] sm:$0xff] %v1556_v45  ;;  %2453 = vst [vmem:[%s3123_s22 + $0x1ed0] sm:$0xff] %v1557_v46  ;;  %v1620_v45 = vld [vmem:[%s3112_s19 + $0x1160] sm:$0xff]  ;;  %v1621_v46 = vld [vmem:[%s3112_s19 + $0x1168] sm:$0xff] }
 0x2e6   : > { %2454 = vst [vmem:[%s3123_s22 + $0x1ee0] sm:$0xff] %v1558_v47  ;;  %2455 = vst [vmem:[%s3123_s22 + $0x1ef0] sm:$0xff] %v1559_v48  ;;  %v1622_v47 = vld [vmem:[%s3112_s19 + $0x1170] sm:$0xff]  ;;  %v1623_v48 = vld [vmem:[%s3112_s19 + $0x1178] sm:$0xff] }
 0x2e7   : > { %2456 = vst [vmem:[%s3123_s22 + $0x1f00] sm:$0xff] %v1560_v49  ;;  %2457 = vst [vmem:[%s3123_s22 + $0x1f10] sm:$0xff] %v1561_v50  ;;  %v1624_v49 = vld [vmem:[%s3112_s19 + $0x1180] sm:$0xff]  ;;  %v1625_v50 = vld [vmem:[%s3112_s19 + $0x1188] sm:$0xff] }
 0x2e8   : > { %2458 = vst [vmem:[%s3123_s22 + $0x1f20] sm:$0xff] %v1562_v51  ;;  %2459 = vst [vmem:[%s3123_s22 + $0x1f30] sm:$0xff] %v1563_v52  ;;  %v1626_v51 = vld [vmem:[%s3112_s19 + $0x1190] sm:$0xff]  ;;  %v1627_v52 = vld [vmem:[%s3112_s19 + $0x1198] sm:$0xff] }
 0x2e9   : > { %2460 = vst [vmem:[%s3123_s22 + $0x1f40] sm:$0xff] %v1564_v53  ;;  %2461 = vst [vmem:[%s3123_s22 + $0x1f50] sm:$0xff] %v1565_v54  ;;  %v1628_v53 = vld [vmem:[%s3112_s19 + $0x11a0] sm:$0xff]  ;;  %v1629_v54 = vld [vmem:[%s3112_s19 + $0x11a8] sm:$0xff] }
 0x2ea   : > { %2462 = vst [vmem:[%s3123_s22 + $0x1f60] sm:$0xff] %v1566_v55  ;;  %2463 = vst [vmem:[%s3123_s22 + $0x1f70] sm:$0xff] %v1567_v56  ;;  %v1630_v55 = vld [vmem:[%s3112_s19 + $0x11b0] sm:$0xff]  ;;  %v1631_v56 = vld [vmem:[%s3112_s19 + $0x11b8] sm:$0xff] }
 0x2eb   : > { %2464 = vst [vmem:[%s3123_s22 + $0x1f80] sm:$0xff] %v1568_v57  ;;  %2465 = vst [vmem:[%s3123_s22 + $0x1f90] sm:$0xff] %v1569_v58  ;;  %v1632_v57 = vld [vmem:[%s3112_s19 + $0x11c0] sm:$0xff]  ;;  %v1633_v58 = vld [vmem:[%s3112_s19 + $0x11c8] sm:$0xff] }
 0x2ec   : > { %2466 = vst [vmem:[%s3123_s22 + $0x1fa0] sm:$0xff] %v1570_v59  ;;  %2467 = vst [vmem:[%s3123_s22 + $0x1fb0] sm:$0xff] %v1571_v60  ;;  %v1634_v59 = vld [vmem:[%s3112_s19 + $0x11d0] sm:$0xff]  ;;  %v1635_v60 = vld [vmem:[%s3112_s19 + $0x11d8] sm:$0xff] }
 0x2ed   : > { %2468 = vst [vmem:[%s3123_s22 + $0x1fc0] sm:$0xff] %v1572_v61  ;;  %2469 = vst [vmem:[%s3123_s22 + $0x1fd0] sm:$0xff] %v1573_v62  ;;  %v1636_v61 = vld [vmem:[%s3112_s19 + $0x11e0] sm:$0xff]  ;;  %v1637_v62 = vld [vmem:[%s3112_s19 + $0x11e8] sm:$0xff] }
 0x2ee   : > { %2470 = vst [vmem:[%s3123_s22 + $0x1fe0] sm:$0xff] %v1574_v63  ;;  %2471 = vst [vmem:[%s3123_s22 + $0x1ff0] sm:$0xff] %v1575_v0  ;;  %v1638_v63 = vld [vmem:[%s3112_s19 + $0x11f0] sm:$0xff]  ;;  %v1639_v0 = vld [vmem:[%s3112_s19 + $0x11f8] sm:$0xff] }
 0x2ef   : > { %2472 = vst [vmem:[%s3123_s22 + $0x2000] sm:$0xff] %v1576_v1  ;;  %2473 = vst [vmem:[%s3123_s22 + $0x2010] sm:$0xff] %v1577_v2  ;;  %v1640_v1 = vld [vmem:[%s3112_s19 + $0x1200] sm:$0xff]  ;;  %v1641_v2 = vld [vmem:[%s3112_s19 + $0x1208] sm:$0xff] }
 0x2f0   : > { %2474 = vst [vmem:[%s3123_s22 + $0x2020] sm:$0xff] %v1578_v3  ;;  %2475 = vst [vmem:[%s3123_s22 + $0x2030] sm:$0xff] %v1579_v4  ;;  %v1642_v3 = vld [vmem:[%s3112_s19 + $0x1210] sm:$0xff]  ;;  %v1643_v4 = vld [vmem:[%s3112_s19 + $0x1218] sm:$0xff] }
 0x2f1   : > { %2476 = vst [vmem:[%s3123_s22 + $0x2040] sm:$0xff] %v1580_v5  ;;  %2477 = vst [vmem:[%s3123_s22 + $0x2050] sm:$0xff] %v1581_v6  ;;  %v1644_v5 = vld [vmem:[%s3112_s19 + $0x1220] sm:$0xff]  ;;  %v1645_v6 = vld [vmem:[%s3112_s19 + $0x1228] sm:$0xff] }
 0x2f2   : > { %2478 = vst [vmem:[%s3123_s22 + $0x2060] sm:$0xff] %v1582_v7  ;;  %2479 = vst [vmem:[%s3123_s22 + $0x2070] sm:$0xff] %v1583_v8  ;;  %v1646_v7 = vld [vmem:[%s3112_s19 + $0x1230] sm:$0xff]  ;;  %v1647_v8 = vld [vmem:[%s3112_s19 + $0x1238] sm:$0xff] }
 0x2f3   : > { %2480 = vst [vmem:[%s3123_s22 + $0x2080] sm:$0xff] %v1584_v9  ;;  %2481 = vst [vmem:[%s3123_s22 + $0x2090] sm:$0xff] %v1585_v10  ;;  %v1648_v9 = vld [vmem:[%s3112_s19 + $0x1240] sm:$0xff]  ;;  %v1649_v10 = vld [vmem:[%s3112_s19 + $0x1248] sm:$0xff] }
 0x2f4   : > { %2482 = vst [vmem:[%s3123_s22 + $0x20a0] sm:$0xff] %v1586_v11  ;;  %2483 = vst [vmem:[%s3123_s22 + $0x20b0] sm:$0xff] %v1587_v12  ;;  %v1650_v11 = vld [vmem:[%s3112_s19 + $0x1250] sm:$0xff]  ;;  %v1651_v12 = vld [vmem:[%s3112_s19 + $0x1258] sm:$0xff] }
 0x2f5   : > { %2484 = vst [vmem:[%s3123_s22 + $0x20c0] sm:$0xff] %v1588_v13  ;;  %2485 = vst [vmem:[%s3123_s22 + $0x20d0] sm:$0xff] %v1589_v14  ;;  %v1652_v13 = vld [vmem:[%s3112_s19 + $0x1260] sm:$0xff]  ;;  %v1653_v14 = vld [vmem:[%s3112_s19 + $0x1268] sm:$0xff] }
 0x2f6   : > { %2486 = vst [vmem:[%s3123_s22 + $0x20e0] sm:$0xff] %v1590_v15  ;;  %2487 = vst [vmem:[%s3123_s22 + $0x20f0] sm:$0xff] %v1591_v16  ;;  %v1654_v15 = vld [vmem:[%s3112_s19 + $0x1270] sm:$0xff]  ;;  %v1655_v16 = vld [vmem:[%s3112_s19 + $0x1278] sm:$0xff] }
 0x2f7   : > { %2488 = vst [vmem:[%s3123_s22 + $0x2100] sm:$0xff] %v1592_v17  ;;  %2489 = vst [vmem:[%s3123_s22 + $0x2110] sm:$0xff] %v1593_v18  ;;  %v1656_v17 = vld [vmem:[%s3112_s19 + $0x1280] sm:$0xff]  ;;  %v1657_v18 = vld [vmem:[%s3112_s19 + $0x1288] sm:$0xff] }
 0x2f8   : > { %2490 = vst [vmem:[%s3123_s22 + $0x2120] sm:$0xff] %v1594_v19  ;;  %2491 = vst [vmem:[%s3123_s22 + $0x2130] sm:$0xff] %v1595_v20  ;;  %v1658_v19 = vld [vmem:[%s3112_s19 + $0x1290] sm:$0xff]  ;;  %v1659_v20 = vld [vmem:[%s3112_s19 + $0x1298] sm:$0xff] }
 0x2f9   : > { %2492 = vst [vmem:[%s3123_s22 + $0x2140] sm:$0xff] %v1596_v21  ;;  %2493 = vst [vmem:[%s3123_s22 + $0x2150] sm:$0xff] %v1597_v22  ;;  %v1660_v21 = vld [vmem:[%s3112_s19 + $0x12a0] sm:$0xff]  ;;  %v1661_v22 = vld [vmem:[%s3112_s19 + $0x12a8] sm:$0xff] }
 0x2fa   : > { %2494 = vst [vmem:[%s3123_s22 + $0x2160] sm:$0xff] %v1598_v23  ;;  %2495 = vst [vmem:[%s3123_s22 + $0x2170] sm:$0xff] %v1599_v24  ;;  %v1662_v23 = vld [vmem:[%s3112_s19 + $0x12b0] sm:$0xff]  ;;  %v1663_v24 = vld [vmem:[%s3112_s19 + $0x12b8] sm:$0xff] }
 0x2fb   : > { %2496 = vst [vmem:[%s3123_s22 + $0x2180] sm:$0xff] %v1600_v25  ;;  %2497 = vst [vmem:[%s3123_s22 + $0x2190] sm:$0xff] %v1601_v26  ;;  %v1664_v25 = vld [vmem:[%s3112_s19 + $0x12c0] sm:$0xff]  ;;  %v1665_v26 = vld [vmem:[%s3112_s19 + $0x12c8] sm:$0xff] }
 0x2fc   : > { %2498 = vst [vmem:[%s3123_s22 + $0x21a0] sm:$0xff] %v1602_v27  ;;  %2499 = vst [vmem:[%s3123_s22 + $0x21b0] sm:$0xff] %v1603_v28  ;;  %v1666_v27 = vld [vmem:[%s3112_s19 + $0x12d0] sm:$0xff]  ;;  %v1667_v28 = vld [vmem:[%s3112_s19 + $0x12d8] sm:$0xff] }
 0x2fd   : > { %2500 = vst [vmem:[%s3123_s22 + $0x21c0] sm:$0xff] %v1604_v29  ;;  %2501 = vst [vmem:[%s3123_s22 + $0x21d0] sm:$0xff] %v1605_v30  ;;  %v1668_v29 = vld [vmem:[%s3112_s19 + $0x12e0] sm:$0xff]  ;;  %v1669_v30 = vld [vmem:[%s3112_s19 + $0x12e8] sm:$0xff] }
 0x2fe   : > { %2502 = vst [vmem:[%s3123_s22 + $0x21e0] sm:$0xff] %v1606_v31  ;;  %2503 = vst [vmem:[%s3123_s22 + $0x21f0] sm:$0xff] %v1607_v32  ;;  %v1670_v31 = vld [vmem:[%s3112_s19 + $0x12f0] sm:$0xff]  ;;  %v1671_v32 = vld [vmem:[%s3112_s19 + $0x12f8] sm:$0xff] }
 0x2ff   : > { %2504 = vst [vmem:[%s3123_s22 + $0x2200] sm:$0xff] %v1608_v33  ;;  %2505 = vst [vmem:[%s3123_s22 + $0x2210] sm:$0xff] %v1609_v34  ;;  %v1672_v33 = vld [vmem:[%s3112_s19 + $0x1300] sm:$0xff]  ;;  %v1673_v34 = vld [vmem:[%s3112_s19 + $0x1308] sm:$0xff] }
 0x300   : > { %2506 = vst [vmem:[%s3123_s22 + $0x2220] sm:$0xff] %v1610_v35  ;;  %2507 = vst [vmem:[%s3123_s22 + $0x2230] sm:$0xff] %v1611_v36  ;;  %v1674_v35 = vld [vmem:[%s3112_s19 + $0x1310] sm:$0xff]  ;;  %v1675_v36 = vld [vmem:[%s3112_s19 + $0x1318] sm:$0xff] }
 0x301   : > { %2508 = vst [vmem:[%s3123_s22 + $0x2240] sm:$0xff] %v1612_v37  ;;  %2509 = vst [vmem:[%s3123_s22 + $0x2250] sm:$0xff] %v1613_v38  ;;  %v1676_v37 = vld [vmem:[%s3112_s19 + $0x1320] sm:$0xff]  ;;  %v1677_v38 = vld [vmem:[%s3112_s19 + $0x1328] sm:$0xff] }
 0x302   : > { %2510 = vst [vmem:[%s3123_s22 + $0x2260] sm:$0xff] %v1614_v39  ;;  %2511 = vst [vmem:[%s3123_s22 + $0x2270] sm:$0xff] %v1615_v40  ;;  %v1678_v39 = vld [vmem:[%s3112_s19 + $0x1330] sm:$0xff]  ;;  %v1679_v40 = vld [vmem:[%s3112_s19 + $0x1338] sm:$0xff] }
 0x303   : > { %2512 = vst [vmem:[%s3123_s22 + $0x2280] sm:$0xff] %v1616_v41  ;;  %2513 = vst [vmem:[%s3123_s22 + $0x2290] sm:$0xff] %v1617_v42  ;;  %v1680_v41 = vld [vmem:[%s3112_s19 + $0x1340] sm:$0xff]  ;;  %v1681_v42 = vld [vmem:[%s3112_s19 + $0x1348] sm:$0xff] }
 0x304   : > { %2514 = vst [vmem:[%s3123_s22 + $0x22a0] sm:$0xff] %v1618_v43  ;;  %2515 = vst [vmem:[%s3123_s22 + $0x22b0] sm:$0xff] %v1619_v44  ;;  %v1682_v43 = vld [vmem:[%s3112_s19 + $0x1350] sm:$0xff]  ;;  %v1683_v44 = vld [vmem:[%s3112_s19 + $0x1358] sm:$0xff] }
 0x305   : > { %2516 = vst [vmem:[%s3123_s22 + $0x22c0] sm:$0xff] %v1620_v45  ;;  %2517 = vst [vmem:[%s3123_s22 + $0x22d0] sm:$0xff] %v1621_v46  ;;  %v1684_v45 = vld [vmem:[%s3112_s19 + $0x1360] sm:$0xff]  ;;  %v1685_v46 = vld [vmem:[%s3112_s19 + $0x1368] sm:$0xff] }
 0x306   : > { %2518 = vst [vmem:[%s3123_s22 + $0x22e0] sm:$0xff] %v1622_v47  ;;  %2519 = vst [vmem:[%s3123_s22 + $0x22f0] sm:$0xff] %v1623_v48  ;;  %v1686_v47 = vld [vmem:[%s3112_s19 + $0x1370] sm:$0xff]  ;;  %v1687_v48 = vld [vmem:[%s3112_s19 + $0x1378] sm:$0xff] }
 0x307   : > { %2520 = vst [vmem:[%s3123_s22 + $0x2300] sm:$0xff] %v1624_v49  ;;  %2521 = vst [vmem:[%s3123_s22 + $0x2310] sm:$0xff] %v1625_v50  ;;  %v1688_v49 = vld [vmem:[%s3112_s19 + $0x1380] sm:$0xff]  ;;  %v1689_v50 = vld [vmem:[%s3112_s19 + $0x1388] sm:$0xff] }
 0x308   : > { %2522 = vst [vmem:[%s3123_s22 + $0x2320] sm:$0xff] %v1626_v51  ;;  %2523 = vst [vmem:[%s3123_s22 + $0x2330] sm:$0xff] %v1627_v52  ;;  %v1690_v51 = vld [vmem:[%s3112_s19 + $0x1390] sm:$0xff]  ;;  %v1691_v52 = vld [vmem:[%s3112_s19 + $0x1398] sm:$0xff] }
 0x309   : > { %2524 = vst [vmem:[%s3123_s22 + $0x2340] sm:$0xff] %v1628_v53  ;;  %2525 = vst [vmem:[%s3123_s22 + $0x2350] sm:$0xff] %v1629_v54  ;;  %v1692_v53 = vld [vmem:[%s3112_s19 + $0x13a0] sm:$0xff]  ;;  %v1693_v54 = vld [vmem:[%s3112_s19 + $0x13a8] sm:$0xff] }
 0x30a   : > { %2526 = vst [vmem:[%s3123_s22 + $0x2360] sm:$0xff] %v1630_v55  ;;  %2527 = vst [vmem:[%s3123_s22 + $0x2370] sm:$0xff] %v1631_v56  ;;  %v1694_v55 = vld [vmem:[%s3112_s19 + $0x13b0] sm:$0xff]  ;;  %v1695_v56 = vld [vmem:[%s3112_s19 + $0x13b8] sm:$0xff] }
 0x30b   : > { %2528 = vst [vmem:[%s3123_s22 + $0x2380] sm:$0xff] %v1632_v57  ;;  %2529 = vst [vmem:[%s3123_s22 + $0x2390] sm:$0xff] %v1633_v58  ;;  %v1696_v57 = vld [vmem:[%s3112_s19 + $0x13c0] sm:$0xff]  ;;  %v1697_v58 = vld [vmem:[%s3112_s19 + $0x13c8] sm:$0xff] }
 0x30c   : > { %2530 = vst [vmem:[%s3123_s22 + $0x23a0] sm:$0xff] %v1634_v59  ;;  %2531 = vst [vmem:[%s3123_s22 + $0x23b0] sm:$0xff] %v1635_v60  ;;  %v1698_v59 = vld [vmem:[%s3112_s19 + $0x13d0] sm:$0xff]  ;;  %v1699_v60 = vld [vmem:[%s3112_s19 + $0x13d8] sm:$0xff] }
 0x30d   : > { %2532 = vst [vmem:[%s3123_s22 + $0x23c0] sm:$0xff] %v1636_v61  ;;  %2533 = vst [vmem:[%s3123_s22 + $0x23d0] sm:$0xff] %v1637_v62  ;;  %v1700_v61 = vld [vmem:[%s3112_s19 + $0x13e0] sm:$0xff]  ;;  %v1701_v62 = vld [vmem:[%s3112_s19 + $0x13e8] sm:$0xff] }
 0x30e   : > { %2534 = vst [vmem:[%s3123_s22 + $0x23e0] sm:$0xff] %v1638_v63  ;;  %2535 = vst [vmem:[%s3123_s22 + $0x23f0] sm:$0xff] %v1639_v0  ;;  %v1702_v63 = vld [vmem:[%s3112_s19 + $0x13f0] sm:$0xff]  ;;  %v1703_v0 = vld [vmem:[%s3112_s19 + $0x13f8] sm:$0xff] }
 0x30f   : > { %2536 = vst [vmem:[%s3123_s22 + $0x2400] sm:$0xff] %v1640_v1  ;;  %2537 = vst [vmem:[%s3123_s22 + $0x2410] sm:$0xff] %v1641_v2  ;;  %v1704_v1 = vld [vmem:[%s3112_s19 + $0x1400] sm:$0xff]  ;;  %v1705_v2 = vld [vmem:[%s3112_s19 + $0x1408] sm:$0xff] }
 0x310   : > { %2538 = vst [vmem:[%s3123_s22 + $0x2420] sm:$0xff] %v1642_v3  ;;  %2539 = vst [vmem:[%s3123_s22 + $0x2430] sm:$0xff] %v1643_v4  ;;  %v1706_v3 = vld [vmem:[%s3112_s19 + $0x1410] sm:$0xff]  ;;  %v1707_v4 = vld [vmem:[%s3112_s19 + $0x1418] sm:$0xff] }
 0x311   : > { %2540 = vst [vmem:[%s3123_s22 + $0x2440] sm:$0xff] %v1644_v5  ;;  %2541 = vst [vmem:[%s3123_s22 + $0x2450] sm:$0xff] %v1645_v6  ;;  %v1708_v5 = vld [vmem:[%s3112_s19 + $0x1420] sm:$0xff]  ;;  %v1709_v6 = vld [vmem:[%s3112_s19 + $0x1428] sm:$0xff] }
 0x312   : > { %2542 = vst [vmem:[%s3123_s22 + $0x2460] sm:$0xff] %v1646_v7  ;;  %2543 = vst [vmem:[%s3123_s22 + $0x2470] sm:$0xff] %v1647_v8  ;;  %v1710_v7 = vld [vmem:[%s3112_s19 + $0x1430] sm:$0xff]  ;;  %v1711_v8 = vld [vmem:[%s3112_s19 + $0x1438] sm:$0xff] }
 0x313   : > { %2544 = vst [vmem:[%s3123_s22 + $0x2480] sm:$0xff] %v1648_v9  ;;  %2545 = vst [vmem:[%s3123_s22 + $0x2490] sm:$0xff] %v1649_v10  ;;  %v1712_v9 = vld [vmem:[%s3112_s19 + $0x1440] sm:$0xff]  ;;  %v1713_v10 = vld [vmem:[%s3112_s19 + $0x1448] sm:$0xff] }
 0x314   : > { %2546 = vst [vmem:[%s3123_s22 + $0x24a0] sm:$0xff] %v1650_v11  ;;  %2547 = vst [vmem:[%s3123_s22 + $0x24b0] sm:$0xff] %v1651_v12  ;;  %v1714_v11 = vld [vmem:[%s3112_s19 + $0x1450] sm:$0xff]  ;;  %v1715_v12 = vld [vmem:[%s3112_s19 + $0x1458] sm:$0xff] }
 0x315   : > { %2548 = vst [vmem:[%s3123_s22 + $0x24c0] sm:$0xff] %v1652_v13  ;;  %2549 = vst [vmem:[%s3123_s22 + $0x24d0] sm:$0xff] %v1653_v14  ;;  %v1716_v13 = vld [vmem:[%s3112_s19 + $0x1460] sm:$0xff]  ;;  %v1717_v14 = vld [vmem:[%s3112_s19 + $0x1468] sm:$0xff] }
 0x316   : > { %2550 = vst [vmem:[%s3123_s22 + $0x24e0] sm:$0xff] %v1654_v15  ;;  %2551 = vst [vmem:[%s3123_s22 + $0x24f0] sm:$0xff] %v1655_v16  ;;  %v1718_v15 = vld [vmem:[%s3112_s19 + $0x1470] sm:$0xff]  ;;  %v1719_v16 = vld [vmem:[%s3112_s19 + $0x1478] sm:$0xff] }
 0x317   : > { %2552 = vst [vmem:[%s3123_s22 + $0x2500] sm:$0xff] %v1656_v17  ;;  %2553 = vst [vmem:[%s3123_s22 + $0x2510] sm:$0xff] %v1657_v18  ;;  %v1720_v17 = vld [vmem:[%s3112_s19 + $0x1480] sm:$0xff]  ;;  %v1721_v18 = vld [vmem:[%s3112_s19 + $0x1488] sm:$0xff] }
 0x318   : > { %2554 = vst [vmem:[%s3123_s22 + $0x2520] sm:$0xff] %v1658_v19  ;;  %2555 = vst [vmem:[%s3123_s22 + $0x2530] sm:$0xff] %v1659_v20  ;;  %v1722_v19 = vld [vmem:[%s3112_s19 + $0x1490] sm:$0xff]  ;;  %v1723_v20 = vld [vmem:[%s3112_s19 + $0x1498] sm:$0xff] }
 0x319   : > { %2556 = vst [vmem:[%s3123_s22 + $0x2540] sm:$0xff] %v1660_v21  ;;  %2557 = vst [vmem:[%s3123_s22 + $0x2550] sm:$0xff] %v1661_v22  ;;  %v1724_v21 = vld [vmem:[%s3112_s19 + $0x14a0] sm:$0xff]  ;;  %v1725_v22 = vld [vmem:[%s3112_s19 + $0x14a8] sm:$0xff] }
 0x31a   : > { %2558 = vst [vmem:[%s3123_s22 + $0x2560] sm:$0xff] %v1662_v23  ;;  %2559 = vst [vmem:[%s3123_s22 + $0x2570] sm:$0xff] %v1663_v24  ;;  %v1726_v23 = vld [vmem:[%s3112_s19 + $0x14b0] sm:$0xff]  ;;  %v1727_v24 = vld [vmem:[%s3112_s19 + $0x14b8] sm:$0xff] }
 0x31b   : > { %2560 = vst [vmem:[%s3123_s22 + $0x2580] sm:$0xff] %v1664_v25  ;;  %2561 = vst [vmem:[%s3123_s22 + $0x2590] sm:$0xff] %v1665_v26  ;;  %v1728_v25 = vld [vmem:[%s3112_s19 + $0x14c0] sm:$0xff]  ;;  %v1729_v26 = vld [vmem:[%s3112_s19 + $0x14c8] sm:$0xff] }
 0x31c   : > { %2562 = vst [vmem:[%s3123_s22 + $0x25a0] sm:$0xff] %v1666_v27  ;;  %2563 = vst [vmem:[%s3123_s22 + $0x25b0] sm:$0xff] %v1667_v28  ;;  %v1730_v27 = vld [vmem:[%s3112_s19 + $0x14d0] sm:$0xff]  ;;  %v1731_v28 = vld [vmem:[%s3112_s19 + $0x14d8] sm:$0xff] }
 0x31d   : > { %2564 = vst [vmem:[%s3123_s22 + $0x25c0] sm:$0xff] %v1668_v29  ;;  %2565 = vst [vmem:[%s3123_s22 + $0x25d0] sm:$0xff] %v1669_v30  ;;  %v1732_v29 = vld [vmem:[%s3112_s19 + $0x14e0] sm:$0xff]  ;;  %v1733_v30 = vld [vmem:[%s3112_s19 + $0x14e8] sm:$0xff] }
 0x31e   : > { %2566 = vst [vmem:[%s3123_s22 + $0x25e0] sm:$0xff] %v1670_v31  ;;  %2567 = vst [vmem:[%s3123_s22 + $0x25f0] sm:$0xff] %v1671_v32  ;;  %v1734_v31 = vld [vmem:[%s3112_s19 + $0x14f0] sm:$0xff]  ;;  %v1735_v32 = vld [vmem:[%s3112_s19 + $0x14f8] sm:$0xff] }
 0x31f   : > { %2568 = vst [vmem:[%s3123_s22 + $0x2600] sm:$0xff] %v1672_v33  ;;  %2569 = vst [vmem:[%s3123_s22 + $0x2610] sm:$0xff] %v1673_v34  ;;  %v1736_v33 = vld [vmem:[%s3112_s19 + $0x1500] sm:$0xff]  ;;  %v1737_v34 = vld [vmem:[%s3112_s19 + $0x1508] sm:$0xff] }
 0x320   : > { %2570 = vst [vmem:[%s3123_s22 + $0x2620] sm:$0xff] %v1674_v35  ;;  %2571 = vst [vmem:[%s3123_s22 + $0x2630] sm:$0xff] %v1675_v36  ;;  %v1738_v35 = vld [vmem:[%s3112_s19 + $0x1510] sm:$0xff]  ;;  %v1739_v36 = vld [vmem:[%s3112_s19 + $0x1518] sm:$0xff] }
 0x321   : > { %2572 = vst [vmem:[%s3123_s22 + $0x2640] sm:$0xff] %v1676_v37  ;;  %2573 = vst [vmem:[%s3123_s22 + $0x2650] sm:$0xff] %v1677_v38  ;;  %v1740_v37 = vld [vmem:[%s3112_s19 + $0x1520] sm:$0xff]  ;;  %v1741_v38 = vld [vmem:[%s3112_s19 + $0x1528] sm:$0xff] }
 0x322   : > { %2574 = vst [vmem:[%s3123_s22 + $0x2660] sm:$0xff] %v1678_v39  ;;  %2575 = vst [vmem:[%s3123_s22 + $0x2670] sm:$0xff] %v1679_v40  ;;  %v1742_v39 = vld [vmem:[%s3112_s19 + $0x1530] sm:$0xff]  ;;  %v1743_v40 = vld [vmem:[%s3112_s19 + $0x1538] sm:$0xff] }
 0x323   : > { %2576 = vst [vmem:[%s3123_s22 + $0x2680] sm:$0xff] %v1680_v41  ;;  %2577 = vst [vmem:[%s3123_s22 + $0x2690] sm:$0xff] %v1681_v42  ;;  %v1744_v41 = vld [vmem:[%s3112_s19 + $0x1540] sm:$0xff]  ;;  %v1745_v42 = vld [vmem:[%s3112_s19 + $0x1548] sm:$0xff] }
 0x324   : > { %2578 = vst [vmem:[%s3123_s22 + $0x26a0] sm:$0xff] %v1682_v43  ;;  %2579 = vst [vmem:[%s3123_s22 + $0x26b0] sm:$0xff] %v1683_v44  ;;  %v1746_v43 = vld [vmem:[%s3112_s19 + $0x1550] sm:$0xff]  ;;  %v1747_v44 = vld [vmem:[%s3112_s19 + $0x1558] sm:$0xff] }
 0x325   : > { %2580 = vst [vmem:[%s3123_s22 + $0x26c0] sm:$0xff] %v1684_v45  ;;  %2581 = vst [vmem:[%s3123_s22 + $0x26d0] sm:$0xff] %v1685_v46  ;;  %v1748_v45 = vld [vmem:[%s3112_s19 + $0x1560] sm:$0xff]  ;;  %v1749_v46 = vld [vmem:[%s3112_s19 + $0x1568] sm:$0xff] }
 0x326   : > { %2582 = vst [vmem:[%s3123_s22 + $0x26e0] sm:$0xff] %v1686_v47  ;;  %2583 = vst [vmem:[%s3123_s22 + $0x26f0] sm:$0xff] %v1687_v48  ;;  %v1750_v47 = vld [vmem:[%s3112_s19 + $0x1570] sm:$0xff]  ;;  %v1751_v48 = vld [vmem:[%s3112_s19 + $0x1578] sm:$0xff] }
 0x327   : > { %2584 = vst [vmem:[%s3123_s22 + $0x2700] sm:$0xff] %v1688_v49  ;;  %2585 = vst [vmem:[%s3123_s22 + $0x2710] sm:$0xff] %v1689_v50  ;;  %v1752_v49 = vld [vmem:[%s3112_s19 + $0x1580] sm:$0xff]  ;;  %v1753_v50 = vld [vmem:[%s3112_s19 + $0x1588] sm:$0xff] }
 0x328   : > { %2586 = vst [vmem:[%s3123_s22 + $0x2720] sm:$0xff] %v1690_v51  ;;  %2587 = vst [vmem:[%s3123_s22 + $0x2730] sm:$0xff] %v1691_v52  ;;  %v1754_v51 = vld [vmem:[%s3112_s19 + $0x1590] sm:$0xff]  ;;  %v1755_v52 = vld [vmem:[%s3112_s19 + $0x1598] sm:$0xff] }
 0x329   : > { %2588 = vst [vmem:[%s3123_s22 + $0x2740] sm:$0xff] %v1692_v53  ;;  %2589 = vst [vmem:[%s3123_s22 + $0x2750] sm:$0xff] %v1693_v54  ;;  %v1756_v53 = vld [vmem:[%s3112_s19 + $0x15a0] sm:$0xff]  ;;  %v1757_v54 = vld [vmem:[%s3112_s19 + $0x15a8] sm:$0xff] }
 0x32a   : > { %2590 = vst [vmem:[%s3123_s22 + $0x2760] sm:$0xff] %v1694_v55  ;;  %2591 = vst [vmem:[%s3123_s22 + $0x2770] sm:$0xff] %v1695_v56  ;;  %v1758_v55 = vld [vmem:[%s3112_s19 + $0x15b0] sm:$0xff]  ;;  %v1759_v56 = vld [vmem:[%s3112_s19 + $0x15b8] sm:$0xff] }
 0x32b   : > { %2592 = vst [vmem:[%s3123_s22 + $0x2780] sm:$0xff] %v1696_v57  ;;  %2593 = vst [vmem:[%s3123_s22 + $0x2790] sm:$0xff] %v1697_v58  ;;  %v1760_v57 = vld [vmem:[%s3112_s19 + $0x15c0] sm:$0xff]  ;;  %v1761_v58 = vld [vmem:[%s3112_s19 + $0x15c8] sm:$0xff] }
 0x32c   : > { %2594 = vst [vmem:[%s3123_s22 + $0x27a0] sm:$0xff] %v1698_v59  ;;  %2595 = vst [vmem:[%s3123_s22 + $0x27b0] sm:$0xff] %v1699_v60  ;;  %v1762_v59 = vld [vmem:[%s3112_s19 + $0x15d0] sm:$0xff]  ;;  %v1763_v60 = vld [vmem:[%s3112_s19 + $0x15d8] sm:$0xff] }
 0x32d   : > { %2596 = vst [vmem:[%s3123_s22 + $0x27c0] sm:$0xff] %v1700_v61  ;;  %2597 = vst [vmem:[%s3123_s22 + $0x27d0] sm:$0xff] %v1701_v62  ;;  %v1764_v61 = vld [vmem:[%s3112_s19 + $0x15e0] sm:$0xff]  ;;  %v1765_v62 = vld [vmem:[%s3112_s19 + $0x15e8] sm:$0xff] }
 0x32e   : > { %2598 = vst [vmem:[%s3123_s22 + $0x27e0] sm:$0xff] %v1702_v63  ;;  %2599 = vst [vmem:[%s3123_s22 + $0x27f0] sm:$0xff] %v1703_v0  ;;  %v1766_v63 = vld [vmem:[%s3112_s19 + $0x15f0] sm:$0xff]  ;;  %v1767_v0 = vld [vmem:[%s3112_s19 + $0x15f8] sm:$0xff] }
 0x32f   : > { %2600 = vst [vmem:[%s3123_s22 + $0x2800] sm:$0xff] %v1704_v1  ;;  %2601 = vst [vmem:[%s3123_s22 + $0x2810] sm:$0xff] %v1705_v2  ;;  %v1768_v1 = vld [vmem:[%s3112_s19 + $0x1600] sm:$0xff]  ;;  %v1769_v2 = vld [vmem:[%s3112_s19 + $0x1608] sm:$0xff] }
 0x330   : > { %2602 = vst [vmem:[%s3123_s22 + $0x2820] sm:$0xff] %v1706_v3  ;;  %2603 = vst [vmem:[%s3123_s22 + $0x2830] sm:$0xff] %v1707_v4  ;;  %v1770_v3 = vld [vmem:[%s3112_s19 + $0x1610] sm:$0xff]  ;;  %v1771_v4 = vld [vmem:[%s3112_s19 + $0x1618] sm:$0xff] }
 0x331   : > { %2604 = vst [vmem:[%s3123_s22 + $0x2840] sm:$0xff] %v1708_v5  ;;  %2605 = vst [vmem:[%s3123_s22 + $0x2850] sm:$0xff] %v1709_v6  ;;  %v1772_v5 = vld [vmem:[%s3112_s19 + $0x1620] sm:$0xff]  ;;  %v1773_v6 = vld [vmem:[%s3112_s19 + $0x1628] sm:$0xff] }
 0x332   : > { %2606 = vst [vmem:[%s3123_s22 + $0x2860] sm:$0xff] %v1710_v7  ;;  %2607 = vst [vmem:[%s3123_s22 + $0x2870] sm:$0xff] %v1711_v8  ;;  %v1774_v7 = vld [vmem:[%s3112_s19 + $0x1630] sm:$0xff]  ;;  %v1775_v8 = vld [vmem:[%s3112_s19 + $0x1638] sm:$0xff] }
 0x333   : > { %2608 = vst [vmem:[%s3123_s22 + $0x2880] sm:$0xff] %v1712_v9  ;;  %2609 = vst [vmem:[%s3123_s22 + $0x2890] sm:$0xff] %v1713_v10  ;;  %v1776_v9 = vld [vmem:[%s3112_s19 + $0x1640] sm:$0xff]  ;;  %v1777_v10 = vld [vmem:[%s3112_s19 + $0x1648] sm:$0xff] }
 0x334   : > { %2610 = vst [vmem:[%s3123_s22 + $0x28a0] sm:$0xff] %v1714_v11  ;;  %2611 = vst [vmem:[%s3123_s22 + $0x28b0] sm:$0xff] %v1715_v12  ;;  %v1778_v11 = vld [vmem:[%s3112_s19 + $0x1650] sm:$0xff]  ;;  %v1779_v12 = vld [vmem:[%s3112_s19 + $0x1658] sm:$0xff] }
 0x335   : > { %2612 = vst [vmem:[%s3123_s22 + $0x28c0] sm:$0xff] %v1716_v13  ;;  %2613 = vst [vmem:[%s3123_s22 + $0x28d0] sm:$0xff] %v1717_v14  ;;  %v1780_v13 = vld [vmem:[%s3112_s19 + $0x1660] sm:$0xff]  ;;  %v1781_v14 = vld [vmem:[%s3112_s19 + $0x1668] sm:$0xff] }
 0x336   : > { %2614 = vst [vmem:[%s3123_s22 + $0x28e0] sm:$0xff] %v1718_v15  ;;  %2615 = vst [vmem:[%s3123_s22 + $0x28f0] sm:$0xff] %v1719_v16  ;;  %v1782_v15 = vld [vmem:[%s3112_s19 + $0x1670] sm:$0xff]  ;;  %v1783_v16 = vld [vmem:[%s3112_s19 + $0x1678] sm:$0xff] }
 0x337   : > { %2616 = vst [vmem:[%s3123_s22 + $0x2900] sm:$0xff] %v1720_v17  ;;  %2617 = vst [vmem:[%s3123_s22 + $0x2910] sm:$0xff] %v1721_v18  ;;  %v1784_v17 = vld [vmem:[%s3112_s19 + $0x1680] sm:$0xff]  ;;  %v1785_v18 = vld [vmem:[%s3112_s19 + $0x1688] sm:$0xff] }
 0x338   : > { %2618 = vst [vmem:[%s3123_s22 + $0x2920] sm:$0xff] %v1722_v19  ;;  %2619 = vst [vmem:[%s3123_s22 + $0x2930] sm:$0xff] %v1723_v20  ;;  %v1786_v19 = vld [vmem:[%s3112_s19 + $0x1690] sm:$0xff]  ;;  %v1787_v20 = vld [vmem:[%s3112_s19 + $0x1698] sm:$0xff] }
 0x339   : > { %2620 = vst [vmem:[%s3123_s22 + $0x2940] sm:$0xff] %v1724_v21  ;;  %2621 = vst [vmem:[%s3123_s22 + $0x2950] sm:$0xff] %v1725_v22  ;;  %v1788_v21 = vld [vmem:[%s3112_s19 + $0x16a0] sm:$0xff]  ;;  %v1789_v22 = vld [vmem:[%s3112_s19 + $0x16a8] sm:$0xff] }
 0x33a   : > { %2622 = vst [vmem:[%s3123_s22 + $0x2960] sm:$0xff] %v1726_v23  ;;  %2623 = vst [vmem:[%s3123_s22 + $0x2970] sm:$0xff] %v1727_v24  ;;  %v1790_v23 = vld [vmem:[%s3112_s19 + $0x16b0] sm:$0xff]  ;;  %v1791_v24 = vld [vmem:[%s3112_s19 + $0x16b8] sm:$0xff] }
 0x33b   : > { %2624 = vst [vmem:[%s3123_s22 + $0x2980] sm:$0xff] %v1728_v25  ;;  %2625 = vst [vmem:[%s3123_s22 + $0x2990] sm:$0xff] %v1729_v26  ;;  %v1792_v25 = vld [vmem:[%s3112_s19 + $0x16c0] sm:$0xff]  ;;  %v1793_v26 = vld [vmem:[%s3112_s19 + $0x16c8] sm:$0xff] }
 0x33c   : > { %2626 = vst [vmem:[%s3123_s22 + $0x29a0] sm:$0xff] %v1730_v27  ;;  %2627 = vst [vmem:[%s3123_s22 + $0x29b0] sm:$0xff] %v1731_v28  ;;  %v1794_v27 = vld [vmem:[%s3112_s19 + $0x16d0] sm:$0xff]  ;;  %v1795_v28 = vld [vmem:[%s3112_s19 + $0x16d8] sm:$0xff] }
 0x33d   : > { %2628 = vst [vmem:[%s3123_s22 + $0x29c0] sm:$0xff] %v1732_v29  ;;  %2629 = vst [vmem:[%s3123_s22 + $0x29d0] sm:$0xff] %v1733_v30  ;;  %v1796_v29 = vld [vmem:[%s3112_s19 + $0x16e0] sm:$0xff]  ;;  %v1797_v30 = vld [vmem:[%s3112_s19 + $0x16e8] sm:$0xff] }
 0x33e   : > { %2630 = vst [vmem:[%s3123_s22 + $0x29e0] sm:$0xff] %v1734_v31  ;;  %2631 = vst [vmem:[%s3123_s22 + $0x29f0] sm:$0xff] %v1735_v32  ;;  %v1798_v31 = vld [vmem:[%s3112_s19 + $0x16f0] sm:$0xff]  ;;  %v1799_v32 = vld [vmem:[%s3112_s19 + $0x16f8] sm:$0xff] }
 0x33f   : > { %2632 = vst [vmem:[%s3123_s22 + $0x2a00] sm:$0xff] %v1736_v33  ;;  %2633 = vst [vmem:[%s3123_s22 + $0x2a10] sm:$0xff] %v1737_v34  ;;  %v1800_v33 = vld [vmem:[%s3112_s19 + $0x1700] sm:$0xff]  ;;  %v1801_v34 = vld [vmem:[%s3112_s19 + $0x1708] sm:$0xff] }
 0x340   : > { %2634 = vst [vmem:[%s3123_s22 + $0x2a20] sm:$0xff] %v1738_v35  ;;  %2635 = vst [vmem:[%s3123_s22 + $0x2a30] sm:$0xff] %v1739_v36  ;;  %v1802_v35 = vld [vmem:[%s3112_s19 + $0x1710] sm:$0xff]  ;;  %v1803_v36 = vld [vmem:[%s3112_s19 + $0x1718] sm:$0xff] }
 0x341   : > { %2636 = vst [vmem:[%s3123_s22 + $0x2a40] sm:$0xff] %v1740_v37  ;;  %2637 = vst [vmem:[%s3123_s22 + $0x2a50] sm:$0xff] %v1741_v38  ;;  %v1804_v37 = vld [vmem:[%s3112_s19 + $0x1720] sm:$0xff]  ;;  %v1805_v38 = vld [vmem:[%s3112_s19 + $0x1728] sm:$0xff] }
 0x342   : > { %2638 = vst [vmem:[%s3123_s22 + $0x2a60] sm:$0xff] %v1742_v39  ;;  %2639 = vst [vmem:[%s3123_s22 + $0x2a70] sm:$0xff] %v1743_v40  ;;  %v1806_v39 = vld [vmem:[%s3112_s19 + $0x1730] sm:$0xff]  ;;  %v1807_v40 = vld [vmem:[%s3112_s19 + $0x1738] sm:$0xff] }
 0x343   : > { %2640 = vst [vmem:[%s3123_s22 + $0x2a80] sm:$0xff] %v1744_v41  ;;  %2641 = vst [vmem:[%s3123_s22 + $0x2a90] sm:$0xff] %v1745_v42  ;;  %v1808_v41 = vld [vmem:[%s3112_s19 + $0x1740] sm:$0xff]  ;;  %v1809_v42 = vld [vmem:[%s3112_s19 + $0x1748] sm:$0xff] }
 0x344   : > { %2642 = vst [vmem:[%s3123_s22 + $0x2aa0] sm:$0xff] %v1746_v43  ;;  %2643 = vst [vmem:[%s3123_s22 + $0x2ab0] sm:$0xff] %v1747_v44  ;;  %v1810_v43 = vld [vmem:[%s3112_s19 + $0x1750] sm:$0xff]  ;;  %v1811_v44 = vld [vmem:[%s3112_s19 + $0x1758] sm:$0xff] }
 0x345   : > { %2644 = vst [vmem:[%s3123_s22 + $0x2ac0] sm:$0xff] %v1748_v45  ;;  %2645 = vst [vmem:[%s3123_s22 + $0x2ad0] sm:$0xff] %v1749_v46  ;;  %v1812_v45 = vld [vmem:[%s3112_s19 + $0x1760] sm:$0xff]  ;;  %v1813_v46 = vld [vmem:[%s3112_s19 + $0x1768] sm:$0xff] }
 0x346   : > { %2646 = vst [vmem:[%s3123_s22 + $0x2ae0] sm:$0xff] %v1750_v47  ;;  %2647 = vst [vmem:[%s3123_s22 + $0x2af0] sm:$0xff] %v1751_v48  ;;  %v1814_v47 = vld [vmem:[%s3112_s19 + $0x1770] sm:$0xff]  ;;  %v1815_v48 = vld [vmem:[%s3112_s19 + $0x1778] sm:$0xff] }
 0x347   : > { %2648 = vst [vmem:[%s3123_s22 + $0x2b00] sm:$0xff] %v1752_v49  ;;  %2649 = vst [vmem:[%s3123_s22 + $0x2b10] sm:$0xff] %v1753_v50  ;;  %v1816_v49 = vld [vmem:[%s3112_s19 + $0x1780] sm:$0xff]  ;;  %v1817_v50 = vld [vmem:[%s3112_s19 + $0x1788] sm:$0xff] }
 0x348   : > { %2650 = vst [vmem:[%s3123_s22 + $0x2b20] sm:$0xff] %v1754_v51  ;;  %2651 = vst [vmem:[%s3123_s22 + $0x2b30] sm:$0xff] %v1755_v52  ;;  %v1818_v51 = vld [vmem:[%s3112_s19 + $0x1790] sm:$0xff]  ;;  %v1819_v52 = vld [vmem:[%s3112_s19 + $0x1798] sm:$0xff] }
 0x349   : > { %2652 = vst [vmem:[%s3123_s22 + $0x2b40] sm:$0xff] %v1756_v53  ;;  %2653 = vst [vmem:[%s3123_s22 + $0x2b50] sm:$0xff] %v1757_v54  ;;  %v1820_v53 = vld [vmem:[%s3112_s19 + $0x17a0] sm:$0xff]  ;;  %v1821_v54 = vld [vmem:[%s3112_s19 + $0x17a8] sm:$0xff] }
 0x34a   : > { %2654 = vst [vmem:[%s3123_s22 + $0x2b60] sm:$0xff] %v1758_v55  ;;  %2655 = vst [vmem:[%s3123_s22 + $0x2b70] sm:$0xff] %v1759_v56  ;;  %v1822_v55 = vld [vmem:[%s3112_s19 + $0x17b0] sm:$0xff]  ;;  %v1823_v56 = vld [vmem:[%s3112_s19 + $0x17b8] sm:$0xff] }
 0x34b   : > { %2656 = vst [vmem:[%s3123_s22 + $0x2b80] sm:$0xff] %v1760_v57  ;;  %2657 = vst [vmem:[%s3123_s22 + $0x2b90] sm:$0xff] %v1761_v58  ;;  %v1824_v57 = vld [vmem:[%s3112_s19 + $0x17c0] sm:$0xff]  ;;  %v1825_v58 = vld [vmem:[%s3112_s19 + $0x17c8] sm:$0xff] }
 0x34c   : > { %2658 = vst [vmem:[%s3123_s22 + $0x2ba0] sm:$0xff] %v1762_v59  ;;  %2659 = vst [vmem:[%s3123_s22 + $0x2bb0] sm:$0xff] %v1763_v60  ;;  %v1826_v59 = vld [vmem:[%s3112_s19 + $0x17d0] sm:$0xff]  ;;  %v1827_v60 = vld [vmem:[%s3112_s19 + $0x17d8] sm:$0xff] }
 0x34d   : > { %2660 = vst [vmem:[%s3123_s22 + $0x2bc0] sm:$0xff] %v1764_v61  ;;  %2661 = vst [vmem:[%s3123_s22 + $0x2bd0] sm:$0xff] %v1765_v62  ;;  %v1828_v61 = vld [vmem:[%s3112_s19 + $0x17e0] sm:$0xff]  ;;  %v1829_v62 = vld [vmem:[%s3112_s19 + $0x17e8] sm:$0xff] }
 0x34e   : > { %2662 = vst [vmem:[%s3123_s22 + $0x2be0] sm:$0xff] %v1766_v63  ;;  %2663 = vst [vmem:[%s3123_s22 + $0x2bf0] sm:$0xff] %v1767_v0  ;;  %v1830_v63 = vld [vmem:[%s3112_s19 + $0x17f0] sm:$0xff]  ;;  %v1831_v0 = vld [vmem:[%s3112_s19 + $0x17f8] sm:$0xff] }
 0x34f   : > { %2664 = vst [vmem:[%s3123_s22 + $0x2c00] sm:$0xff] %v1768_v1  ;;  %2665 = vst [vmem:[%s3123_s22 + $0x2c10] sm:$0xff] %v1769_v2  ;;  %v1832_v1 = vld [vmem:[%s3112_s19 + $0x1800] sm:$0xff]  ;;  %v1833_v2 = vld [vmem:[%s3112_s19 + $0x1808] sm:$0xff] }
 0x350   : > { %2666 = vst [vmem:[%s3123_s22 + $0x2c20] sm:$0xff] %v1770_v3  ;;  %2667 = vst [vmem:[%s3123_s22 + $0x2c30] sm:$0xff] %v1771_v4  ;;  %v1834_v3 = vld [vmem:[%s3112_s19 + $0x1810] sm:$0xff]  ;;  %v1835_v4 = vld [vmem:[%s3112_s19 + $0x1818] sm:$0xff] }
 0x351   : > { %2668 = vst [vmem:[%s3123_s22 + $0x2c40] sm:$0xff] %v1772_v5  ;;  %2669 = vst [vmem:[%s3123_s22 + $0x2c50] sm:$0xff] %v1773_v6  ;;  %v1836_v5 = vld [vmem:[%s3112_s19 + $0x1820] sm:$0xff]  ;;  %v1837_v6 = vld [vmem:[%s3112_s19 + $0x1828] sm:$0xff] }
 0x352   : > { %2670 = vst [vmem:[%s3123_s22 + $0x2c60] sm:$0xff] %v1774_v7  ;;  %2671 = vst [vmem:[%s3123_s22 + $0x2c70] sm:$0xff] %v1775_v8  ;;  %v1838_v7 = vld [vmem:[%s3112_s19 + $0x1830] sm:$0xff]  ;;  %v1839_v8 = vld [vmem:[%s3112_s19 + $0x1838] sm:$0xff] }
 0x353   : > { %2672 = vst [vmem:[%s3123_s22 + $0x2c80] sm:$0xff] %v1776_v9  ;;  %2673 = vst [vmem:[%s3123_s22 + $0x2c90] sm:$0xff] %v1777_v10  ;;  %v1840_v9 = vld [vmem:[%s3112_s19 + $0x1840] sm:$0xff]  ;;  %v1841_v10 = vld [vmem:[%s3112_s19 + $0x1848] sm:$0xff] }
 0x354   : > { %2674 = vst [vmem:[%s3123_s22 + $0x2ca0] sm:$0xff] %v1778_v11  ;;  %2675 = vst [vmem:[%s3123_s22 + $0x2cb0] sm:$0xff] %v1779_v12  ;;  %v1842_v11 = vld [vmem:[%s3112_s19 + $0x1850] sm:$0xff]  ;;  %v1843_v12 = vld [vmem:[%s3112_s19 + $0x1858] sm:$0xff] }
 0x355   : > { %2676 = vst [vmem:[%s3123_s22 + $0x2cc0] sm:$0xff] %v1780_v13  ;;  %2677 = vst [vmem:[%s3123_s22 + $0x2cd0] sm:$0xff] %v1781_v14  ;;  %v1844_v13 = vld [vmem:[%s3112_s19 + $0x1860] sm:$0xff]  ;;  %v1845_v14 = vld [vmem:[%s3112_s19 + $0x1868] sm:$0xff] }
 0x356   : > { %2678 = vst [vmem:[%s3123_s22 + $0x2ce0] sm:$0xff] %v1782_v15  ;;  %2679 = vst [vmem:[%s3123_s22 + $0x2cf0] sm:$0xff] %v1783_v16  ;;  %v1846_v15 = vld [vmem:[%s3112_s19 + $0x1870] sm:$0xff]  ;;  %v1847_v16 = vld [vmem:[%s3112_s19 + $0x1878] sm:$0xff] }
 0x357   : > { %2680 = vst [vmem:[%s3123_s22 + $0x2d00] sm:$0xff] %v1784_v17  ;;  %2681 = vst [vmem:[%s3123_s22 + $0x2d10] sm:$0xff] %v1785_v18  ;;  %v1848_v17 = vld [vmem:[%s3112_s19 + $0x1880] sm:$0xff]  ;;  %v1849_v18 = vld [vmem:[%s3112_s19 + $0x1888] sm:$0xff] }
 0x358   : > { %2682 = vst [vmem:[%s3123_s22 + $0x2d20] sm:$0xff] %v1786_v19  ;;  %2683 = vst [vmem:[%s3123_s22 + $0x2d30] sm:$0xff] %v1787_v20  ;;  %v1850_v19 = vld [vmem:[%s3112_s19 + $0x1890] sm:$0xff]  ;;  %v1851_v20 = vld [vmem:[%s3112_s19 + $0x1898] sm:$0xff] }
 0x359   : > { %2684 = vst [vmem:[%s3123_s22 + $0x2d40] sm:$0xff] %v1788_v21  ;;  %2685 = vst [vmem:[%s3123_s22 + $0x2d50] sm:$0xff] %v1789_v22  ;;  %v1852_v21 = vld [vmem:[%s3112_s19 + $0x18a0] sm:$0xff]  ;;  %v1853_v22 = vld [vmem:[%s3112_s19 + $0x18a8] sm:$0xff] }
 0x35a   : > { %2686 = vst [vmem:[%s3123_s22 + $0x2d60] sm:$0xff] %v1790_v23  ;;  %2687 = vst [vmem:[%s3123_s22 + $0x2d70] sm:$0xff] %v1791_v24  ;;  %v1854_v23 = vld [vmem:[%s3112_s19 + $0x18b0] sm:$0xff]  ;;  %v1855_v24 = vld [vmem:[%s3112_s19 + $0x18b8] sm:$0xff] }
 0x35b   : > { %2688 = vst [vmem:[%s3123_s22 + $0x2d80] sm:$0xff] %v1792_v25  ;;  %2689 = vst [vmem:[%s3123_s22 + $0x2d90] sm:$0xff] %v1793_v26  ;;  %v1856_v25 = vld [vmem:[%s3112_s19 + $0x18c0] sm:$0xff]  ;;  %v1857_v26 = vld [vmem:[%s3112_s19 + $0x18c8] sm:$0xff] }
 0x35c   : > { %2690 = vst [vmem:[%s3123_s22 + $0x2da0] sm:$0xff] %v1794_v27  ;;  %2691 = vst [vmem:[%s3123_s22 + $0x2db0] sm:$0xff] %v1795_v28  ;;  %v1858_v27 = vld [vmem:[%s3112_s19 + $0x18d0] sm:$0xff]  ;;  %v1859_v28 = vld [vmem:[%s3112_s19 + $0x18d8] sm:$0xff] }
 0x35d   : > { %2692 = vst [vmem:[%s3123_s22 + $0x2dc0] sm:$0xff] %v1796_v29  ;;  %2693 = vst [vmem:[%s3123_s22 + $0x2dd0] sm:$0xff] %v1797_v30  ;;  %v1860_v29 = vld [vmem:[%s3112_s19 + $0x18e0] sm:$0xff]  ;;  %v1861_v30 = vld [vmem:[%s3112_s19 + $0x18e8] sm:$0xff] }
 0x35e   : > { %2694 = vst [vmem:[%s3123_s22 + $0x2de0] sm:$0xff] %v1798_v31  ;;  %2695 = vst [vmem:[%s3123_s22 + $0x2df0] sm:$0xff] %v1799_v32  ;;  %v1862_v31 = vld [vmem:[%s3112_s19 + $0x18f0] sm:$0xff]  ;;  %v1863_v32 = vld [vmem:[%s3112_s19 + $0x18f8] sm:$0xff] }
 0x35f   : > { %2696 = vst [vmem:[%s3123_s22 + $0x2e00] sm:$0xff] %v1800_v33  ;;  %2697 = vst [vmem:[%s3123_s22 + $0x2e10] sm:$0xff] %v1801_v34  ;;  %v1864_v33 = vld [vmem:[%s3112_s19 + $0x1900] sm:$0xff]  ;;  %v1865_v34 = vld [vmem:[%s3112_s19 + $0x1908] sm:$0xff] }
 0x360   : > { %2698 = vst [vmem:[%s3123_s22 + $0x2e20] sm:$0xff] %v1802_v35  ;;  %2699 = vst [vmem:[%s3123_s22 + $0x2e30] sm:$0xff] %v1803_v36  ;;  %v1866_v35 = vld [vmem:[%s3112_s19 + $0x1910] sm:$0xff]  ;;  %v1867_v36 = vld [vmem:[%s3112_s19 + $0x1918] sm:$0xff] }
 0x361   : > { %2700 = vst [vmem:[%s3123_s22 + $0x2e40] sm:$0xff] %v1804_v37  ;;  %2701 = vst [vmem:[%s3123_s22 + $0x2e50] sm:$0xff] %v1805_v38  ;;  %v1868_v37 = vld [vmem:[%s3112_s19 + $0x1920] sm:$0xff]  ;;  %v1869_v38 = vld [vmem:[%s3112_s19 + $0x1928] sm:$0xff] }
 0x362   : > { %2702 = vst [vmem:[%s3123_s22 + $0x2e60] sm:$0xff] %v1806_v39  ;;  %2703 = vst [vmem:[%s3123_s22 + $0x2e70] sm:$0xff] %v1807_v40  ;;  %v1870_v39 = vld [vmem:[%s3112_s19 + $0x1930] sm:$0xff]  ;;  %v1871_v40 = vld [vmem:[%s3112_s19 + $0x1938] sm:$0xff] }
 0x363   : > { %2704 = vst [vmem:[%s3123_s22 + $0x2e80] sm:$0xff] %v1808_v41  ;;  %2705 = vst [vmem:[%s3123_s22 + $0x2e90] sm:$0xff] %v1809_v42  ;;  %v1872_v41 = vld [vmem:[%s3112_s19 + $0x1940] sm:$0xff]  ;;  %v1873_v42 = vld [vmem:[%s3112_s19 + $0x1948] sm:$0xff] }
 0x364   : > { %2706 = vst [vmem:[%s3123_s22 + $0x2ea0] sm:$0xff] %v1810_v43  ;;  %2707 = vst [vmem:[%s3123_s22 + $0x2eb0] sm:$0xff] %v1811_v44  ;;  %v1874_v43 = vld [vmem:[%s3112_s19 + $0x1950] sm:$0xff]  ;;  %v1875_v44 = vld [vmem:[%s3112_s19 + $0x1958] sm:$0xff] }
 0x365   : > { %2708 = vst [vmem:[%s3123_s22 + $0x2ec0] sm:$0xff] %v1812_v45  ;;  %2709 = vst [vmem:[%s3123_s22 + $0x2ed0] sm:$0xff] %v1813_v46  ;;  %v1876_v45 = vld [vmem:[%s3112_s19 + $0x1960] sm:$0xff]  ;;  %v1877_v46 = vld [vmem:[%s3112_s19 + $0x1968] sm:$0xff] }
 0x366   : > { %2710 = vst [vmem:[%s3123_s22 + $0x2ee0] sm:$0xff] %v1814_v47  ;;  %2711 = vst [vmem:[%s3123_s22 + $0x2ef0] sm:$0xff] %v1815_v48  ;;  %v1878_v47 = vld [vmem:[%s3112_s19 + $0x1970] sm:$0xff]  ;;  %v1879_v48 = vld [vmem:[%s3112_s19 + $0x1978] sm:$0xff] }
 0x367   : > { %2712 = vst [vmem:[%s3123_s22 + $0x2f00] sm:$0xff] %v1816_v49  ;;  %2713 = vst [vmem:[%s3123_s22 + $0x2f10] sm:$0xff] %v1817_v50  ;;  %v1880_v49 = vld [vmem:[%s3112_s19 + $0x1980] sm:$0xff]  ;;  %v1881_v50 = vld [vmem:[%s3112_s19 + $0x1988] sm:$0xff] }
 0x368   : > { %2714 = vst [vmem:[%s3123_s22 + $0x2f20] sm:$0xff] %v1818_v51  ;;  %2715 = vst [vmem:[%s3123_s22 + $0x2f30] sm:$0xff] %v1819_v52  ;;  %v1882_v51 = vld [vmem:[%s3112_s19 + $0x1990] sm:$0xff]  ;;  %v1883_v52 = vld [vmem:[%s3112_s19 + $0x1998] sm:$0xff] }
 0x369   : > { %2716 = vst [vmem:[%s3123_s22 + $0x2f40] sm:$0xff] %v1820_v53  ;;  %2717 = vst [vmem:[%s3123_s22 + $0x2f50] sm:$0xff] %v1821_v54  ;;  %v1884_v53 = vld [vmem:[%s3112_s19 + $0x19a0] sm:$0xff]  ;;  %v1885_v54 = vld [vmem:[%s3112_s19 + $0x19a8] sm:$0xff] }
 0x36a   : > { %2718 = vst [vmem:[%s3123_s22 + $0x2f60] sm:$0xff] %v1822_v55  ;;  %2719 = vst [vmem:[%s3123_s22 + $0x2f70] sm:$0xff] %v1823_v56  ;;  %v1886_v55 = vld [vmem:[%s3112_s19 + $0x19b0] sm:$0xff]  ;;  %v1887_v56 = vld [vmem:[%s3112_s19 + $0x19b8] sm:$0xff] }
 0x36b   : > { %2720 = vst [vmem:[%s3123_s22 + $0x2f80] sm:$0xff] %v1824_v57  ;;  %2721 = vst [vmem:[%s3123_s22 + $0x2f90] sm:$0xff] %v1825_v58  ;;  %v1888_v57 = vld [vmem:[%s3112_s19 + $0x19c0] sm:$0xff]  ;;  %v1889_v58 = vld [vmem:[%s3112_s19 + $0x19c8] sm:$0xff] }
 0x36c   : > { %2722 = vst [vmem:[%s3123_s22 + $0x2fa0] sm:$0xff] %v1826_v59  ;;  %2723 = vst [vmem:[%s3123_s22 + $0x2fb0] sm:$0xff] %v1827_v60  ;;  %v1890_v59 = vld [vmem:[%s3112_s19 + $0x19d0] sm:$0xff]  ;;  %v1891_v60 = vld [vmem:[%s3112_s19 + $0x19d8] sm:$0xff] }
 0x36d   : > { %2724 = vst [vmem:[%s3123_s22 + $0x2fc0] sm:$0xff] %v1828_v61  ;;  %2725 = vst [vmem:[%s3123_s22 + $0x2fd0] sm:$0xff] %v1829_v62  ;;  %v1892_v61 = vld [vmem:[%s3112_s19 + $0x19e0] sm:$0xff]  ;;  %v1893_v62 = vld [vmem:[%s3112_s19 + $0x19e8] sm:$0xff] }
 0x36e   : > { %2726 = vst [vmem:[%s3123_s22 + $0x2fe0] sm:$0xff] %v1830_v63  ;;  %2727 = vst [vmem:[%s3123_s22 + $0x2ff0] sm:$0xff] %v1831_v0  ;;  %v1894_v63 = vld [vmem:[%s3112_s19 + $0x19f0] sm:$0xff]  ;;  %v1895_v0 = vld [vmem:[%s3112_s19 + $0x19f8] sm:$0xff] }
 0x36f   : > { %2728 = vst [vmem:[%s3123_s22 + $0x3000] sm:$0xff] %v1832_v1  ;;  %2729 = vst [vmem:[%s3123_s22 + $0x3010] sm:$0xff] %v1833_v2  ;;  %v1896_v1 = vld [vmem:[%s3112_s19 + $0x1a00] sm:$0xff]  ;;  %v1897_v2 = vld [vmem:[%s3112_s19 + $0x1a08] sm:$0xff] }
 0x370   : > { %2730 = vst [vmem:[%s3123_s22 + $0x3020] sm:$0xff] %v1834_v3  ;;  %2731 = vst [vmem:[%s3123_s22 + $0x3030] sm:$0xff] %v1835_v4  ;;  %v1898_v3 = vld [vmem:[%s3112_s19 + $0x1a10] sm:$0xff]  ;;  %v1899_v4 = vld [vmem:[%s3112_s19 + $0x1a18] sm:$0xff] }
 0x371   : > { %2732 = vst [vmem:[%s3123_s22 + $0x3040] sm:$0xff] %v1836_v5  ;;  %2733 = vst [vmem:[%s3123_s22 + $0x3050] sm:$0xff] %v1837_v6  ;;  %v1900_v5 = vld [vmem:[%s3112_s19 + $0x1a20] sm:$0xff]  ;;  %v1901_v6 = vld [vmem:[%s3112_s19 + $0x1a28] sm:$0xff] }
 0x372   : > { %2734 = vst [vmem:[%s3123_s22 + $0x3060] sm:$0xff] %v1838_v7  ;;  %2735 = vst [vmem:[%s3123_s22 + $0x3070] sm:$0xff] %v1839_v8  ;;  %v1902_v7 = vld [vmem:[%s3112_s19 + $0x1a30] sm:$0xff]  ;;  %v1903_v8 = vld [vmem:[%s3112_s19 + $0x1a38] sm:$0xff] }
 0x373   : > { %2736 = vst [vmem:[%s3123_s22 + $0x3080] sm:$0xff] %v1840_v9  ;;  %2737 = vst [vmem:[%s3123_s22 + $0x3090] sm:$0xff] %v1841_v10  ;;  %v1904_v9 = vld [vmem:[%s3112_s19 + $0x1a40] sm:$0xff]  ;;  %v1905_v10 = vld [vmem:[%s3112_s19 + $0x1a48] sm:$0xff] }
 0x374   : > { %2738 = vst [vmem:[%s3123_s22 + $0x30a0] sm:$0xff] %v1842_v11  ;;  %2739 = vst [vmem:[%s3123_s22 + $0x30b0] sm:$0xff] %v1843_v12  ;;  %v1906_v11 = vld [vmem:[%s3112_s19 + $0x1a50] sm:$0xff]  ;;  %v1907_v12 = vld [vmem:[%s3112_s19 + $0x1a58] sm:$0xff] }
 0x375   : > { %2740 = vst [vmem:[%s3123_s22 + $0x30c0] sm:$0xff] %v1844_v13  ;;  %2741 = vst [vmem:[%s3123_s22 + $0x30d0] sm:$0xff] %v1845_v14  ;;  %v1908_v13 = vld [vmem:[%s3112_s19 + $0x1a60] sm:$0xff]  ;;  %v1909_v14 = vld [vmem:[%s3112_s19 + $0x1a68] sm:$0xff] }
 0x376   : > { %2742 = vst [vmem:[%s3123_s22 + $0x30e0] sm:$0xff] %v1846_v15  ;;  %2743 = vst [vmem:[%s3123_s22 + $0x30f0] sm:$0xff] %v1847_v16  ;;  %v1910_v15 = vld [vmem:[%s3112_s19 + $0x1a70] sm:$0xff]  ;;  %v1911_v16 = vld [vmem:[%s3112_s19 + $0x1a78] sm:$0xff] }
 0x377   : > { %2744 = vst [vmem:[%s3123_s22 + $0x3100] sm:$0xff] %v1848_v17  ;;  %2745 = vst [vmem:[%s3123_s22 + $0x3110] sm:$0xff] %v1849_v18  ;;  %v1912_v17 = vld [vmem:[%s3112_s19 + $0x1a80] sm:$0xff]  ;;  %v1913_v18 = vld [vmem:[%s3112_s19 + $0x1a88] sm:$0xff] }
 0x378   : > { %2746 = vst [vmem:[%s3123_s22 + $0x3120] sm:$0xff] %v1850_v19  ;;  %2747 = vst [vmem:[%s3123_s22 + $0x3130] sm:$0xff] %v1851_v20  ;;  %v1914_v19 = vld [vmem:[%s3112_s19 + $0x1a90] sm:$0xff]  ;;  %v1915_v20 = vld [vmem:[%s3112_s19 + $0x1a98] sm:$0xff] }
 0x379   : > { %2748 = vst [vmem:[%s3123_s22 + $0x3140] sm:$0xff] %v1852_v21  ;;  %2749 = vst [vmem:[%s3123_s22 + $0x3150] sm:$0xff] %v1853_v22  ;;  %v1916_v21 = vld [vmem:[%s3112_s19 + $0x1aa0] sm:$0xff]  ;;  %v1917_v22 = vld [vmem:[%s3112_s19 + $0x1aa8] sm:$0xff] }
 0x37a   : > { %2750 = vst [vmem:[%s3123_s22 + $0x3160] sm:$0xff] %v1854_v23  ;;  %2751 = vst [vmem:[%s3123_s22 + $0x3170] sm:$0xff] %v1855_v24  ;;  %v1918_v23 = vld [vmem:[%s3112_s19 + $0x1ab0] sm:$0xff]  ;;  %v1919_v24 = vld [vmem:[%s3112_s19 + $0x1ab8] sm:$0xff] }
 0x37b   : > { %2752 = vst [vmem:[%s3123_s22 + $0x3180] sm:$0xff] %v1856_v25  ;;  %2753 = vst [vmem:[%s3123_s22 + $0x3190] sm:$0xff] %v1857_v26  ;;  %v1920_v25 = vld [vmem:[%s3112_s19 + $0x1ac0] sm:$0xff]  ;;  %v1921_v26 = vld [vmem:[%s3112_s19 + $0x1ac8] sm:$0xff] }
 0x37c   : > { %2754 = vst [vmem:[%s3123_s22 + $0x31a0] sm:$0xff] %v1858_v27  ;;  %2755 = vst [vmem:[%s3123_s22 + $0x31b0] sm:$0xff] %v1859_v28  ;;  %v1922_v27 = vld [vmem:[%s3112_s19 + $0x1ad0] sm:$0xff]  ;;  %v1923_v28 = vld [vmem:[%s3112_s19 + $0x1ad8] sm:$0xff] }
 0x37d   : > { %2756 = vst [vmem:[%s3123_s22 + $0x31c0] sm:$0xff] %v1860_v29  ;;  %2757 = vst [vmem:[%s3123_s22 + $0x31d0] sm:$0xff] %v1861_v30  ;;  %v1924_v29 = vld [vmem:[%s3112_s19 + $0x1ae0] sm:$0xff]  ;;  %v1925_v30 = vld [vmem:[%s3112_s19 + $0x1ae8] sm:$0xff] }
 0x37e   : > { %2758 = vst [vmem:[%s3123_s22 + $0x31e0] sm:$0xff] %v1862_v31  ;;  %2759 = vst [vmem:[%s3123_s22 + $0x31f0] sm:$0xff] %v1863_v32  ;;  %v1926_v31 = vld [vmem:[%s3112_s19 + $0x1af0] sm:$0xff]  ;;  %v1927_v32 = vld [vmem:[%s3112_s19 + $0x1af8] sm:$0xff] }
 0x37f   : > { %2760 = vst [vmem:[%s3123_s22 + $0x3200] sm:$0xff] %v1864_v33  ;;  %2761 = vst [vmem:[%s3123_s22 + $0x3210] sm:$0xff] %v1865_v34  ;;  %v1928_v33 = vld [vmem:[%s3112_s19 + $0x1b00] sm:$0xff]  ;;  %v1929_v34 = vld [vmem:[%s3112_s19 + $0x1b08] sm:$0xff] }
 0x380   : > { %2762 = vst [vmem:[%s3123_s22 + $0x3220] sm:$0xff] %v1866_v35  ;;  %2763 = vst [vmem:[%s3123_s22 + $0x3230] sm:$0xff] %v1867_v36  ;;  %v1930_v35 = vld [vmem:[%s3112_s19 + $0x1b10] sm:$0xff]  ;;  %v1931_v36 = vld [vmem:[%s3112_s19 + $0x1b18] sm:$0xff] }
 0x381   : > { %2764 = vst [vmem:[%s3123_s22 + $0x3240] sm:$0xff] %v1868_v37  ;;  %2765 = vst [vmem:[%s3123_s22 + $0x3250] sm:$0xff] %v1869_v38  ;;  %v1932_v37 = vld [vmem:[%s3112_s19 + $0x1b20] sm:$0xff]  ;;  %v1933_v38 = vld [vmem:[%s3112_s19 + $0x1b28] sm:$0xff] }
 0x382   : > { %2766 = vst [vmem:[%s3123_s22 + $0x3260] sm:$0xff] %v1870_v39  ;;  %2767 = vst [vmem:[%s3123_s22 + $0x3270] sm:$0xff] %v1871_v40  ;;  %v1934_v39 = vld [vmem:[%s3112_s19 + $0x1b30] sm:$0xff]  ;;  %v1935_v40 = vld [vmem:[%s3112_s19 + $0x1b38] sm:$0xff] }
 0x383   : > { %2768 = vst [vmem:[%s3123_s22 + $0x3280] sm:$0xff] %v1872_v41  ;;  %2769 = vst [vmem:[%s3123_s22 + $0x3290] sm:$0xff] %v1873_v42  ;;  %v1936_v41 = vld [vmem:[%s3112_s19 + $0x1b40] sm:$0xff]  ;;  %v1937_v42 = vld [vmem:[%s3112_s19 + $0x1b48] sm:$0xff] }
 0x384   : > { %2770 = vst [vmem:[%s3123_s22 + $0x32a0] sm:$0xff] %v1874_v43  ;;  %2771 = vst [vmem:[%s3123_s22 + $0x32b0] sm:$0xff] %v1875_v44  ;;  %v1938_v43 = vld [vmem:[%s3112_s19 + $0x1b50] sm:$0xff]  ;;  %v1939_v44 = vld [vmem:[%s3112_s19 + $0x1b58] sm:$0xff] }
 0x385   : > { %2772 = vst [vmem:[%s3123_s22 + $0x32c0] sm:$0xff] %v1876_v45  ;;  %2773 = vst [vmem:[%s3123_s22 + $0x32d0] sm:$0xff] %v1877_v46  ;;  %v1940_v45 = vld [vmem:[%s3112_s19 + $0x1b60] sm:$0xff]  ;;  %v1941_v46 = vld [vmem:[%s3112_s19 + $0x1b68] sm:$0xff] }
 0x386   : > { %2774 = vst [vmem:[%s3123_s22 + $0x32e0] sm:$0xff] %v1878_v47  ;;  %2775 = vst [vmem:[%s3123_s22 + $0x32f0] sm:$0xff] %v1879_v48  ;;  %v1942_v47 = vld [vmem:[%s3112_s19 + $0x1b70] sm:$0xff]  ;;  %v1943_v48 = vld [vmem:[%s3112_s19 + $0x1b78] sm:$0xff] }
 0x387   : > { %2776 = vst [vmem:[%s3123_s22 + $0x3300] sm:$0xff] %v1880_v49  ;;  %2777 = vst [vmem:[%s3123_s22 + $0x3310] sm:$0xff] %v1881_v50  ;;  %v1944_v49 = vld [vmem:[%s3112_s19 + $0x1b80] sm:$0xff]  ;;  %v1945_v50 = vld [vmem:[%s3112_s19 + $0x1b88] sm:$0xff] }
 0x388   : > { %2778 = vst [vmem:[%s3123_s22 + $0x3320] sm:$0xff] %v1882_v51  ;;  %2779 = vst [vmem:[%s3123_s22 + $0x3330] sm:$0xff] %v1883_v52  ;;  %v1946_v51 = vld [vmem:[%s3112_s19 + $0x1b90] sm:$0xff]  ;;  %v1947_v52 = vld [vmem:[%s3112_s19 + $0x1b98] sm:$0xff] }
 0x389   : > { %2780 = vst [vmem:[%s3123_s22 + $0x3340] sm:$0xff] %v1884_v53  ;;  %2781 = vst [vmem:[%s3123_s22 + $0x3350] sm:$0xff] %v1885_v54  ;;  %v1948_v53 = vld [vmem:[%s3112_s19 + $0x1ba0] sm:$0xff]  ;;  %v1949_v54 = vld [vmem:[%s3112_s19 + $0x1ba8] sm:$0xff] }
 0x38a   : > { %2782 = vst [vmem:[%s3123_s22 + $0x3360] sm:$0xff] %v1886_v55  ;;  %2783 = vst [vmem:[%s3123_s22 + $0x3370] sm:$0xff] %v1887_v56  ;;  %v1950_v55 = vld [vmem:[%s3112_s19 + $0x1bb0] sm:$0xff]  ;;  %v1951_v56 = vld [vmem:[%s3112_s19 + $0x1bb8] sm:$0xff] }
 0x38b   : > { %2784 = vst [vmem:[%s3123_s22 + $0x3380] sm:$0xff] %v1888_v57  ;;  %2785 = vst [vmem:[%s3123_s22 + $0x3390] sm:$0xff] %v1889_v58  ;;  %v1952_v57 = vld [vmem:[%s3112_s19 + $0x1bc0] sm:$0xff]  ;;  %v1953_v58 = vld [vmem:[%s3112_s19 + $0x1bc8] sm:$0xff] }
 0x38c   : > { %2786 = vst [vmem:[%s3123_s22 + $0x33a0] sm:$0xff] %v1890_v59  ;;  %2787 = vst [vmem:[%s3123_s22 + $0x33b0] sm:$0xff] %v1891_v60  ;;  %v1954_v59 = vld [vmem:[%s3112_s19 + $0x1bd0] sm:$0xff]  ;;  %v1955_v60 = vld [vmem:[%s3112_s19 + $0x1bd8] sm:$0xff] }
 0x38d   : > { %2788 = vst [vmem:[%s3123_s22 + $0x33c0] sm:$0xff] %v1892_v61  ;;  %2789 = vst [vmem:[%s3123_s22 + $0x33d0] sm:$0xff] %v1893_v62  ;;  %v1956_v61 = vld [vmem:[%s3112_s19 + $0x1be0] sm:$0xff]  ;;  %v1957_v62 = vld [vmem:[%s3112_s19 + $0x1be8] sm:$0xff] }
 0x38e   : > { %2790 = vst [vmem:[%s3123_s22 + $0x33e0] sm:$0xff] %v1894_v63  ;;  %2791 = vst [vmem:[%s3123_s22 + $0x33f0] sm:$0xff] %v1895_v0  ;;  %v1958_v63 = vld [vmem:[%s3112_s19 + $0x1bf0] sm:$0xff]  ;;  %v1959_v0 = vld [vmem:[%s3112_s19 + $0x1bf8] sm:$0xff] }
 0x38f   : > { %2792 = vst [vmem:[%s3123_s22 + $0x3400] sm:$0xff] %v1896_v1  ;;  %2793 = vst [vmem:[%s3123_s22 + $0x3410] sm:$0xff] %v1897_v2 }
 0x390   : > { %2794 = vst [vmem:[%s3123_s22 + $0x3420] sm:$0xff] %v1898_v3  ;;  %2795 = vst [vmem:[%s3123_s22 + $0x3430] sm:$0xff] %v1899_v4 }
 0x391   : > { %2796 = vst [vmem:[%s3123_s22 + $0x3440] sm:$0xff] %v1900_v5  ;;  %2797 = vst [vmem:[%s3123_s22 + $0x3450] sm:$0xff] %v1901_v6 }
 0x392   : > { %2798 = vst [vmem:[%s3123_s22 + $0x3460] sm:$0xff] %v1902_v7  ;;  %2799 = vst [vmem:[%s3123_s22 + $0x3470] sm:$0xff] %v1903_v8 }
 0x393   : > { %2800 = vst [vmem:[%s3123_s22 + $0x3480] sm:$0xff] %v1904_v9  ;;  %2801 = vst [vmem:[%s3123_s22 + $0x3490] sm:$0xff] %v1905_v10 }
 0x394   : > { %2802 = vst [vmem:[%s3123_s22 + $0x34a0] sm:$0xff] %v1906_v11  ;;  %2803 = vst [vmem:[%s3123_s22 + $0x34b0] sm:$0xff] %v1907_v12 }
 0x395   : > { %2804 = vst [vmem:[%s3123_s22 + $0x34c0] sm:$0xff] %v1908_v13  ;;  %2805 = vst [vmem:[%s3123_s22 + $0x34d0] sm:$0xff] %v1909_v14 }
 0x396   : > { %2806 = vst [vmem:[%s3123_s22 + $0x34e0] sm:$0xff] %v1910_v15  ;;  %2807 = vst [vmem:[%s3123_s22 + $0x34f0] sm:$0xff] %v1911_v16 }
 0x397   : > { %2808 = vst [vmem:[%s3123_s22 + $0x3500] sm:$0xff] %v1912_v17  ;;  %2809 = vst [vmem:[%s3123_s22 + $0x3510] sm:$0xff] %v1913_v18 }
 0x398   : > { %2810 = vst [vmem:[%s3123_s22 + $0x3520] sm:$0xff] %v1914_v19  ;;  %2811 = vst [vmem:[%s3123_s22 + $0x3530] sm:$0xff] %v1915_v20 }
 0x399   : > { %2812 = vst [vmem:[%s3123_s22 + $0x3540] sm:$0xff] %v1916_v21  ;;  %2813 = vst [vmem:[%s3123_s22 + $0x3550] sm:$0xff] %v1917_v22 }
 0x39a   : > { %2814 = vst [vmem:[%s3123_s22 + $0x3560] sm:$0xff] %v1918_v23  ;;  %2815 = vst [vmem:[%s3123_s22 + $0x3570] sm:$0xff] %v1919_v24 }
 0x39b   : > { %2816 = vst [vmem:[%s3123_s22 + $0x3580] sm:$0xff] %v1920_v25  ;;  %2817 = vst [vmem:[%s3123_s22 + $0x3590] sm:$0xff] %v1921_v26 }
 0x39c   : > { %2818 = vst [vmem:[%s3123_s22 + $0x35a0] sm:$0xff] %v1922_v27  ;;  %2819 = vst [vmem:[%s3123_s22 + $0x35b0] sm:$0xff] %v1923_v28 }
 0x39d   : > { %2820 = vst [vmem:[%s3123_s22 + $0x35c0] sm:$0xff] %v1924_v29  ;;  %2821 = vst [vmem:[%s3123_s22 + $0x35d0] sm:$0xff] %v1925_v30 }
 0x39e   : > { %2822 = vst [vmem:[%s3123_s22 + $0x35e0] sm:$0xff] %v1926_v31  ;;  %2823 = vst [vmem:[%s3123_s22 + $0x35f0] sm:$0xff] %v1927_v32 }
 0x39f   : > { %2824 = vst [vmem:[%s3123_s22 + $0x3600] sm:$0xff] %v1928_v33  ;;  %2825 = vst [vmem:[%s3123_s22 + $0x3610] sm:$0xff] %v1929_v34 }
 0x3a0   : > { %2826 = vst [vmem:[%s3123_s22 + $0x3620] sm:$0xff] %v1930_v35  ;;  %2827 = vst [vmem:[%s3123_s22 + $0x3630] sm:$0xff] %v1931_v36 }
 0x3a1   : > { %2828 = vst [vmem:[%s3123_s22 + $0x3640] sm:$0xff] %v1932_v37  ;;  %2829 = vst [vmem:[%s3123_s22 + $0x3650] sm:$0xff] %v1933_v38 }
 0x3a2   : > { %2830 = vst [vmem:[%s3123_s22 + $0x3660] sm:$0xff] %v1934_v39  ;;  %2831 = vst [vmem:[%s3123_s22 + $0x3670] sm:$0xff] %v1935_v40 }
 0x3a3   : > { %2832 = vst [vmem:[%s3123_s22 + $0x3680] sm:$0xff] %v1936_v41  ;;  %2833 = vst [vmem:[%s3123_s22 + $0x3690] sm:$0xff] %v1937_v42 }
 0x3a4   : > { %2834 = vst [vmem:[%s3123_s22 + $0x36a0] sm:$0xff] %v1938_v43  ;;  %2835 = vst [vmem:[%s3123_s22 + $0x36b0] sm:$0xff] %v1939_v44 }
 0x3a5   : > { %2836 = vst [vmem:[%s3123_s22 + $0x36c0] sm:$0xff] %v1940_v45  ;;  %2837 = vst [vmem:[%s3123_s22 + $0x36d0] sm:$0xff] %v1941_v46 }
 0x3a6   : > { %2838 = vst [vmem:[%s3123_s22 + $0x36e0] sm:$0xff] %v1942_v47  ;;  %2839 = vst [vmem:[%s3123_s22 + $0x36f0] sm:$0xff] %v1943_v48 }
 0x3a7   : > { %2840 = vst [vmem:[%s3123_s22 + $0x3700] sm:$0xff] %v1944_v49  ;;  %2841 = vst [vmem:[%s3123_s22 + $0x3710] sm:$0xff] %v1945_v50 }
 0x3a8   : > { %2842 = vst [vmem:[%s3123_s22 + $0x3720] sm:$0xff] %v1946_v51  ;;  %2843 = vst [vmem:[%s3123_s22 + $0x3730] sm:$0xff] %v1947_v52 }
 0x3a9   : > { %2844 = vst [vmem:[%s3123_s22 + $0x3740] sm:$0xff] %v1948_v53  ;;  %2845 = vst [vmem:[%s3123_s22 + $0x3750] sm:$0xff] %v1949_v54 }
 0x3aa   : > { %2846 = vst [vmem:[%s3123_s22 + $0x3760] sm:$0xff] %v1950_v55  ;;  %2847 = vst [vmem:[%s3123_s22 + $0x3770] sm:$0xff] %v1951_v56 }
 0x3ab   : > { %2848 = vst [vmem:[%s3123_s22 + $0x3780] sm:$0xff] %v1952_v57  ;;  %2849 = vst [vmem:[%s3123_s22 + $0x3790] sm:$0xff] %v1953_v58 }
 0x3ac   : > { %2850 = vst [vmem:[%s3123_s22 + $0x37a0] sm:$0xff] %v1954_v59  ;;  %2851 = vst [vmem:[%s3123_s22 + $0x37b0] sm:$0xff] %v1955_v60 }
 0x3ad   : > { %2852 = vst [vmem:[%s3123_s22 + $0x37c0] sm:$0xff] %v1956_v61  ;;  %2853 = vst [vmem:[%s3123_s22 + $0x37d0] sm:$0xff] %v1957_v62 }
 0x3ae   : > { %2854 = vst [vmem:[%s3123_s22 + $0x37e0] sm:$0xff] %v1958_v63  ;;  %2855 = vst [vmem:[%s3123_s22 + $0x37f0] sm:$0xff] %v1959_v0 }
 0x3af PF: > { %p11_p12 = scmp.ge.s32.totalorder %s3065_s11, 4   ;;  %s7631_s6 = smov %s3018_s7 }
 0x3b0   : > { %s7632_s7 = smov %s3022_s8  ;;  %s7633_s8 = smov %s3075_s14 }
 0x3b1   : > { %s7634_s9 = smov %s3065_s11  ;;  %13 = sbr.rel (!%p11_p12) target bundleno = 3 (0x3), region = 69 }
 0x3b6   :  { %2880 = vsyncpa [#allocation3], 1 }
 0x3b7   :  { %2882 = vsyncpa [#allocation3 + $0x1], 1 }

</bundles_post_ra>
